<compile_context>
chip_gen: v7x
topology: tpu7x:2x2x1
jax: 0.10.0
libtpu: 0.0.40
codegen_flags: <defaults>
</compile_context>

<pallas_src>
import math

import numpy as np
import jax
import jax.numpy as jnp
from jax.experimental import pallas as pl
from jax.experimental.pallas import tpu as pltpu


WEIGHT_LANES = 512      # slab lane width = max fan_out in the network
ROW_ALIGN = 16          # bf16 sublane packing granularity

# Activation applied to each chain layer's OUTPUT (mirrors the PyTorch forward)
AP_CHAIN_ACTS = ("relu",) * 8 + ("softmax",)                       # fa2..fa10
OBS_CHAIN_ACTS = ("relu", "relu", "none",                          # fo3, fo4, fo5
                  "relu", "relu", "relu", "relu", "relu")          # fo6..fo9, f10
POL_CHAIN_ACTS = ("relu",) * 7 + ("softmax",)                      # fc2..fc9


def _round_up(n, m):
    return ((n + m - 1) // m) * m


# ----------------------------------------------------------------------------
# Raw parameters (PyTorch nn.Linear-style uniform init), natural shapes, f32
# ----------------------------------------------------------------------------
def _linear_init(key, fan_in, fan_out):
    kw, kb = jax.random.split(key)
    bound = 1.0 / math.sqrt(fan_in)
    w = jax.random.uniform(kw, (fan_in, fan_out), jnp.float32, -bound, bound)
    b = jax.random.uniform(kb, (fan_out,), jnp.float32, -bound, bound)
    return w, b


def build_params(key, state_size, action_size):
    S, A = state_size, action_size
    keys = iter(jax.random.split(key, 64))
    nxt = lambda: next(keys)
    raw = {}

    ap_dims = [S, 32, 64, 128, 256, 512, 256, 128, 64, 32, A]
    raw["ap"] = [_linear_init(nxt(), ap_dims[i], ap_dims[i + 1]) for i in range(10)]

    raw["fo1"] = _linear_init(nxt(), S, 32)
    raw["ofa1"] = _linear_init(nxt(), A, 32)       # present action
    raw["ofa2"] = _linear_init(nxt(), A, 32)       # predicted (other) action
    raw["fo2"] = _linear_init(nxt(), 96, 64)       # acts on cat([o, at, at1])
    obs_dims = [64, 128, 256, 512, 256, 128, 64, 32, 21]
    raw["obs_chain"] = [_linear_init(nxt(), obs_dims[i], obs_dims[i + 1])
                        for i in range(8)]

    raw["fm1"] = _linear_init(nxt(), 2, 32)        # message is length 2
    raw["fs1"] = _linear_init(nxt(), 21, 32)       # observation_t1 is length 21
    raw["fc1"] = _linear_init(nxt(), 64, 64)       # acts on cat([m, o])
    pol_dims = [64, 128, 256, 512, 256, 128, 64, 32, A]
    raw["pol_chain"] = [_linear_init(nxt(), pol_dims[i], pol_dims[i + 1])
                        for i in range(8)]

    # attention: trajectory = cat([observation_t1 (21), policy (A)]).
    # wv/bv are dead code in the reference output -> never created.
    raw["wk"] = _linear_init(nxt(), 21 + A, 128)
    raw["wq"] = _linear_init(nxt(), 2, 128)
    return raw


# ----------------------------------------------------------------------------
# Slab packing: each weight block row-aligned to 16, starting at lane 0
# ----------------------------------------------------------------------------
class _Slab:
    def __init__(self, lanes, row_align):
        self.lanes = lanes
        self.row_align = row_align
        self.blocks = []
        self.rows = 0

    def add(self, w):
        w = np.asarray(w, np.float32)
        if w.ndim == 1:
            w = w[None, :]
        fi, fo = w.shape
        assert fo <= self.lanes
        r0 = self.rows
        self.blocks.append((r0, w))
        self.rows += _round_up(fi, self.row_align)
        return (r0, fi, fo)

    def finalize(self, dtype):
        total = max(_round_up(self.rows, self.row_align), self.row_align)
        buf = np.zeros((total, self.lanes), np.float32)
        for r0, w in self.blocks:
            fi, fo = w.shape
            buf[r0:r0 + fi, :fo] = w
        return jnp.asarray(buf, dtype=dtype)


def pack_params(raw, state_size, action_size):
    """Build the bf16 weight slab, f32 bias slab and the static slice plan."""
    wsl = _Slab(WEIGHT_LANES, ROW_ALIGN)
    bsl = _Slab(WEIGHT_LANES, 1)
    cat = lambda *xs: np.concatenate([np.asarray(x, np.float32) for x in xs], axis=-1)

    def badd(*bs):
        r0, _, fo = bsl.add(cat(*bs))
        return (r0, fo)

    plan = {}

    # fused front dot on `obs`: [action_predictor.fa1 | fo1]  -> (S, 64)
    (w_ap1, b_ap1), (w_fo1, b_fo1) = raw["ap"][0], raw["fo1"]
    plan["obs_front_w"] = wsl.add(cat(w_ap1, w_fo1))
    plan["obs_front_b"] = badd(b_ap1, b_fo1)

    plan["ap"] = [(wsl.add(w), badd(b), a)
                  for (w, b), a in zip(raw["ap"][1:], AP_CHAIN_ACTS)]

    plan["ofa1"] = (wsl.add(raw["ofa1"][0]), badd(raw["ofa1"][1]))
    plan["ofa2"] = (wsl.add(raw["ofa2"][0]), badd(raw["ofa2"][1]))

    w_fo2, b_fo2 = raw["fo2"]                      # cat([o, at, at1]) -> row-split
    plan["fo2_o"] = wsl.add(w_fo2[0:32])
    plan["fo2_a"] = wsl.add(w_fo2[32:64])
    plan["fo2_a1"] = wsl.add(w_fo2[64:96])
    plan["fo2_b"] = badd(b_fo2)

    plan["obs_chain"] = [(wsl.add(w), badd(b), a)
                         for (w, b), a in zip(raw["obs_chain"], OBS_CHAIN_ACTS)]

    # fused front dot on `msg`: [wq | fm1]  (128-wide output first for alignment)
    (w_q, b_q), (w_fm1, b_fm1) = raw["wq"], raw["fm1"]
    plan["msg_front_w"] = wsl.add(cat(w_q, w_fm1))            # (2, 160)
    plan["msg_front_b"] = badd(b_q, b_fm1)

    # fused front dot on `obs_t1`: [wk[:21] | fs1]
    (w_k, b_k), (w_fs1, b_fs1) = raw["wk"], raw["fs1"]
    plan["ot1_front_w"] = wsl.add(cat(w_k[0:21], w_fs1))      # (21, 160)
    plan["ot1_front_b"] = badd(b_k, b_fs1)

    w_fc1, b_fc1 = raw["fc1"]                      # cat([m, o]) -> row-split
    plan["fc1_m"] = wsl.add(w_fc1[0:32])
    plan["fc1_s"] = wsl.add(w_fc1[32:64])
    plan["fc1_b"] = badd(b_fc1)

    plan["pol_chain"] = [(wsl.add(w), badd(b), a)
                         for (w, b), a in zip(raw["pol_chain"], POL_CHAIN_ACTS)]

    plan["wk_p"] = wsl.add(w_k[21:])               # (A, 128); bk already in ot1_front_b

    return wsl.finalize(jnp.bfloat16), bsl.finalize(jnp.float32), plan


# ----------------------------------------------------------------------------
# Fused kernel
# ----------------------------------------------------------------------------
def _activate(y, act):
    if act == "relu":
        return jnp.maximum(y, 0.0)
    if act == "softmax":                            # exact: feeds ~20 layers
        y = y - jnp.max(y, axis=-1, keepdims=True)
        e = jnp.exp(y)
        return e / jnp.sum(e, axis=-1, keepdims=True)
    return y


def make_kernel(plan, state_size, action_size):
    S, A = state_size, action_size

    def kernel(x_ref, w_ref, b_ref, o_ref):
        x = x_ref[...]                               # (B, S+A+2) f32
        obs = x[:, 0:S]
        act = x[:, S:S + A]
        msg = x[:, S + A:S + A + 2]

        def w_at(h):                                 # static, 16-row-aligned slice
            r0, fi, fo = h
            return w_ref[r0:r0 + fi, 0:fo]

        def b_at(h):
            r0, fo = h
            return b_ref[r0:r0 + 1, 0:fo]

        def mm(xv, wh):                              # bf16 x bf16 on MXU, f32 acc
            return jnp.dot(xv.astype(jnp.bfloat16), w_at(wh),
                           preferred_element_type=jnp.float32)

        def dense(xv, wh, bh, a="none"):
            return _activate(mm(xv, wh) + b_at(bh), a)

        # -- fused front dot on `obs`: [fa1 | fo1] ----------------------------
        y = mm(obs, plan["obs_front_w"]) + b_at(plan["obs_front_b"])
        ap_x = jnp.maximum(y[:, 0:32], 0.0)          # relu(fa1(obs))
        o1 = y[:, 32:64]                             # fo1(obs), no activation

        # -- action_predictor fa2..fa10 ---------------------------------------
        for wh, bh, a in plan["ap"]:
            ap_x = dense(ap_x, wh, bh, a)
        other_action = ap_x                          # (B, A), softmaxed

        # -- observation_predictor --------------------------------------------
        at = dense(act, *plan["ofa1"])               # fa1(present action)
        at1 = dense(other_action, *plan["ofa2"])     # fa2(predicted action)
        # fo2 over cat([o1, at, at1]) as row-split sequential accumulation
        acc = mm(o1, plan["fo2_o"])
        acc = acc + mm(at, plan["fo2_a"])
        acc = acc + mm(at1, plan["fo2_a1"])
        ox = jnp.maximum(acc + b_at(plan["fo2_b"]), 0.0)
        for wh, bh, a in plan["obs_chain"]:
            ox = dense(ox, wh, bh, a)
        obs_t1 = ox                                  # (B, 21)

        # -- fused front dot on `msg`: [wq | fm1] ------------------------------
        ym = mm(msg, plan["msg_front_w"]) + b_at(plan["msg_front_b"])
        q = ym[:, 0:128]                             # wq(msg) + bq
        m = ym[:, 128:160]                           # fm1(msg), no activation

        # -- fused front dot on `obs_t1`: [wk[:21] | fs1] ----------------------
        yo = mm(obs_t1, plan["ot1_front_w"]) + b_at(plan["ot1_front_b"])
        k_part = yo[:, 0:128]                        # wk[:21](obs_t1) + bk
        o2 = yo[:, 128:160]                          # fs1(obs_t1), no activation

        # -- policy fc1..fc9 (fc1 over cat([m, o2]) as row-split) --------------
        acc = mm(m, plan["fc1_m"])
        acc = acc + mm(o2, plan["fc1_s"])
        px = jnp.maximum(acc + b_at(plan["fc1_b"]), 0.0)
        for wh, bh, a in plan["pol_chain"]:
            px = dense(px, wh, bh, a)
        policy = px                                  # (B, A), softmaxed

        # -- attention ---------------------------------------------------------
        # k = wk(cat([obs_t1, policy])) + bk ; x1 = q.k (scalar per row).
        # softmax of the scalar x1 == 1 and dot([x1,0],[1,0]) == x1, so the
        # module output is exactly q.k; wv/bv are dead code (not computed).
        k = k_part + mm(policy, plan["wk_p"])
        o_ref[...] = jnp.sum(q * k, axis=-1, keepdims=True)

    return kernel


# ----------------------------------------------------------------------------
# Wrapper: one fused pallas_call, 3 input DMAs (x, weight slab, bias slab)
# ----------------------------------------------------------------------------
def make_mgn_forward(plan, state_size, action_size):
    S, A = state_size, action_size
    kernel = make_kernel(plan, S, A)
    vmem = pl.BlockSpec(memory_space=pltpu.MemorySpace.VMEM)

    def fwd(w_slab, b_slab, observation, action, message):
        single = observation.ndim == 1
        obs = jnp.atleast_2d(observation).astype(jnp.float32)       # (B, S)
        act = jnp.atleast_2d(action).astype(jnp.float32)            # (B, A)
        msg_v = jnp.asarray(message, jnp.float32).reshape(-1)       # (B,)
        msg = jnp.stack([msg_v, jnp.zeros_like(msg_v)], axis=-1)    # [m.item(), 0]
        x = jnp.concatenate([obs, act, msg], axis=-1)               # (B, S+A+2)
        B = x.shape[0]

        bytes_accessed = (w_slab.size * w_slab.dtype.itemsize
                          + b_slab.size * b_slab.dtype.itemsize
                          + x.size * 4 + B * 4)
        out = pl.pallas_call(
            kernel,
            out_shape=jax.ShapeDtypeStruct((B, 1), jnp.float32),
            in_specs=[vmem, vmem, vmem],
            out_specs=vmem,
            cost_estimate=pl.CostEstimate(
                flops=2 * 1_060_000 * B,
                transcendentals=2 * A * B,
                bytes_accessed=bytes_accessed),
        )(x, w_slab, b_slab)[:, 0]
        return out[0] if single else out

    return fwd


# ----------------------------------------------------------------------------
# Pure-JAX reference mirroring the PyTorch graph (same bf16 weights)
# ----------------------------------------------------------------------------
def mgn_reference(raw, observation, action, message):
    f32 = jnp.float32

    def lin(x, wb):
        w, b = wb
        y = jnp.dot(x.astype(jnp.bfloat16)[None, :], w.astype(jnp.bfloat16),
                    preferred_element_type=f32)[0]
        return y + b

    relu = lambda t: jnp.maximum(t, 0.0)

    obs = observation.astype(f32)
    act = action.astype(f32)
    msg = jnp.stack([jnp.asarray(message, f32).reshape(()), jnp.float32(0.0)])

    # action_predictor
    x = lin(obs, raw["ap"][0])
    for i in range(1, 10):
        x = lin(relu(x), raw["ap"][i])
    other_action = jax.nn.softmax(x)

    # observation_predictor
    o = lin(obs, raw["fo1"])
    at = lin(act, raw["ofa1"])
    at1 = lin(other_action, raw["ofa2"])
    x = relu(lin(jnp.concatenate([o, at, at1]), raw["fo2"]))
    for wb, a in zip(raw["obs_chain"], OBS_CHAIN_ACTS):
        x = lin(x, wb)
        if a == "relu":
            x = relu(x)
    obs_t1 = x

    # policy
    m = lin(msg, raw["fm1"])
    o2 = lin(obs_t1, raw["fs1"])
    x = relu(lin(jnp.concatenate([m, o2]), raw["fc1"]))
    for wb, a in zip(raw["pol_chain"], POL_CHAIN_ACTS):
        x = lin(x, wb)
        x = relu(x) if a == "relu" else (jax.nn.softmax(x) if a == "softmax" else x)
    policy = x

    # attention (wv branch is dead code)
    traj = jnp.concatenate([obs_t1, policy])
    k = lin(traj, raw["wk"])
    q = lin(msg, raw["wq"])
    x1 = jnp.sum(q * k)
    x2 = jax.nn.softmax(x1.reshape(1))[0]        # softmax of a scalar == 1
    return x1 * x2                               # == dot([x1, 0], [x2, 0])


# ----------------------------------------------------------------------------
if __name__ == "__main__":
    STATE, ACTION, MESSAGE = 16, 8, 4            # message_size unused by forward
    BATCH = 8

    key = jax.random.PRNGKey(0)
    k_par, k_obs, k_act, k_msg = jax.random.split(key, 4)

    raw = build_params(k_par, STATE, ACTION)
    w_slab, b_slab, plan = pack_params(raw, STATE, ACTION)

    observation = jax.random.normal(k_obs, (BATCH, STATE), jnp.float32)
    action = jax.random.normal(k_act, (BATCH, ACTION), jnp.float32)
    message = jax.random.normal(k_msg, (BATCH,), jnp.float32)

    fwd = jax.jit(make_mgn_forward(plan, STATE, ACTION))
    out = fwd(w_slab, b_slab, observation, action, message)
    out = jax.block_until_ready(out)
    assert out.shape == (BATCH,) and out.dtype == jnp.float32

    # End-to-end check vs a pure-JAX reference of the PyTorch graph (explicit
    # concats, per-layer Linear) using the same bf16 weights / f32 biases.
    ref = jnp.stack([mgn_reference(raw, observation[i], action[i], message[i])
                     for i in range(BATCH)])
    ref = jax.block_until_ready(ref)
    np.testing.assert_allclose(np.asarray(out), np.asarray(ref),
                               rtol=5e-3, atol=5e-3)

    print("KERNEL_OK")
</pallas_src>

<mosaic_0001>
module attributes {stable_mosaic.version = 11 : i64} {
  func.func @kernel(%arg0: memref<8x26xf32, #tpu.memory_space<vmem>>, %arg1: memref<4624x512xbf16, #tpu.memory_space<vmem>>, %arg2: memref<32x512xf32, #tpu.memory_space<vmem>>, %arg3: memref<8x1xf32, #tpu.memory_space<vmem>>) attributes {dimension_semantics = [], scalar_prefetch = 0 : i64, scratch_operands = 0 : i64, tpu.core_type = #tpu.core_type<tc>} {
    %c0 = arith.constant 0 : index
    %c0_0 = arith.constant 0 : index
    %0 = vector.load %arg0[%c0, %c0_0] : memref<8x26xf32, #tpu.memory_space<vmem>>, vector<8x26xf32>
    %1 = vector.extract_strided_slice %0 {offsets = [0, 0], sizes = [8, 16], strides = [1, 1]} : vector<8x26xf32> to vector<8x16xf32>
    %2 = vector.extract_strided_slice %0 {offsets = [0, 16], sizes = [8, 8], strides = [1, 1]} : vector<8x26xf32> to vector<8x8xf32>
    %3 = vector.extract_strided_slice %0 {offsets = [0, 24], sizes = [8, 2], strides = [1, 1]} : vector<8x26xf32> to vector<8x2xf32>
    %4 = arith.truncf %1 : vector<8x16xf32> to vector<8x16xbf16>
    %c0_1 = arith.constant 0 : index
    %c0_2 = arith.constant 0 : index
    %5 = vector.load %arg1[%c0_1, %c0_2] : memref<4624x512xbf16, #tpu.memory_space<vmem>>, vector<16x64xbf16>
    %cst = arith.constant dense<0.000000e+00> : vector<8x64xf32>
    %6 = tpu.matmul %4, %5, %cst {dimension_numbers = #tpu.dot_dimension_numbers<[1], [0], [0], [1], [0, 0, 1, 1], [], []>} : vector<8x16xbf16>, vector<16x64xbf16>, vector<8x64xf32> -> vector<8x64xf32>
    %c0_3 = arith.constant 0 : index
    %c0_4 = arith.constant 0 : index
    %7 = vector.load %arg2[%c0_3, %c0_4] : memref<32x512xf32, #tpu.memory_space<vmem>>, vector<1x64xf32>
    %8 = vector.broadcast %7 : vector<1x64xf32> to vector<8x64xf32>
    %9 = arith.addf %6, %8 : vector<8x64xf32>
    %10 = vector.extract_strided_slice %9 {offsets = [0, 0], sizes = [8, 32], strides = [1, 1]} : vector<8x64xf32> to vector<8x32xf32>
    %cst_5 = arith.constant 0.000000e+00 : f32
    %11 = vector.broadcast %cst_5 : f32 to vector<8x32xf32>
    %12 = arith.maximumf %10, %11 : vector<8x32xf32>
    %13 = vector.extract_strided_slice %9 {offsets = [0, 32], sizes = [8, 32], strides = [1, 1]} : vector<8x64xf32> to vector<8x32xf32>
    %14 = arith.truncf %12 : vector<8x32xf32> to vector<8x32xbf16>
    %c16 = arith.constant 16 : index
    %c0_6 = arith.constant 0 : index
    %15 = vector.load %arg1[%c16, %c0_6] : memref<4624x512xbf16, #tpu.memory_space<vmem>>, vector<32x64xbf16>
    %cst_7 = arith.constant dense<0.000000e+00> : vector<8x64xf32>
    %16 = tpu.matmul %14, %15, %cst_7 {dimension_numbers = #tpu.dot_dimension_numbers<[1], [0], [0], [1], [0, 0, 1, 1], [], []>} : vector<8x32xbf16>, vector<32x64xbf16>, vector<8x64xf32> -> vector<8x64xf32>
    %c1 = arith.constant 1 : index
    %c0_8 = arith.constant 0 : index
    %17 = vector.load %arg2[%c1, %c0_8] : memref<32x512xf32, #tpu.memory_space<vmem>>, vector<1x64xf32>
    %18 = vector.broadcast %17 : vector<1x64xf32> to vector<8x64xf32>
    %19 = arith.addf %16, %18 : vector<8x64xf32>
    %cst_9 = arith.constant 0.000000e+00 : f32
    %20 = vector.broadcast %cst_9 : f32 to vector<8x64xf32>
    %21 = arith.maximumf %19, %20 : vector<8x64xf32>
    %22 = arith.truncf %21 : vector<8x64xf32> to vector<8x64xbf16>
    %c48 = arith.constant 48 : index
    %c0_10 = arith.constant 0 : index
    %23 = vector.load %arg1[%c48, %c0_10] : memref<4624x512xbf16, #tpu.memory_space<vmem>>, vector<64x128xbf16>
    %cst_11 = arith.constant dense<0.000000e+00> : vector<8x128xf32>
    %24 = tpu.matmul %22, %23, %cst_11 {dimension_numbers = #tpu.dot_dimension_numbers<[1], [0], [0], [1], [0, 0, 1, 1], [], []>} : vector<8x64xbf16>, vector<64x128xbf16>, vector<8x128xf32> -> vector<8x128xf32>
    %c2 = arith.constant 2 : index
    %c0_12 = arith.constant 0 : index
    %25 = vector.load %arg2[%c2, %c0_12] : memref<32x512xf32, #tpu.memory_space<vmem>>, vector<1x128xf32>
    %26 = vector.broadcast %25 : vector<1x128xf32> to vector<8x128xf32>
    %27 = arith.addf %24, %26 : vector<8x128xf32>
    %cst_13 = arith.constant 0.000000e+00 : f32
    %28 = vector.broadcast %cst_13 : f32 to vector<8x128xf32>
    %29 = arith.maximumf %27, %28 : vector<8x128xf32>
    %30 = arith.truncf %29 : vector<8x128xf32> to vector<8x128xbf16>
    %c112 = arith.constant 112 : index
    %c0_14 = arith.constant 0 : index
    %31 = vector.load %arg1[%c112, %c0_14] : memref<4624x512xbf16, #tpu.memory_space<vmem>>, vector<128x256xbf16>
    %cst_15 = arith.constant dense<0.000000e+00> : vector<8x256xf32>
    %32 = tpu.matmul %30, %31, %cst_15 {dimension_numbers = #tpu.dot_dimension_numbers<[1], [0], [0], [1], [0, 0, 1, 1], [], []>} : vector<8x128xbf16>, vector<128x256xbf16>, vector<8x256xf32> -> vector<8x256xf32>
    %c3 = arith.constant 3 : index
    %c0_16 = arith.constant 0 : index
    %33 = vector.load %arg2[%c3, %c0_16] : memref<32x512xf32, #tpu.memory_space<vmem>>, vector<1x256xf32>
    %34 = vector.broadcast %33 : vector<1x256xf32> to vector<8x256xf32>
    %35 = arith.addf %32, %34 : vector<8x256xf32>
    %cst_17 = arith.constant 0.000000e+00 : f32
    %36 = vector.broadcast %cst_17 : f32 to vector<8x256xf32>
    %37 = arith.maximumf %35, %36 : vector<8x256xf32>
    %38 = arith.truncf %37 : vector<8x256xf32> to vector<8x256xbf16>
    %c240 = arith.constant 240 : index
    %c0_18 = arith.constant 0 : index
    %39 = vector.load %arg1[%c240, %c0_18] : memref<4624x512xbf16, #tpu.memory_space<vmem>>, vector<256x512xbf16>
    %cst_19 = arith.constant dense<0.000000e+00> : vector<8x512xf32>
    %40 = tpu.matmul %38, %39, %cst_19 {dimension_numbers = #tpu.dot_dimension_numbers<[1], [0], [0], [1], [0, 0, 1, 1], [], []>} : vector<8x256xbf16>, vector<256x512xbf16>, vector<8x512xf32> -> vector<8x512xf32>
    %c4 = arith.constant 4 : index
    %c0_20 = arith.constant 0 : index
    %41 = vector.load %arg2[%c4, %c0_20] : memref<32x512xf32, #tpu.memory_space<vmem>>, vector<1x512xf32>
    %42 = vector.broadcast %41 : vector<1x512xf32> to vector<8x512xf32>
    %43 = arith.addf %40, %42 : vector<8x512xf32>
    %cst_21 = arith.constant 0.000000e+00 : f32
    %44 = vector.broadcast %cst_21 : f32 to vector<8x512xf32>
    %45 = arith.maximumf %43, %44 : vector<8x512xf32>
    %46 = arith.truncf %45 : vector<8x512xf32> to vector<8x512xbf16>
    %c496 = arith.constant 496 : index
    %c0_22 = arith.constant 0 : index
    %47 = vector.load %arg1[%c496, %c0_22] : memref<4624x512xbf16, #tpu.memory_space<vmem>>, vector<512x256xbf16>
    %cst_23 = arith.constant dense<0.000000e+00> : vector<8x256xf32>
    %48 = tpu.matmul %46, %47, %cst_23 {dimension_numbers = #tpu.dot_dimension_numbers<[1], [0], [0], [1], [0, 0, 1, 1], [], []>} : vector<8x512xbf16>, vector<512x256xbf16>, vector<8x256xf32> -> vector<8x256xf32>
    %c5 = arith.constant 5 : index
    %c0_24 = arith.constant 0 : index
    %49 = vector.load %arg2[%c5, %c0_24] : memref<32x512xf32, #tpu.memory_space<vmem>>, vector<1x256xf32>
    %50 = vector.broadcast %49 : vector<1x256xf32> to vector<8x256xf32>
    %51 = arith.addf %48, %50 : vector<8x256xf32>
    %cst_25 = arith.constant 0.000000e+00 : f32
    %52 = vector.broadcast %cst_25 : f32 to vector<8x256xf32>
    %53 = arith.maximumf %51, %52 : vector<8x256xf32>
    %54 = arith.truncf %53 : vector<8x256xf32> to vector<8x256xbf16>
    %c1008 = arith.constant 1008 : index
    %c0_26 = arith.constant 0 : index
    %55 = vector.load %arg1[%c1008, %c0_26] : memref<4624x512xbf16, #tpu.memory_space<vmem>>, vector<256x128xbf16>
    %cst_27 = arith.constant dense<0.000000e+00> : vector<8x128xf32>
    %56 = tpu.matmul %54, %55, %cst_27 {dimension_numbers = #tpu.dot_dimension_numbers<[1], [0], [0], [1], [0, 0, 1, 1], [], []>} : vector<8x256xbf16>, vector<256x128xbf16>, vector<8x128xf32> -> vector<8x128xf32>
    %c6 = arith.constant 6 : index
    %c0_28 = arith.constant 0 : index
    %57 = vector.load %arg2[%c6, %c0_28] : memref<32x512xf32, #tpu.memory_space<vmem>>, vector<1x128xf32>
    %58 = vector.broadcast %57 : vector<1x128xf32> to vector<8x128xf32>
    %59 = arith.addf %56, %58 : vector<8x128xf32>
    %cst_29 = arith.constant 0.000000e+00 : f32
    %60 = vector.broadcast %cst_29 : f32 to vector<8x128xf32>
    %61 = arith.maximumf %59, %60 : vector<8x128xf32>
    %62 = arith.truncf %61 : vector<8x128xf32> to vector<8x128xbf16>
    %c1264 = arith.constant 1264 : index
    %c0_30 = arith.constant 0 : index
    %63 = vector.load %arg1[%c1264, %c0_30] : memref<4624x512xbf16, #tpu.memory_space<vmem>>, vector<128x64xbf16>
    %cst_31 = arith.constant dense<0.000000e+00> : vector<8x64xf32>
    %64 = tpu.matmul %62, %63, %cst_31 {dimension_numbers = #tpu.dot_dimension_numbers<[1], [0], [0], [1], [0, 0, 1, 1], [], []>} : vector<8x128xbf16>, vector<128x64xbf16>, vector<8x64xf32> -> vector<8x64xf32>
    %c7 = arith.constant 7 : index
    %c0_32 = arith.constant 0 : index
    %65 = vector.load %arg2[%c7, %c0_32] : memref<32x512xf32, #tpu.memory_space<vmem>>, vector<1x64xf32>
    %66 = vector.broadcast %65 : vector<1x64xf32> to vector<8x64xf32>
    %67 = arith.addf %64, %66 : vector<8x64xf32>
    %cst_33 = arith.constant 0.000000e+00 : f32
    %68 = vector.broadcast %cst_33 : f32 to vector<8x64xf32>
    %69 = arith.maximumf %67, %68 : vector<8x64xf32>
    %70 = arith.truncf %69 : vector<8x64xf32> to vector<8x64xbf16>
    %c1392 = arith.constant 1392 : index
    %c0_34 = arith.constant 0 : index
    %71 = vector.load %arg1[%c1392, %c0_34] : memref<4624x512xbf16, #tpu.memory_space<vmem>>, vector<64x32xbf16>
    %cst_35 = arith.constant dense<0.000000e+00> : vector<8x32xf32>
    %72 = tpu.matmul %70, %71, %cst_35 {dimension_numbers = #tpu.dot_dimension_numbers<[1], [0], [0], [1], [0, 0, 1, 1], [], []>} : vector<8x64xbf16>, vector<64x32xbf16>, vector<8x32xf32> -> vector<8x32xf32>
    %c8 = arith.constant 8 : index
    %c0_36 = arith.constant 0 : index
    %73 = vector.load %arg2[%c8, %c0_36] : memref<32x512xf32, #tpu.memory_space<vmem>>, vector<1x32xf32>
    %74 = vector.broadcast %73 : vector<1x32xf32> to vector<8x32xf32>
    %75 = arith.addf %72, %74 : vector<8x32xf32>
    %cst_37 = arith.constant 0.000000e+00 : f32
    %76 = vector.broadcast %cst_37 : f32 to vector<8x32xf32>
    %77 = arith.maximumf %75, %76 : vector<8x32xf32>
    %78 = arith.truncf %77 : vector<8x32xf32> to vector<8x32xbf16>
    %c1456 = arith.constant 1456 : index
    %c0_38 = arith.constant 0 : index
    %79 = vector.load %arg1[%c1456, %c0_38] : memref<4624x512xbf16, #tpu.memory_space<vmem>>, vector<32x8xbf16>
    %cst_39 = arith.constant dense<0.000000e+00> : vector<8x8xf32>
    %80 = tpu.matmul %78, %79, %cst_39 {dimension_numbers = #tpu.dot_dimension_numbers<[1], [0], [0], [1], [0, 0, 1, 1], [], []>} : vector<8x32xbf16>, vector<32x8xbf16>, vector<8x8xf32> -> vector<8x8xf32>
    %c9 = arith.constant 9 : index
    %c0_40 = arith.constant 0 : index
    %81 = vector.load %arg2[%c9, %c0_40] : memref<32x512xf32, #tpu.memory_space<vmem>>, vector<1x8xf32>
    %82 = vector.broadcast %81 : vector<1x8xf32> to vector<8x8xf32>
    %83 = arith.addf %80, %82 : vector<8x8xf32>
    %cst_41 = arith.constant dense<0xFF800000> : vector<8xf32>
    %84 = vector.multi_reduction <maximumf>, %83, %cst_41 [1] : vector<8x8xf32> to vector<8xf32>
    %85 = vector.shape_cast %84 : vector<8xf32> to vector<8x1xf32>
    %86 = vector.broadcast %85 : vector<8x1xf32> to vector<8x8xf32>
    %87 = arith.subf %83, %86 : vector<8x8xf32>
    %88 = math.exp %87 : vector<8x8xf32>
    %cst_42 = arith.constant dense<0.000000e+00> : vector<8xf32>
    %89 = vector.multi_reduction <add>, %88, %cst_42 [1] : vector<8x8xf32> to vector<8xf32>
    %90 = vector.shape_cast %89 : vector<8xf32> to vector<8x1xf32>
    %91 = vector.broadcast %90 : vector<8x1xf32> to vector<8x8xf32>
    %92 = arith.divf %88, %91 : vector<8x8xf32>
    %93 = arith.truncf %2 : vector<8x8xf32> to vector<8x8xbf16>
    %c1488 = arith.constant 1488 : index
    %c0_43 = arith.constant 0 : index
    %94 = vector.load %arg1[%c1488, %c0_43] : memref<4624x512xbf16, #tpu.memory_space<vmem>>, vector<8x32xbf16>
    %cst_44 = arith.constant dense<0.000000e+00> : vector<8x32xf32>
    %95 = tpu.matmul %93, %94, %cst_44 {dimension_numbers = #tpu.dot_dimension_numbers<[1], [0], [0], [1], [0, 0, 1, 1], [], []>} : vector<8x8xbf16>, vector<8x32xbf16>, vector<8x32xf32> -> vector<8x32xf32>
    %c10 = arith.constant 10 : index
    %c0_45 = arith.constant 0 : index
    %96 = vector.load %arg2[%c10, %c0_45] : memref<32x512xf32, #tpu.memory_space<vmem>>, vector<1x32xf32>
    %97 = vector.broadcast %96 : vector<1x32xf32> to vector<8x32xf32>
    %98 = arith.addf %95, %97 : vector<8x32xf32>
    %99 = arith.truncf %92 : vector<8x8xf32> to vector<8x8xbf16>
    %c1504 = arith.constant 1504 : index
    %c0_46 = arith.constant 0 : index
    %100 = vector.load %arg1[%c1504, %c0_46] : memref<4624x512xbf16, #tpu.memory_space<vmem>>, vector<8x32xbf16>
    %cst_47 = arith.constant dense<0.000000e+00> : vector<8x32xf32>
    %101 = tpu.matmul %99, %100, %cst_47 {dimension_numbers = #tpu.dot_dimension_numbers<[1], [0], [0], [1], [0, 0, 1, 1], [], []>} : vector<8x8xbf16>, vector<8x32xbf16>, vector<8x32xf32> -> vector<8x32xf32>
    %c11 = arith.constant 11 : index
    %c0_48 = arith.constant 0 : index
    %102 = vector.load %arg2[%c11, %c0_48] : memref<32x512xf32, #tpu.memory_space<vmem>>, vector<1x32xf32>
    %103 = vector.broadcast %102 : vector<1x32xf32> to vector<8x32xf32>
    %104 = arith.addf %101, %103 : vector<8x32xf32>
    %105 = arith.truncf %13 : vector<8x32xf32> to vector<8x32xbf16>
    %c1520 = arith.constant 1520 : index
    %c0_49 = arith.constant 0 : index
    %106 = vector.load %arg1[%c1520, %c0_49] : memref<4624x512xbf16, #tpu.memory_space<vmem>>, vector<32x64xbf16>
    %cst_50 = arith.constant dense<0.000000e+00> : vector<8x64xf32>
    %107 = tpu.matmul %105, %106, %cst_50 {dimension_numbers = #tpu.dot_dimension_numbers<[1], [0], [0], [1], [0, 0, 1, 1], [], []>} : vector<8x32xbf16>, vector<32x64xbf16>, vector<8x64xf32> -> vector<8x64xf32>
    %108 = arith.truncf %98 : vector<8x32xf32> to vector<8x32xbf16>
    %c1552 = arith.constant 1552 : index
    %c0_51 = arith.constant 0 : index
    %109 = vector.load %arg1[%c1552, %c0_51] : memref<4624x512xbf16, #tpu.memory_space<vmem>>, vector<32x64xbf16>
    %cst_52 = arith.constant dense<0.000000e+00> : vector<8x64xf32>
    %110 = tpu.matmul %108, %109, %cst_52 {dimension_numbers = #tpu.dot_dimension_numbers<[1], [0], [0], [1], [0, 0, 1, 1], [], []>} : vector<8x32xbf16>, vector<32x64xbf16>, vector<8x64xf32> -> vector<8x64xf32>
    %111 = arith.addf %107, %110 : vector<8x64xf32>
    %112 = arith.truncf %104 : vector<8x32xf32> to vector<8x32xbf16>
    %c1584 = arith.constant 1584 : index
    %c0_53 = arith.constant 0 : index
    %113 = vector.load %arg1[%c1584, %c0_53] : memref<4624x512xbf16, #tpu.memory_space<vmem>>, vector<32x64xbf16>
    %cst_54 = arith.constant dense<0.000000e+00> : vector<8x64xf32>
    %114 = tpu.matmul %112, %113, %cst_54 {dimension_numbers = #tpu.dot_dimension_numbers<[1], [0], [0], [1], [0, 0, 1, 1], [], []>} : vector<8x32xbf16>, vector<32x64xbf16>, vector<8x64xf32> -> vector<8x64xf32>
    %115 = arith.addf %111, %114 : vector<8x64xf32>
    %c12 = arith.constant 12 : index
    %c0_55 = arith.constant 0 : index
    %116 = vector.load %arg2[%c12, %c0_55] : memref<32x512xf32, #tpu.memory_space<vmem>>, vector<1x64xf32>
    %117 = vector.broadcast %116 : vector<1x64xf32> to vector<8x64xf32>
    %118 = arith.addf %115, %117 : vector<8x64xf32>
    %cst_56 = arith.constant 0.000000e+00 : f32
    %119 = vector.broadcast %cst_56 : f32 to vector<8x64xf32>
    %120 = arith.maximumf %118, %119 : vector<8x64xf32>
    %121 = arith.truncf %120 : vector<8x64xf32> to vector<8x64xbf16>
    %c1616 = arith.constant 1616 : index
    %c0_57 = arith.constant 0 : index
    %122 = vector.load %arg1[%c1616, %c0_57] : memref<4624x512xbf16, #tpu.memory_space<vmem>>, vector<64x128xbf16>
    %cst_58 = arith.constant dense<0.000000e+00> : vector<8x128xf32>
    %123 = tpu.matmul %121, %122, %cst_58 {dimension_numbers = #tpu.dot_dimension_numbers<[1], [0], [0], [1], [0, 0, 1, 1], [], []>} : vector<8x64xbf16>, vector<64x128xbf16>, vector<8x128xf32> -> vector<8x128xf32>
    %c13 = arith.constant 13 : index
    %c0_59 = arith.constant 0 : index
    %124 = vector.load %arg2[%c13, %c0_59] : memref<32x512xf32, #tpu.memory_space<vmem>>, vector<1x128xf32>
    %125 = vector.broadcast %124 : vector<1x128xf32> to vector<8x128xf32>
    %126 = arith.addf %123, %125 : vector<8x128xf32>
    %cst_60 = arith.constant 0.000000e+00 : f32
    %127 = vector.broadcast %cst_60 : f32 to vector<8x128xf32>
    %128 = arith.maximumf %126, %127 : vector<8x128xf32>
    %129 = arith.truncf %128 : vector<8x128xf32> to vector<8x128xbf16>
    %c1680 = arith.constant 1680 : index
    %c0_61 = arith.constant 0 : index
    %130 = vector.load %arg1[%c1680, %c0_61] : memref<4624x512xbf16, #tpu.memory_space<vmem>>, vector<128x256xbf16>
    %cst_62 = arith.constant dense<0.000000e+00> : vector<8x256xf32>
    %131 = tpu.matmul %129, %130, %cst_62 {dimension_numbers = #tpu.dot_dimension_numbers<[1], [0], [0], [1], [0, 0, 1, 1], [], []>} : vector<8x128xbf16>, vector<128x256xbf16>, vector<8x256xf32> -> vector<8x256xf32>
    %c14 = arith.constant 14 : index
    %c0_63 = arith.constant 0 : index
    %132 = vector.load %arg2[%c14, %c0_63] : memref<32x512xf32, #tpu.memory_space<vmem>>, vector<1x256xf32>
    %133 = vector.broadcast %132 : vector<1x256xf32> to vector<8x256xf32>
    %134 = arith.addf %131, %133 : vector<8x256xf32>
    %cst_64 = arith.constant 0.000000e+00 : f32
    %135 = vector.broadcast %cst_64 : f32 to vector<8x256xf32>
    %136 = arith.maximumf %134, %135 : vector<8x256xf32>
    %137 = arith.truncf %136 : vector<8x256xf32> to vector<8x256xbf16>
    %c1808 = arith.constant 1808 : index
    %c0_65 = arith.constant 0 : index
    %138 = vector.load %arg1[%c1808, %c0_65] : memref<4624x512xbf16, #tpu.memory_space<vmem>>, vector<256x512xbf16>
    %cst_66 = arith.constant dense<0.000000e+00> : vector<8x512xf32>
    %139 = tpu.matmul %137, %138, %cst_66 {dimension_numbers = #tpu.dot_dimension_numbers<[1], [0], [0], [1], [0, 0, 1, 1], [], []>} : vector<8x256xbf16>, vector<256x512xbf16>, vector<8x512xf32> -> vector<8x512xf32>
    %c15 = arith.constant 15 : index
    %c0_67 = arith.constant 0 : index
    %140 = vector.load %arg2[%c15, %c0_67] : memref<32x512xf32, #tpu.memory_space<vmem>>, vector<1x512xf32>
    %141 = vector.broadcast %140 : vector<1x512xf32> to vector<8x512xf32>
    %142 = arith.addf %139, %141 : vector<8x512xf32>
    %143 = arith.truncf %142 : vector<8x512xf32> to vector<8x512xbf16>
    %c2064 = arith.constant 2064 : index
    %c0_68 = arith.constant 0 : index
    %144 = vector.load %arg1[%c2064, %c0_68] : memref<4624x512xbf16, #tpu.memory_space<vmem>>, vector<512x256xbf16>
    %cst_69 = arith.constant dense<0.000000e+00> : vector<8x256xf32>
    %145 = tpu.matmul %143, %144, %cst_69 {dimension_numbers = #tpu.dot_dimension_numbers<[1], [0], [0], [1], [0, 0, 1, 1], [], []>} : vector<8x512xbf16>, vector<512x256xbf16>, vector<8x256xf32> -> vector<8x256xf32>
    %c16_70 = arith.constant 16 : index
    %c0_71 = arith.constant 0 : index
    %146 = vector.load %arg2[%c16_70, %c0_71] : memref<32x512xf32, #tpu.memory_space<vmem>>, vector<1x256xf32>
    %147 = vector.broadcast %146 : vector<1x256xf32> to vector<8x256xf32>
    %148 = arith.addf %145, %147 : vector<8x256xf32>
    %cst_72 = arith.constant 0.000000e+00 : f32
    %149 = vector.broadcast %cst_72 : f32 to vector<8x256xf32>
    %150 = arith.maximumf %148, %149 : vector<8x256xf32>
    %151 = arith.truncf %150 : vector<8x256xf32> to vector<8x256xbf16>
    %c2576 = arith.constant 2576 : index
    %c0_73 = arith.constant 0 : index
    %152 = vector.load %arg1[%c2576, %c0_73] : memref<4624x512xbf16, #tpu.memory_space<vmem>>, vector<256x128xbf16>
    %cst_74 = arith.constant dense<0.000000e+00> : vector<8x128xf32>
    %153 = tpu.matmul %151, %152, %cst_74 {dimension_numbers = #tpu.dot_dimension_numbers<[1], [0], [0], [1], [0, 0, 1, 1], [], []>} : vector<8x256xbf16>, vector<256x128xbf16>, vector<8x128xf32> -> vector<8x128xf32>
    %c17 = arith.constant 17 : index
    %c0_75 = arith.constant 0 : index
    %154 = vector.load %arg2[%c17, %c0_75] : memref<32x512xf32, #tpu.memory_space<vmem>>, vector<1x128xf32>
    %155 = vector.broadcast %154 : vector<1x128xf32> to vector<8x128xf32>
    %156 = arith.addf %153, %155 : vector<8x128xf32>
    %cst_76 = arith.constant 0.000000e+00 : f32
    %157 = vector.broadcast %cst_76 : f32 to vector<8x128xf32>
    %158 = arith.maximumf %156, %157 : vector<8x128xf32>
    %159 = arith.truncf %158 : vector<8x128xf32> to vector<8x128xbf16>
    %c2832 = arith.constant 2832 : index
    %c0_77 = arith.constant 0 : index
    %160 = vector.load %arg1[%c2832, %c0_77] : memref<4624x512xbf16, #tpu.memory_space<vmem>>, vector<128x64xbf16>
    %cst_78 = arith.constant dense<0.000000e+00> : vector<8x64xf32>
    %161 = tpu.matmul %159, %160, %cst_78 {dimension_numbers = #tpu.dot_dimension_numbers<[1], [0], [0], [1], [0, 0, 1, 1], [], []>} : vector<8x128xbf16>, vector<128x64xbf16>, vector<8x64xf32> -> vector<8x64xf32>
    %c18 = arith.constant 18 : index
    %c0_79 = arith.constant 0 : index
    %162 = vector.load %arg2[%c18, %c0_79] : memref<32x512xf32, #tpu.memory_space<vmem>>, vector<1x64xf32>
    %163 = vector.broadcast %162 : vector<1x64xf32> to vector<8x64xf32>
    %164 = arith.addf %161, %163 : vector<8x64xf32>
    %cst_80 = arith.constant 0.000000e+00 : f32
    %165 = vector.broadcast %cst_80 : f32 to vector<8x64xf32>
    %166 = arith.maximumf %164, %165 : vector<8x64xf32>
    %167 = arith.truncf %166 : vector<8x64xf32> to vector<8x64xbf16>
    %c2960 = arith.constant 2960 : index
    %c0_81 = arith.constant 0 : index
    %168 = vector.load %arg1[%c2960, %c0_81] : memref<4624x512xbf16, #tpu.memory_space<vmem>>, vector<64x32xbf16>
    %cst_82 = arith.constant dense<0.000000e+00> : vector<8x32xf32>
    %169 = tpu.matmul %167, %168, %cst_82 {dimension_numbers = #tpu.dot_dimension_numbers<[1], [0], [0], [1], [0, 0, 1, 1], [], []>} : vector<8x64xbf16>, vector<64x32xbf16>, vector<8x32xf32> -> vector<8x32xf32>
    %c19 = arith.constant 19 : index
    %c0_83 = arith.constant 0 : index
    %170 = vector.load %arg2[%c19, %c0_83] : memref<32x512xf32, #tpu.memory_space<vmem>>, vector<1x32xf32>
    %171 = vector.broadcast %170 : vector<1x32xf32> to vector<8x32xf32>
    %172 = arith.addf %169, %171 : vector<8x32xf32>
    %cst_84 = arith.constant 0.000000e+00 : f32
    %173 = vector.broadcast %cst_84 : f32 to vector<8x32xf32>
    %174 = arith.maximumf %172, %173 : vector<8x32xf32>
    %175 = arith.truncf %174 : vector<8x32xf32> to vector<8x32xbf16>
    %c3024 = arith.constant 3024 : index
    %c0_85 = arith.constant 0 : index
    %176 = vector.load %arg1[%c3024, %c0_85] : memref<4624x512xbf16, #tpu.memory_space<vmem>>, vector<32x21xbf16>
    %cst_86 = arith.constant dense<0.000000e+00> : vector<8x21xf32>
    %177 = tpu.matmul %175, %176, %cst_86 {dimension_numbers = #tpu.dot_dimension_numbers<[1], [0], [0], [1], [0, 0, 1, 1], [], []>} : vector<8x32xbf16>, vector<32x21xbf16>, vector<8x21xf32> -> vector<8x21xf32>
    %c20 = arith.constant 20 : index
    %c0_87 = arith.constant 0 : index
    %178 = vector.load %arg2[%c20, %c0_87] : memref<32x512xf32, #tpu.memory_space<vmem>>, vector<1x21xf32>
    %179 = vector.broadcast %178 : vector<1x21xf32> to vector<8x21xf32>
    %180 = arith.addf %177, %179 : vector<8x21xf32>
    %cst_88 = arith.constant 0.000000e+00 : f32
    %181 = vector.broadcast %cst_88 : f32 to vector<8x21xf32>
    %182 = arith.maximumf %180, %181 : vector<8x21xf32>
    %183 = arith.truncf %3 : vector<8x2xf32> to vector<8x2xbf16>
    %c3056 = arith.constant 3056 : index
    %c0_89 = arith.constant 0 : index
    %184 = vector.load %arg1[%c3056, %c0_89] : memref<4624x512xbf16, #tpu.memory_space<vmem>>, vector<2x160xbf16>
    %cst_90 = arith.constant dense<0.000000e+00> : vector<8x160xf32>
    %185 = tpu.matmul %183, %184, %cst_90 {dimension_numbers = #tpu.dot_dimension_numbers<[1], [0], [0], [1], [0, 0, 1, 1], [], []>} : vector<8x2xbf16>, vector<2x160xbf16>, vector<8x160xf32> -> vector<8x160xf32>
    %c21 = arith.constant 21 : index
    %c0_91 = arith.constant 0 : index
    %186 = vector.load %arg2[%c21, %c0_91] : memref<32x512xf32, #tpu.memory_space<vmem>>, vector<1x160xf32>
    %187 = vector.broadcast %186 : vector<1x160xf32> to vector<8x160xf32>
    %188 = arith.addf %185, %187 : vector<8x160xf32>
    %189 = vector.extract_strided_slice %188 {offsets = [0, 0], sizes = [8, 128], strides = [1, 1]} : vector<8x160xf32> to vector<8x128xf32>
    %190 = vector.extract_strided_slice %188 {offsets = [0, 128], sizes = [8, 32], strides = [1, 1]} : vector<8x160xf32> to vector<8x32xf32>
    %191 = arith.truncf %182 : vector<8x21xf32> to vector<8x21xbf16>
    %c3072 = arith.constant 3072 : index
    %c0_92 = arith.constant 0 : index
    %192 = vector.load %arg1[%c3072, %c0_92] : memref<4624x512xbf16, #tpu.memory_space<vmem>>, vector<21x160xbf16>
    %cst_93 = arith.constant dense<0.000000e+00> : vector<8x160xf32>
    %193 = tpu.matmul %191, %192, %cst_93 {dimension_numbers = #tpu.dot_dimension_numbers<[1], [0], [0], [1], [0, 0, 1, 1], [], []>} : vector<8x21xbf16>, vector<21x160xbf16>, vector<8x160xf32> -> vector<8x160xf32>
    %c22 = arith.constant 22 : index
    %c0_94 = arith.constant 0 : index
    %194 = vector.load %arg2[%c22, %c0_94] : memref<32x512xf32, #tpu.memory_space<vmem>>, vector<1x160xf32>
    %195 = vector.broadcast %194 : vector<1x160xf32> to vector<8x160xf32>
    %196 = arith.addf %193, %195 : vector<8x160xf32>
    %197 = vector.extract_strided_slice %196 {offsets = [0, 0], sizes = [8, 128], strides = [1, 1]} : vector<8x160xf32> to vector<8x128xf32>
    %198 = vector.extract_strided_slice %196 {offsets = [0, 128], sizes = [8, 32], strides = [1, 1]} : vector<8x160xf32> to vector<8x32xf32>
    %199 = arith.truncf %190 : vector<8x32xf32> to vector<8x32xbf16>
    %c3104 = arith.constant 3104 : index
    %c0_95 = arith.constant 0 : index
    %200 = vector.load %arg1[%c3104, %c0_95] : memref<4624x512xbf16, #tpu.memory_space<vmem>>, vector<32x64xbf16>
    %cst_96 = arith.constant dense<0.000000e+00> : vector<8x64xf32>
    %201 = tpu.matmul %199, %200, %cst_96 {dimension_numbers = #tpu.dot_dimension_numbers<[1], [0], [0], [1], [0, 0, 1, 1], [], []>} : vector<8x32xbf16>, vector<32x64xbf16>, vector<8x64xf32> -> vector<8x64xf32>
    %202 = arith.truncf %198 : vector<8x32xf32> to vector<8x32xbf16>
    %c3136 = arith.constant 3136 : index
    %c0_97 = arith.constant 0 : index
    %203 = vector.load %arg1[%c3136, %c0_97] : memref<4624x512xbf16, #tpu.memory_space<vmem>>, vector<32x64xbf16>
    %cst_98 = arith.constant dense<0.000000e+00> : vector<8x64xf32>
    %204 = tpu.matmul %202, %203, %cst_98 {dimension_numbers = #tpu.dot_dimension_numbers<[1], [0], [0], [1], [0, 0, 1, 1], [], []>} : vector<8x32xbf16>, vector<32x64xbf16>, vector<8x64xf32> -> vector<8x64xf32>
    %205 = arith.addf %201, %204 : vector<8x64xf32>
    %c23 = arith.constant 23 : index
    %c0_99 = arith.constant 0 : index
    %206 = vector.load %arg2[%c23, %c0_99] : memref<32x512xf32, #tpu.memory_space<vmem>>, vector<1x64xf32>
    %207 = vector.broadcast %206 : vector<1x64xf32> to vector<8x64xf32>
    %208 = arith.addf %205, %207 : vector<8x64xf32>
    %cst_100 = arith.constant 0.000000e+00 : f32
    %209 = vector.broadcast %cst_100 : f32 to vector<8x64xf32>
    %210 = arith.maximumf %208, %209 : vector<8x64xf32>
    %211 = arith.truncf %210 : vector<8x64xf32> to vector<8x64xbf16>
    %c3168 = arith.constant 3168 : index
    %c0_101 = arith.constant 0 : index
    %212 = vector.load %arg1[%c3168, %c0_101] : memref<4624x512xbf16, #tpu.memory_space<vmem>>, vector<64x128xbf16>
    %cst_102 = arith.constant dense<0.000000e+00> : vector<8x128xf32>
    %213 = tpu.matmul %211, %212, %cst_102 {dimension_numbers = #tpu.dot_dimension_numbers<[1], [0], [0], [1], [0, 0, 1, 1], [], []>} : vector<8x64xbf16>, vector<64x128xbf16>, vector<8x128xf32> -> vector<8x128xf32>
    %c24 = arith.constant 24 : index
    %c0_103 = arith.constant 0 : index
    %214 = vector.load %arg2[%c24, %c0_103] : memref<32x512xf32, #tpu.memory_space<vmem>>, vector<1x128xf32>
    %215 = vector.broadcast %214 : vector<1x128xf32> to vector<8x128xf32>
    %216 = arith.addf %213, %215 : vector<8x128xf32>
    %cst_104 = arith.constant 0.000000e+00 : f32
    %217 = vector.broadcast %cst_104 : f32 to vector<8x128xf32>
    %218 = arith.maximumf %216, %217 : vector<8x128xf32>
    %219 = arith.truncf %218 : vector<8x128xf32> to vector<8x128xbf16>
    %c3232 = arith.constant 3232 : index
    %c0_105 = arith.constant 0 : index
    %220 = vector.load %arg1[%c3232, %c0_105] : memref<4624x512xbf16, #tpu.memory_space<vmem>>, vector<128x256xbf16>
    %cst_106 = arith.constant dense<0.000000e+00> : vector<8x256xf32>
    %221 = tpu.matmul %219, %220, %cst_106 {dimension_numbers = #tpu.dot_dimension_numbers<[1], [0], [0], [1], [0, 0, 1, 1], [], []>} : vector<8x128xbf16>, vector<128x256xbf16>, vector<8x256xf32> -> vector<8x256xf32>
    %c25 = arith.constant 25 : index
    %c0_107 = arith.constant 0 : index
    %222 = vector.load %arg2[%c25, %c0_107] : memref<32x512xf32, #tpu.memory_space<vmem>>, vector<1x256xf32>
    %223 = vector.broadcast %222 : vector<1x256xf32> to vector<8x256xf32>
    %224 = arith.addf %221, %223 : vector<8x256xf32>
    %cst_108 = arith.constant 0.000000e+00 : f32
    %225 = vector.broadcast %cst_108 : f32 to vector<8x256xf32>
    %226 = arith.maximumf %224, %225 : vector<8x256xf32>
    %227 = arith.truncf %226 : vector<8x256xf32> to vector<8x256xbf16>
    %c3360 = arith.constant 3360 : index
    %c0_109 = arith.constant 0 : index
    %228 = vector.load %arg1[%c3360, %c0_109] : memref<4624x512xbf16, #tpu.memory_space<vmem>>, vector<256x512xbf16>
    %cst_110 = arith.constant dense<0.000000e+00> : vector<8x512xf32>
    %229 = tpu.matmul %227, %228, %cst_110 {dimension_numbers = #tpu.dot_dimension_numbers<[1], [0], [0], [1], [0, 0, 1, 1], [], []>} : vector<8x256xbf16>, vector<256x512xbf16>, vector<8x512xf32> -> vector<8x512xf32>
    %c26 = arith.constant 26 : index
    %c0_111 = arith.constant 0 : index
    %230 = vector.load %arg2[%c26, %c0_111] : memref<32x512xf32, #tpu.memory_space<vmem>>, vector<1x512xf32>
    %231 = vector.broadcast %230 : vector<1x512xf32> to vector<8x512xf32>
    %232 = arith.addf %229, %231 : vector<8x512xf32>
    %cst_112 = arith.constant 0.000000e+00 : f32
    %233 = vector.broadcast %cst_112 : f32 to vector<8x512xf32>
    %234 = arith.maximumf %232, %233 : vector<8x512xf32>
    %235 = arith.truncf %234 : vector<8x512xf32> to vector<8x512xbf16>
    %c3616 = arith.constant 3616 : index
    %c0_113 = arith.constant 0 : index
    %236 = vector.load %arg1[%c3616, %c0_113] : memref<4624x512xbf16, #tpu.memory_space<vmem>>, vector<512x256xbf16>
    %cst_114 = arith.constant dense<0.000000e+00> : vector<8x256xf32>
    %237 = tpu.matmul %235, %236, %cst_114 {dimension_numbers = #tpu.dot_dimension_numbers<[1], [0], [0], [1], [0, 0, 1, 1], [], []>} : vector<8x512xbf16>, vector<512x256xbf16>, vector<8x256xf32> -> vector<8x256xf32>
    %c27 = arith.constant 27 : index
    %c0_115 = arith.constant 0 : index
    %238 = vector.load %arg2[%c27, %c0_115] : memref<32x512xf32, #tpu.memory_space<vmem>>, vector<1x256xf32>
    %239 = vector.broadcast %238 : vector<1x256xf32> to vector<8x256xf32>
    %240 = arith.addf %237, %239 : vector<8x256xf32>
    %cst_116 = arith.constant 0.000000e+00 : f32
    %241 = vector.broadcast %cst_116 : f32 to vector<8x256xf32>
    %242 = arith.maximumf %240, %241 : vector<8x256xf32>
    %243 = arith.truncf %242 : vector<8x256xf32> to vector<8x256xbf16>
    %c4128 = arith.constant 4128 : index
    %c0_117 = arith.constant 0 : index
    %244 = vector.load %arg1[%c4128, %c0_117] : memref<4624x512xbf16, #tpu.memory_space<vmem>>, vector<256x128xbf16>
    %cst_118 = arith.constant dense<0.000000e+00> : vector<8x128xf32>
    %245 = tpu.matmul %243, %244, %cst_118 {dimension_numbers = #tpu.dot_dimension_numbers<[1], [0], [0], [1], [0, 0, 1, 1], [], []>} : vector<8x256xbf16>, vector<256x128xbf16>, vector<8x128xf32> -> vector<8x128xf32>
    %c28 = arith.constant 28 : index
    %c0_119 = arith.constant 0 : index
    %246 = vector.load %arg2[%c28, %c0_119] : memref<32x512xf32, #tpu.memory_space<vmem>>, vector<1x128xf32>
    %247 = vector.broadcast %246 : vector<1x128xf32> to vector<8x128xf32>
    %248 = arith.addf %245, %247 : vector<8x128xf32>
    %cst_120 = arith.constant 0.000000e+00 : f32
    %249 = vector.broadcast %cst_120 : f32 to vector<8x128xf32>
    %250 = arith.maximumf %248, %249 : vector<8x128xf32>
    %251 = arith.truncf %250 : vector<8x128xf32> to vector<8x128xbf16>
    %c4384 = arith.constant 4384 : index
    %c0_121 = arith.constant 0 : index
    %252 = vector.load %arg1[%c4384, %c0_121] : memref<4624x512xbf16, #tpu.memory_space<vmem>>, vector<128x64xbf16>
    %cst_122 = arith.constant dense<0.000000e+00> : vector<8x64xf32>
    %253 = tpu.matmul %251, %252, %cst_122 {dimension_numbers = #tpu.dot_dimension_numbers<[1], [0], [0], [1], [0, 0, 1, 1], [], []>} : vector<8x128xbf16>, vector<128x64xbf16>, vector<8x64xf32> -> vector<8x64xf32>
    %c29 = arith.constant 29 : index
    %c0_123 = arith.constant 0 : index
    %254 = vector.load %arg2[%c29, %c0_123] : memref<32x512xf32, #tpu.memory_space<vmem>>, vector<1x64xf32>
    %255 = vector.broadcast %254 : vector<1x64xf32> to vector<8x64xf32>
    %256 = arith.addf %253, %255 : vector<8x64xf32>
    %cst_124 = arith.constant 0.000000e+00 : f32
    %257 = vector.broadcast %cst_124 : f32 to vector<8x64xf32>
    %258 = arith.maximumf %256, %257 : vector<8x64xf32>
    %259 = arith.truncf %258 : vector<8x64xf32> to vector<8x64xbf16>
    %c4512 = arith.constant 4512 : index
    %c0_125 = arith.constant 0 : index
    %260 = vector.load %arg1[%c4512, %c0_125] : memref<4624x512xbf16, #tpu.memory_space<vmem>>, vector<64x32xbf16>
    %cst_126 = arith.constant dense<0.000000e+00> : vector<8x32xf32>
    %261 = tpu.matmul %259, %260, %cst_126 {dimension_numbers = #tpu.dot_dimension_numbers<[1], [0], [0], [1], [0, 0, 1, 1], [], []>} : vector<8x64xbf16>, vector<64x32xbf16>, vector<8x32xf32> -> vector<8x32xf32>
    %c30 = arith.constant 30 : index
    %c0_127 = arith.constant 0 : index
    %262 = vector.load %arg2[%c30, %c0_127] : memref<32x512xf32, #tpu.memory_space<vmem>>, vector<1x32xf32>
    %263 = vector.broadcast %262 : vector<1x32xf32> to vector<8x32xf32>
    %264 = arith.addf %261, %263 : vector<8x32xf32>
    %cst_128 = arith.constant 0.000000e+00 : f32
    %265 = vector.broadcast %cst_128 : f32 to vector<8x32xf32>
    %266 = arith.maximumf %264, %265 : vector<8x32xf32>
    %267 = arith.truncf %266 : vector<8x32xf32> to vector<8x32xbf16>
    %c4576 = arith.constant 4576 : index
    %c0_129 = arith.constant 0 : index
    %268 = vector.load %arg1[%c4576, %c0_129] : memref<4624x512xbf16, #tpu.memory_space<vmem>>, vector<32x8xbf16>
    %cst_130 = arith.constant dense<0.000000e+00> : vector<8x8xf32>
    %269 = tpu.matmul %267, %268, %cst_130 {dimension_numbers = #tpu.dot_dimension_numbers<[1], [0], [0], [1], [0, 0, 1, 1], [], []>} : vector<8x32xbf16>, vector<32x8xbf16>, vector<8x8xf32> -> vector<8x8xf32>
    %c31 = arith.constant 31 : index
    %c0_131 = arith.constant 0 : index
    %270 = vector.load %arg2[%c31, %c0_131] : memref<32x512xf32, #tpu.memory_space<vmem>>, vector<1x8xf32>
    %271 = vector.broadcast %270 : vector<1x8xf32> to vector<8x8xf32>
    %272 = arith.addf %269, %271 : vector<8x8xf32>
    %cst_132 = arith.constant dense<0xFF800000> : vector<8xf32>
    %273 = vector.multi_reduction <maximumf>, %272, %cst_132 [1] : vector<8x8xf32> to vector<8xf32>
    %274 = vector.shape_cast %273 : vector<8xf32> to vector<8x1xf32>
    %275 = vector.broadcast %274 : vector<8x1xf32> to vector<8x8xf32>
    %276 = arith.subf %272, %275 : vector<8x8xf32>
    %277 = math.exp %276 : vector<8x8xf32>
    %cst_133 = arith.constant dense<0.000000e+00> : vector<8xf32>
    %278 = vector.multi_reduction <add>, %277, %cst_133 [1] : vector<8x8xf32> to vector<8xf32>
    %279 = vector.shape_cast %278 : vector<8xf32> to vector<8x1xf32>
    %280 = vector.broadcast %279 : vector<8x1xf32> to vector<8x8xf32>
    %281 = arith.divf %277, %280 : vector<8x8xf32>
    %282 = arith.truncf %281 : vector<8x8xf32> to vector<8x8xbf16>
    %c4608 = arith.constant 4608 : index
    %c0_134 = arith.constant 0 : index
    %283 = vector.load %arg1[%c4608, %c0_134] : memref<4624x512xbf16, #tpu.memory_space<vmem>>, vector<8x128xbf16>
    %cst_135 = arith.constant dense<0.000000e+00> : vector<8x128xf32>
    %284 = tpu.matmul %282, %283, %cst_135 {dimension_numbers = #tpu.dot_dimension_numbers<[1], [0], [0], [1], [0, 0, 1, 1], [], []>} : vector<8x8xbf16>, vector<8x128xbf16>, vector<8x128xf32> -> vector<8x128xf32>
    %285 = arith.addf %197, %284 : vector<8x128xf32>
    %286 = arith.mulf %189, %285 : vector<8x128xf32>
    %cst_136 = arith.constant dense<0.000000e+00> : vector<8xf32>
    %287 = vector.multi_reduction <add>, %286, %cst_136 [1] : vector<8x128xf32> to vector<8xf32>
    %288 = vector.shape_cast %287 : vector<8xf32> to vector<8x1xf32>
    %c0_137 = arith.constant 0 : index
    %c0_138 = arith.constant 0 : index
    %289 = vector.load %arg3[%c0_137, %c0_138] : memref<8x1xf32, #tpu.memory_space<vmem>>, vector<8x1xf32>
    tpu.vector_store %arg3[%c0_137, %c0_138], %288 {strides = array<i32>} : memref<8x1xf32, #tpu.memory_space<vmem>>, vector<8x1xf32>,
    return
  }
}

</mosaic_0001>

<bundles_post_ra>
// kernel: fwd.1
= control target key start
LH: loop header
LB: loop body
LE: loop exit
PB: predicated region body
PF: predicated region fallthrough
CT: control target
= control target key end

     0   :  { %8 = vsyncpa [#allocation3], 0  ;;  %s7813_s0 = inlined_call_operand.vmem [shape: f32[8,26], index: 0, kind: input, shape index: {}]   ;;  %s7814_s1 = inlined_call_operand.hbm [shape: bf16[4624,512], index: 1, kind: input, shape index: {}]   ;;  %s7815_s2 = inlined_call_operand.hbm [shape: f32[32,512], index: 2, kind: input, shape index: {}]   ;;  %s7816_s3 = inlined_call_operand.vmem [shape: f32[8,1], index: 3, kind: output, shape index: {}]  }
   0x1   :  { %9 = vsyncpa [#allocation5], 0  ;;  %s7520_s12 = smov [#allocation2]   ;;  %s7472_s16 = scalar_lea.hbm %s7814_s1, 147968 }
   0x2   :  { %s17_s13 = sshll.u32 %s7520_s12, 4  ;;  %p7473_p0 = scmp.ne.s32.totalorder %s7814_s1, %s7472_s16  ;;  %s18_s13 = int_to_ptr.vmem [resolvable:$true] %s17_s13 }
   0x3   :  { %p7476_p1 = scmp.lt.u32.totalorder %s7472_s16, %s7814_s1 }
   0x5   :  { %p7478_p2 = pnand %p7476_p1, %p7473_p0 }
   0x7   :  { %7481 = shalt.err (!%p7478_p2)
}
   0x8   :  { %s7482_s21 = scalar_lea.vmem %s18_s13, 147968  ;;  %p7487_p4 = scmp.lt.s32.totalorder %s18_s13, %s18_s13 }
   0x9   :  { %p7483_p3 = scmp.ne.s32.totalorder %s18_s13, %s7482_s21  ;;  %p7488_p5 = scmp.lt.s32.totalorder %s7482_s21, %s7482_s21 }
   0xb   :  { %p7489_p6 = por %p7488_p5, %p7487_p4 }
   0xd   :  { %p7490_p7 = pnand %p7489_p6, %p7483_p3 }
   0xf   :  { %7493 = shalt.err (!%p7490_p7)
}
  0x10   :  { %s7521_s22 = smov 256   ;;  %s7522_s23 = smov 16  }
  0x11   :  { %23 = dma.hbm_to_vmem [thread:$0]  %s7814_s1, 147968, %s18_s13, [#allocation3], %s7521_s22, %s7521_s22, %s7522_s23  }
  0x12   :  { %s7523_s26 = smov [#allocation4]   ;;  %s7494_s30 = scalar_lea.hbm %s7815_s2, 2048 }
  0x13   :  { %s29_s27 = sshll.u32 %s7523_s26, 4  ;;  %p7495_p8 = scmp.ne.s32.totalorder %s7815_s2, %s7494_s30  ;;  %s30_s27 = int_to_ptr.vmem [resolvable:$true] %s29_s27 }
  0x14   :  { %p7498_p9 = scmp.lt.u32.totalorder %s7494_s30, %s7815_s2 }
  0x16   :  { %p7500_p10 = pnand %p7498_p9, %p7495_p8 }
  0x18   :  { %7503 = shalt.err (!%p7500_p10)
}
  0x19   :  { %s7504_s8 = scalar_lea.vmem %s30_s27, 2048  ;;  %p7509_p12 = scmp.lt.s32.totalorder %s30_s27, %s30_s27 }
  0x1a   :  { %p7505_p11 = scmp.ne.s32.totalorder %s30_s27, %s7504_s8  ;;  %p7510_p13 = scmp.lt.s32.totalorder %s7504_s8, %s7504_s8 }
  0x1c   :  { %p7511_p0 = por %p7510_p13, %p7509_p12 }
  0x1e   :  { %p7512_p1 = pnand %p7511_p0, %p7505_p11 }
  0x20   :  { %7515 = shalt.err (!%p7512_p1)
}
  0x21   :  { %s7524_s1 = smov 512   ;;  %s7525_s9 = smov 32  }
  0x22   :  { %35 = dma.hbm_to_vmem [thread:$0]  %s7815_s2, 2048, %s30_s27, [#allocation5], %s7524_s1, %s7524_s1, %s7525_s9  }
  0x23   :  { %7516 = dma.done.wait [#allocation3], 147968  }
  0x24   :  { %7517 = vsyncadd [#allocation3], 4294819328 }
  0x25   :  { %7518 = dma.done.wait [#allocation5], 2048  }
  0x26   :  { %7519 = vsyncadd [#allocation5], 4294965248  ;;  %v7526_v0 = vmov 0.0   ;;  %vm7527_vm0 = vmmov 0   ;;  %v6693_v1 = vld [vmem:[#allocation2] ss:$16 sps:$4 sm:$0xff]  }
  0x27   :  { %6434 = vmatprep.subr.bf16.mxu0 %v7526_v0  ;;  %6436 = vmatprep.mubr.msk.bf16.mxu0 %vm7527_vm0, %v7526_v0  ;;  %v43_v2 = vld [vmem:[%s7813_s0] sm:$0xff]  ;;  %vm54_vm1 = vcmask 130048   ;;  %s7528_s2 = smov 112   ;;  %vm117_vm2 = vcmask 261120   ;;  %s7529_s0 = smov 96   ;;  %vm196_vm3 = vcmask 523264  }
  0x28   :  { %6435 = vmatpush3.bf16.msra.mxu0 %v6693_v1  ;;  %v7583_v3 = vpack.c.bf16 %v43_v2, %v43_v2  ;;  %v6694_v4 = vld [vmem:[#allocation2 + $0x20] ss:$16 sps:$4 sm:$0xff]   ;;  %v6700_v19 = vld [vmem:[#allocation2 + $0xe4] ss:$16 sps:$4 sm:$0xff]   ;;  %v7530_v43 = vmov 0   ;;  %vm1812_vm4 = vcmask 1043456  }
  0x29   :  { %6440 = vmatprep.subr.bf16.mxu0 %v7526_v0  ;;  %v6695_v5 = vld [vmem:[#allocation2 + $0x40] ss:$16 sps:$4 sm:$0xff]   ;;  %v6703_v21 = vld [vmem:[#allocation2 + $0x104] ss:$16 sps:$4 sm:$0xff]   ;;  %351 = vmatprep.subr.bf16.mxu1 %v6700_v19  ;;  %v6729_v46 = vld [vmem:[#allocation2 + $0x1ec] ss:$16 sps:$4 sm:$0xff]  }
  0x2a   :  { %1807 = vrot.lane.b32.xlu1 %v7583_v3, %s7528_s2  ;;  %v47_v6 = vld [vmem:[#allocation4] ss:$0 sm:$0xff]  ;;  %v6706_v23 = vld [vmem:[#allocation2 + $0x124] ss:$16 sps:$4 sm:$0xff]   ;;  %v104_v32 = vld [vmem:[#allocation4 + $0x1] ss:$0 sm:$0xff]  ;;  %383 = vmatprep.mubr.bf16.mxu1 %v7530_v43 }
  0x2b   :  { %6437 = vmatmul.mubr.msk.bf16.vlgmr.msra.gmra.mrb[0].mxu0 %vm54_vm1, %v7583_v3  ;;  %v6696_v11 = vld [vmem:[#allocation2 + $0x60] ss:$16 sps:$4 sm:$0xff]   ;;  %v6709_v25 = vld [vmem:[#allocation2 + $0x144] ss:$16 sps:$4 sm:$0xff]   ;;  %vm1792_vm5 = vcmask 64512   ;;  %vm3743_vm6 = vcmask 1040384  }
  0x2c   :  { %6441 = vmatpush3.bf16.msra.mxu0 %v6694_v4  ;;  %6444 = vmatprep.mubr.msk.bf16.mxu0 %vm7527_vm0, %v7526_v0  ;;  %v6697_v16 = vld [vmem:[#allocation2 + $0x80] ss:$16 sps:$4 sm:$0xff]   ;;  %v6712_v27 = vld [vmem:[#allocation2 + $0x164] ss:$16 sps:$4 sm:$0xff]   ;;  %s7531_s14 = smov 104   ;;  %vm3739_vm7 = vcmask 15360  }
  0x2d   :  { %6442 = vmatprep.subr.bf16.mxu0 %v7526_v0  ;;  %v6698_v17 = vld [vmem:[#allocation2 + $0xa0] ss:$16 sps:$4 sm:$0xff]   ;;  %v6715_v29 = vld [vmem:[#allocation2 + $0x184] ss:$16 sps:$4 sm:$0xff]   ;;  %vm3827_vm8 = vcmask 1041408   ;;  %vm3828_vm9 = vcmask 1042432  }
  0x2e   :  { %v6699_v18 = vld [vmem:[#allocation2 + $0xc0] ss:$16 sps:$4 sm:$0xff]   ;;  %v6718_v31 = vld [vmem:[#allocation2 + $0x1a4] ss:$16 sps:$4 sm:$0xff]   ;;  %vm3823_vm10 = vcmask 171008   ;;  %vm5693_vm11 = vcmask 7168  }
  0x2f   :  { %v6702_v20 = vld [vmem:[#allocation2 + $0xe0] ss:$16 sps:$4 sm:$0xff]   ;;  %v6721_v41 = vld [vmem:[#allocation2 + $0x1c4] ss:$16 sps:$4 sm:$0xff]  }
  0x30   :  { %6443 = vmatpush3.bf16.msra.mxu0 %v6695_v5  ;;  %352 = vmatpush1.bf16.msra.mxu1 %v6702_v20  ;;  %v6705_v22 = vld [vmem:[#allocation2 + $0x100] ss:$16 sps:$4 sm:$0xff]   ;;  %v6726_v45 = vld [vmem:[#allocation2 + $0x1e4] ss:$16 sps:$4 sm:$0xff]   ;;  %v6735_v20 = vld [vmem:[#allocation2 + $0x20c] ss:$16 sps:$4 sm:$0xff]  }
  0x31   :  { %6448 = vmatprep.subr.bf16.mxu0 %v7526_v0  ;;  %353 = vmatprep.subr.bf16.mxu1 %v6703_v21  ;;  %v6708_v24 = vld [vmem:[#allocation2 + $0x120] ss:$16 sps:$4 sm:$0xff]   ;;  %v6732_v47 = vld [vmem:[#allocation2 + $0x204] ss:$16 sps:$4 sm:$0xff]   ;;  %v6733_v21 = vld [vmem:[#allocation2 + $0x208] ss:$16 sps:$4 sm:$0xff]  }
  0x32   :  { %v6711_v26 = vld [vmem:[#allocation2 + $0x140] ss:$16 sps:$4 sm:$0xff]   ;;  %v6738_v49 = vld [vmem:[#allocation2 + $0x224] ss:$16 sps:$4 sm:$0xff]  }
  0x33   :  { %v6714_v28 = vld [vmem:[#allocation2 + $0x160] ss:$16 sps:$4 sm:$0xff]   ;;  %v6744_v51 = vld [vmem:[#allocation2 + $0x244] ss:$16 sps:$4 sm:$0xff]  }
  0x34   :  { %354 = vmatpush1.bf16.msra.mxu1 %v6705_v22  ;;  %v6717_v30 = vld [vmem:[#allocation2 + $0x180] ss:$16 sps:$4 sm:$0xff]   ;;  %v6750_v53 = vld [vmem:[#allocation2 + $0x264] ss:$16 sps:$4 sm:$0xff]   ;;  %v6741_v22 = vld [vmem:[#allocation2 + $0x22c] ss:$16 sps:$4 sm:$0xff]  }
  0x35   :  { %355 = vmatprep.subr.bf16.mxu1 %v6706_v23  ;;  %v6720_v40 = vld [vmem:[#allocation2 + $0x1a0] ss:$16 sps:$4 sm:$0xff]   ;;  %v6756_v55 = vld [vmem:[#allocation2 + $0x284] ss:$16 sps:$4 sm:$0xff]   ;;  %v6739_v23 = vld [vmem:[#allocation2 + $0x228] ss:$16 sps:$4 sm:$0xff]  }
  0x36   :  { %v6723_v42 = vld [vmem:[#allocation2 + $0x1c0] ss:$16 sps:$4 sm:$0xff]   ;;  %v6762_v57 = vld [vmem:[#allocation2 + $0x2a4] ss:$16 sps:$4 sm:$0xff]  }
  0x37   :  { %v6724_v44 = vld [vmem:[#allocation2 + $0x1e0] ss:$16 sps:$4 sm:$0xff]   ;;  %v6768_v59 = vld [vmem:[#allocation2 + $0x2c4] ss:$16 sps:$4 sm:$0xff]  }
  0x38   :  { %356 = vmatpush1.bf16.msra.mxu1 %v6708_v24  ;;  %v6730_v48 = vld [vmem:[#allocation2 + $0x200] ss:$16 sps:$4 sm:$0xff]   ;;  %v6774_v61 = vld [vmem:[#allocation2 + $0x2e4] ss:$16 sps:$4 sm:$0xff]   ;;  %v6747_v24 = vld [vmem:[#allocation2 + $0x24c] ss:$16 sps:$4 sm:$0xff]  }
  0x39   :  { %357 = vmatprep.subr.bf16.mxu1 %v6709_v25  ;;  %v6736_v50 = vld [vmem:[#allocation2 + $0x220] ss:$16 sps:$4 sm:$0xff]   ;;  %v6780_v63 = vld [vmem:[#allocation2 + $0x304] ss:$16 sps:$4 sm:$0xff]   ;;  %v6745_v25 = vld [vmem:[#allocation2 + $0x248] ss:$16 sps:$4 sm:$0xff]  }
  0x3a   :  { %v6742_v52 = vld [vmem:[#allocation2 + $0x240] ss:$16 sps:$4 sm:$0xff]   ;;  %v6786_v2 = vld [vmem:[#allocation2 + $0x324] ss:$16 sps:$4 sm:$0xff]  }
  0x3b   :  { %v6748_v54 = vld [vmem:[#allocation2 + $0x260] ss:$16 sps:$4 sm:$0xff]   ;;  %v6792_v5 = vld [vmem:[#allocation2 + $0x344] ss:$16 sps:$4 sm:$0xff]  }
  0x3c   :  { %358 = vmatpush1.bf16.msra.mxu1 %v6711_v26  ;;  %v6754_v56 = vld [vmem:[#allocation2 + $0x280] ss:$16 sps:$4 sm:$0xff]   ;;  %v6753_v26 = vld [vmem:[#allocation2 + $0x26c] ss:$16 sps:$4 sm:$0xff]  }
  0x3d   :  { %359 = vmatprep.subr.bf16.mxu1 %v6712_v27  ;;  %v6760_v58 = vld [vmem:[#allocation2 + $0x2a0] ss:$16 sps:$4 sm:$0xff]   ;;  %v6751_v27 = vld [vmem:[#allocation2 + $0x268] ss:$16 sps:$4 sm:$0xff]  }
  0x3e   :  { %v6766_v60 = vld [vmem:[#allocation2 + $0x2c0] ss:$16 sps:$4 sm:$0xff]  }
  0x3f   :  { %v6772_v62 = vld [vmem:[#allocation2 + $0x2e0] ss:$16 sps:$4 sm:$0xff]  }
  0x40   :  { %360 = vmatpush1.bf16.msra.mxu1 %v6714_v28  ;;  %v6778_v1 = vld [vmem:[#allocation2 + $0x300] ss:$16 sps:$4 sm:$0xff]   ;;  %v6759_v28 = vld [vmem:[#allocation2 + $0x28c] ss:$16 sps:$4 sm:$0xff]  }
  0x41   :  { %361 = vmatprep.subr.bf16.mxu1 %v6715_v29  ;;  %v6784_v4 = vld [vmem:[#allocation2 + $0x320] ss:$16 sps:$4 sm:$0xff]   ;;  %v6757_v29 = vld [vmem:[#allocation2 + $0x288] ss:$16 sps:$4 sm:$0xff]  }
  0x44   :  { %362 = vmatpush1.bf16.msra.mxu1 %v6717_v30  ;;  %v6765_v30 = vld [vmem:[#allocation2 + $0x2ac] ss:$16 sps:$4 sm:$0xff]  }
  0x45   :  { %363 = vmatprep.subr.bf16.mxu1 %v6718_v31  ;;  %v6763_v31 = vld [vmem:[#allocation2 + $0x2a8] ss:$16 sps:$4 sm:$0xff]  }
  0x48   :  { %364 = vmatpush1.bf16.msra.mxu1 %v6720_v40  ;;  %v6795_v40 = vld [vmem:[#allocation2 + $0x34c] ss:$16 sps:$4 sm:$0xff]  }
  0x49   :  { %365 = vmatprep.subr.bf16.mxu1 %v6721_v41  ;;  %v6793_v41 = vld [vmem:[#allocation2 + $0x348] ss:$16 sps:$4 sm:$0xff]  }
  0x4c   :  { %366 = vmatpush1.bf16.msra.mxu1 %v6723_v42  ;;  %v6801_v42 = vld [vmem:[#allocation2 + $0x36c] ss:$16 sps:$4 sm:$0xff]  }
  0x4d   :  { %844 = vmatprep.subr.bf16.mxu1 %v6729_v46  ;;  %v6805_v46 = vld [vmem:[#allocation2 + $0x388] ss:$16 sps:$4 sm:$0xff]  }
  0xfe   :  { %v92_v7 = vpop.f32.mrb[0].mxu0 }
  0xff   :  { %v93_v8 = vadd.f32 %v92_v7, %v47_v6  ;;  %v6438_v9 = vpop.f32.mrb[1].mxu0  ;;  %v6790_v6 = vld [vmem:[#allocation2 + $0x340] ss:$16 sps:$4 sm:$0xff]   ;;  %v6798_v7 = vld [vmem:[#allocation2 + $0x364] ss:$16 sps:$4 sm:$0xff]  }
 0x100   :  { %v95_v10 = vpop.f32.mrb[2].mxu0  ;;  %v6804_v9 = vld [vmem:[#allocation2 + $0x384] ss:$16 sps:$4 sm:$0xff]  }
 0x101   :  { %v98_v12 = vmax.f32 %v93_v8, 0.0  ;;  %v1905_v13 = vpack.c.bf16 %v93_v8, %v93_v8  ;;  %v6439_v14 = vpop.f32.mrb[3].mxu0  ;;  %v6796_v8 = vld [vmem:[#allocation2 + $0x360] ss:$16 sps:$4 sm:$0xff]  }
 0x102   :  { %v6802_v10 = vld [vmem:[#allocation2 + $0x380] ss:$16 sps:$4 sm:$0xff]  }
 0x103   :  { %v99_v15 = vpack.c.bf16 %v98_v12, %v98_v12  ;;  %1971 = vrot.lane.b32.xlu1 %v1905_v13, %s7529_s0 }
 0x105   :  { %6445 = vmatmul.mubr.msk.bf16.vlgmr.msra.gmra.mrb[4].mxu0 %vm117_vm2, %v99_v15 }
 0x106   :  { %6449 = vmatpush3.bf16.msra.mxu0 %v6696_v11  ;;  %6456 = vmatprep.mubr.msk.bf16.mxu0 %vm7527_vm0, %v7526_v0  ;;  %v171_v11 = vld [vmem:[#allocation4 + $0x2] ss:$0 sm:$0xff] }
 0x107   :  { %6450 = vmatprep.subr.bf16.mxu0 %v7526_v0 }
 0x10a   :  { %6451 = vmatpush3.bf16.msra.mxu0 %v6697_v16 }
 0x10b   :  { %6452 = vmatprep.subr.bf16.mxu0 %v7526_v0 }
 0x10e   :  { %6453 = vmatpush3.bf16.msra.mxu0 %v6698_v17 }
 0x10f   :  { %6454 = vmatprep.subr.bf16.mxu0 %v7526_v0 }
 0x112   :  { %6455 = vmatpush3.bf16.msra.mxu0 %v6699_v18  ;;  %v6727_v18 = vld [vmem:[#allocation2 + $0x1e8] ss:$16 sps:$4 sm:$0xff]  }
 0x113   :  { %803 = vmatprep.subr.bf16.mxu0 %v6726_v45  ;;  %v6807_v45 = vld [vmem:[#allocation2 + $0x38c] ss:$16 sps:$4 sm:$0xff]  }
 0x1d8   :  { %v155_v33 = vpop.f32.mrb[4].mxu0 }
 0x1d9   :  { %v156_v34 = vadd.f32 %v155_v33, %v104_v32  ;;  %v6446_v35 = vpop.f32.mrb[5].mxu0  ;;  %v6771_v32 = vld [vmem:[#allocation2 + $0x2cc] ss:$16 sps:$4 sm:$0xff]   ;;  %v6769_v33 = vld [vmem:[#allocation2 + $0x2c8] ss:$16 sps:$4 sm:$0xff]  }
 0x1da   :  { %v158_v36 = vpop.f32.mrb[6].mxu0  ;;  %v6775_v35 = vld [vmem:[#allocation2 + $0x2e8] ss:$16 sps:$4 sm:$0xff]  }
 0x1db   :  { %v161_v37 = vmax.f32 %v156_v34, 0.0  ;;  %v6447_v38 = vpop.f32.mrb[7].mxu0  ;;  %v6777_v34 = vld [vmem:[#allocation2 + $0x2ec] ss:$16 sps:$4 sm:$0xff]  }
 0x1dc   :  { %v6783_v36 = vld [vmem:[#allocation2 + $0x30c] ss:$16 sps:$4 sm:$0xff]  }
 0x1dd   :  { %v162_v39 = vpack.c.bf16 %v161_v37, %v161_v37  ;;  %v6781_v37 = vld [vmem:[#allocation2 + $0x308] ss:$16 sps:$4 sm:$0xff]   ;;  %v6789_v38 = vld [vmem:[#allocation2 + $0x32c] ss:$16 sps:$4 sm:$0xff]  }
 0x1df   :  { %6457 = vmatmul.mubr.msk.bf16.vlgmr.msra.gmra.mrb[8].mxu0 %vm196_vm3, %v162_v39  ;;  %v6787_v39 = vld [vmem:[#allocation2 + $0x328] ss:$16 sps:$4 sm:$0xff]  }
 0x1e0   :  { %804 = vmatpush1.bf16.msra.mxu0 %v6724_v44  ;;  %v6799_v44 = vld [vmem:[#allocation2 + $0x368] ss:$16 sps:$4 sm:$0xff]  }
 0x1e1   :  { %805 = vmatprep.subr.bf16.mxu0 %v6732_v47  ;;  %v6810_v47 = vld [vmem:[#allocation2 + $0x3a4] ss:$16 sps:$4 sm:$0xff]  }
 0x1e4   :  { %806 = vmatpush1.bf16.msra.mxu0 %v6730_v48  ;;  %v6813_v48 = vld [vmem:[#allocation2 + $0x3ac] ss:$16 sps:$4 sm:$0xff]  }
 0x1e5   :  { %807 = vmatprep.subr.bf16.mxu0 %v6738_v49  ;;  %v6808_v49 = vld [vmem:[#allocation2 + $0x3a0] ss:$16 sps:$4 sm:$0xff]  }
 0x1e8   :  { %808 = vmatpush1.bf16.msra.mxu0 %v6736_v50  ;;  %v6811_v50 = vld [vmem:[#allocation2 + $0x3a8] ss:$16 sps:$4 sm:$0xff]  }
 0x1e9   :  { %809 = vmatprep.subr.bf16.mxu0 %v6744_v51  ;;  %v6816_v51 = vld [vmem:[#allocation2 + $0x3c4] ss:$16 sps:$4 sm:$0xff]  }
 0x1ec   :  { %810 = vmatpush1.bf16.msra.mxu0 %v6742_v52  ;;  %v6819_v52 = vld [vmem:[#allocation2 + $0x3cc] ss:$16 sps:$4 sm:$0xff]  }
 0x1ed   :  { %811 = vmatprep.subr.bf16.mxu0 %v6750_v53  ;;  %v6814_v53 = vld [vmem:[#allocation2 + $0x3c0] ss:$16 sps:$4 sm:$0xff]  }
 0x1f0   :  { %812 = vmatpush1.bf16.msra.mxu0 %v6748_v54  ;;  %v6817_v54 = vld [vmem:[#allocation2 + $0x3c8] ss:$16 sps:$4 sm:$0xff]  }
 0x1f1   :  { %813 = vmatprep.subr.bf16.mxu0 %v6756_v55  ;;  %v6822_v55 = vld [vmem:[#allocation2 + $0x3e4] ss:$16 sps:$4 sm:$0xff]  }
 0x1f4   :  { %814 = vmatpush1.bf16.msra.mxu0 %v6754_v56  ;;  %v261_v56 = vlaneseq }
 0x1f5   :  { %815 = vmatprep.subr.bf16.mxu0 %v6762_v57 }
 0x1f6   :  { %v7600_v57 = vshrl.u32 %v261_v56, 7  ;;  %v7610_v56 = vld [vmem:[#allocation4 + $0x4] ss:$8 sm:$0xf] }
 0x1f8   :  { %816 = vmatpush1.bf16.msra.mxu0 %v6760_v58  ;;  %v7603_v58 = vsub.s32 0, %v7600_v57 }
 0x1f9   :  { %817 = vmatprep.subr.bf16.mxu0 %v6768_v59  ;;  %v259_v59 = vld [vmem:[#allocation4 + $0x3] ss:$8 sm:$0x3] }
 0x1fc   :  { %818 = vmatpush1.bf16.msra.mxu0 %v6766_v60  ;;  %v7606_v60 = vsub.s32 1, %v7600_v57 }
 0x1fd   :  { %819 = vmatprep.subr.bf16.mxu0 %v6774_v61  ;;  %v264_v61 = vrot.slane %v259_v59, %v7603_v58 }
 0x200   :  { %820 = vmatpush1.bf16.msra.mxu0 %v6772_v62  ;;  %v268_v62 = vrot.slane %v259_v59, %v7606_v60  ;;  %v7613_v59 = vsub.s32 3, %v7600_v57 }
 0x201   :  { %821 = vmatprep.subr.bf16.mxu0 %v6780_v63 }
 0x204   :  { %822 = vmatpush1.bf16.msra.mxu0 %v6778_v1 }
 0x205   :  { %823 = vmatprep.subr.bf16.mxu0 %v6786_v2 }
 0x208   :  { %824 = vmatpush1.bf16.msra.mxu0 %v6784_v4 }
 0x209   :  { %825 = vmatprep.subr.bf16.mxu0 %v6792_v5 }
 0x20c   :  { %826 = vmatpush1.bf16.msra.mxu0 %v6790_v6 }
 0x20d   :  { %827 = vmatprep.subr.bf16.mxu0 %v6798_v7 }
 0x210   :  { %828 = vmatpush1.bf16.msra.mxu0 %v6796_v8 }
 0x211   :  { %829 = vmatprep.subr.bf16.mxu0 %v6804_v9 }
 0x214   :  { %830 = vmatpush1.bf16.msra.mxu0 %v6802_v10  ;;  %v6820_v10 = vld [vmem:[#allocation2 + $0x3e0] ss:$16 sps:$4 sm:$0xff]  }
 0x215   :  { %831 = vmatprep.subr.bf16.mxu0 %v6810_v47  ;;  %v6921_v47 = vld [vmem:[#allocation2 + $0x800] ss:$16 sps:$4 sm:$0xff]  }
 0x218   :  { %832 = vmatpush1.bf16.msra.mxu0 %v6808_v49  ;;  %v6923_v49 = vld [vmem:[#allocation2 + $0x820] ss:$16 sps:$4 sm:$0xff]  }
 0x219   :  { %833 = vmatprep.subr.bf16.mxu0 %v6816_v51  ;;  %v6925_v51 = vld [vmem:[#allocation2 + $0x840] ss:$16 sps:$4 sm:$0xff]  }
 0x21c   :  { %834 = vmatpush1.bf16.msra.mxu0 %v6814_v53  ;;  %v6927_v53 = vld [vmem:[#allocation2 + $0x860] ss:$16 sps:$4 sm:$0xff]  }
 0x21d   :  { %1290 = vmatprep.subr.bf16.mxu0 %v6822_v55  ;;  %v6929_v55 = vld [vmem:[#allocation2 + $0x880] ss:$16 sps:$4 sm:$0xff]  }
 0x2b2   :  { %v234_v12 = vpop.f32.mrb[8].mxu0 }
 0x2b3   :  { %v235_v13 = vadd.f32 %v234_v12, %v171_v11  ;;  %v6458_v14 = vpop.f32.mrb[9].mxu0  ;;  %v6825_v12 = vld [vmem:[#allocation2 + $0x404] ss:$16 sps:$4 sm:$0xff]  }
 0x2b4   :  { %v237_v15 = vpop.f32.mrb[10].mxu0  ;;  %v6828_v14 = vld [vmem:[#allocation2 + $0x424] ss:$16 sps:$4 sm:$0xff]  }
 0x2b5   :  { %v240_v16 = vmax.f32 %v235_v13, 0.0  ;;  %v6459_v17 = vpop.f32.mrb[11].mxu0  ;;  %v6823_v13 = vld [vmem:[#allocation2 + $0x400] ss:$16 sps:$4 sm:$0xff]  }
 0x2b6   :  { %v6826_v15 = vld [vmem:[#allocation2 + $0x420] ss:$16 sps:$4 sm:$0xff]  }
 0x2b7   :  { %v241_v19 = vpack.c.bf16 %v240_v16, %v240_v16  ;;  %v6831_v16 = vld [vmem:[#allocation2 + $0x444] ss:$16 sps:$4 sm:$0xff]   ;;  %v6829_v17 = vld [vmem:[#allocation2 + $0x440] ss:$16 sps:$4 sm:$0xff]  }
 0x2b9   :  { %384 = vmatmul.mubr.bf16.vlgmr.msra.gmra.mrb[0].mxu1 %v241_v19  ;;  %v6832_v19 = vld [vmem:[#allocation2 + $0x460] ss:$16 sps:$4 sm:$0xff]  }
 0x2ba   :  { %845 = vmatpush1.bf16.msra.mxu1 %v6727_v18  ;;  %v6834_v18 = vld [vmem:[#allocation2 + $0x464] ss:$16 sps:$4 sm:$0xff]  }
 0x2bb   :  { %846 = vmatprep.subr.bf16.mxu1 %v6735_v20  ;;  %v6837_v20 = vld [vmem:[#allocation2 + $0x484] ss:$16 sps:$4 sm:$0xff]  }
 0x2be   :  { %847 = vmatpush1.bf16.msra.mxu1 %v6733_v21  ;;  %v6835_v21 = vld [vmem:[#allocation2 + $0x480] ss:$16 sps:$4 sm:$0xff]  }
 0x2bf   :  { %848 = vmatprep.subr.bf16.mxu1 %v6741_v22  ;;  %v6840_v22 = vld [vmem:[#allocation2 + $0x4a4] ss:$16 sps:$4 sm:$0xff]  }
 0x2c2   :  { %849 = vmatpush1.bf16.msra.mxu1 %v6739_v23  ;;  %v6838_v23 = vld [vmem:[#allocation2 + $0x4a0] ss:$16 sps:$4 sm:$0xff]  }
 0x2c3   :  { %850 = vmatprep.subr.bf16.mxu1 %v6747_v24  ;;  %v6843_v24 = vld [vmem:[#allocation2 + $0x4c4] ss:$16 sps:$4 sm:$0xff]  }
 0x2c6   :  { %851 = vmatpush1.bf16.msra.mxu1 %v6745_v25  ;;  %v6841_v25 = vld [vmem:[#allocation2 + $0x4c0] ss:$16 sps:$4 sm:$0xff]  }
 0x2c7   :  { %852 = vmatprep.subr.bf16.mxu1 %v6753_v26  ;;  %v6846_v26 = vld [vmem:[#allocation2 + $0x4e4] ss:$16 sps:$4 sm:$0xff]  }
 0x2ca   :  { %853 = vmatpush1.bf16.msra.mxu1 %v6751_v27  ;;  %v6844_v27 = vld [vmem:[#allocation2 + $0x4e0] ss:$16 sps:$4 sm:$0xff]  }
 0x2cb   :  { %854 = vmatprep.subr.bf16.mxu1 %v6759_v28  ;;  %v6849_v28 = vld [vmem:[#allocation2 + $0x504] ss:$16 sps:$4 sm:$0xff]  }
 0x2ce   :  { %855 = vmatpush1.bf16.msra.mxu1 %v6757_v29  ;;  %v6847_v29 = vld [vmem:[#allocation2 + $0x500] ss:$16 sps:$4 sm:$0xff]  }
 0x2cf   :  { %856 = vmatprep.subr.bf16.mxu1 %v6765_v30  ;;  %v6852_v30 = vld [vmem:[#allocation2 + $0x524] ss:$16 sps:$4 sm:$0xff]  }
 0x2d2   :  { %857 = vmatpush1.bf16.msra.mxu1 %v6763_v31  ;;  %v6850_v31 = vld [vmem:[#allocation2 + $0x520] ss:$16 sps:$4 sm:$0xff]  }
 0x2d3   :  { %858 = vmatprep.subr.bf16.mxu1 %v6771_v32  ;;  %v6855_v32 = vld [vmem:[#allocation2 + $0x544] ss:$16 sps:$4 sm:$0xff]  }
 0x2d6   :  { %859 = vmatpush1.bf16.msra.mxu1 %v6769_v33  ;;  %v6853_v33 = vld [vmem:[#allocation2 + $0x540] ss:$16 sps:$4 sm:$0xff]  }
 0x2d7   :  { %860 = vmatprep.subr.bf16.mxu1 %v6777_v34  ;;  %v6858_v34 = vld [vmem:[#allocation2 + $0x564] ss:$16 sps:$4 sm:$0xff]  }
 0x2da   :  { %861 = vmatpush1.bf16.msra.mxu1 %v6775_v35  ;;  %v6856_v35 = vld [vmem:[#allocation2 + $0x560] ss:$16 sps:$4 sm:$0xff]  }
 0x2db   :  { %862 = vmatprep.subr.bf16.mxu1 %v6783_v36  ;;  %v6861_v36 = vld [vmem:[#allocation2 + $0x584] ss:$16 sps:$4 sm:$0xff]  }
 0x2de   :  { %863 = vmatpush1.bf16.msra.mxu1 %v6781_v37  ;;  %v6859_v37 = vld [vmem:[#allocation2 + $0x580] ss:$16 sps:$4 sm:$0xff]  }
 0x2df   :  { %864 = vmatprep.subr.bf16.mxu1 %v6789_v38  ;;  %v6864_v38 = vld [vmem:[#allocation2 + $0x5a4] ss:$16 sps:$4 sm:$0xff]  }
 0x2e2   :  { %865 = vmatpush1.bf16.msra.mxu1 %v6787_v39  ;;  %v6862_v39 = vld [vmem:[#allocation2 + $0x5a0] ss:$16 sps:$4 sm:$0xff]  }
 0x2e3   :  { %866 = vmatprep.subr.bf16.mxu1 %v6795_v40  ;;  %v6867_v40 = vld [vmem:[#allocation2 + $0x5c4] ss:$16 sps:$4 sm:$0xff]  }
 0x2e6   :  { %867 = vmatpush1.bf16.msra.mxu1 %v6793_v41  ;;  %v6865_v41 = vld [vmem:[#allocation2 + $0x5c0] ss:$16 sps:$4 sm:$0xff]  }
 0x2e7   :  { %868 = vmatprep.subr.bf16.mxu1 %v6801_v42  ;;  %v6870_v42 = vld [vmem:[#allocation2 + $0x5e4] ss:$16 sps:$4 sm:$0xff]  }
 0x2ea   :  { %869 = vmatpush1.bf16.msra.mxu1 %v6799_v44  ;;  %v6918_v44 = vld [vmem:[#allocation2 + $0x8e0] ss:$16 sps:$4 sm:$0xff]  }
 0x2eb   :  { %870 = vmatprep.subr.bf16.mxu1 %v6807_v45  ;;  %v6919_v45 = vld [vmem:[#allocation2 + $0x7e0] ss:$16 sps:$4 sm:$0xff]  }
 0x2ee   :  { %871 = vmatpush1.bf16.msra.mxu1 %v6805_v46  ;;  %v6920_v46 = vld [vmem:[#allocation2 + $0x900] ss:$16 sps:$4 sm:$0xff]  }
 0x2ef   :  { %872 = vmatprep.subr.bf16.mxu1 %v6813_v48  ;;  %v6922_v48 = vld [vmem:[#allocation2 + $0x920] ss:$16 sps:$4 sm:$0xff]  }
 0x2f2   :  { %873 = vmatpush1.bf16.msra.mxu1 %v6811_v50  ;;  %v6924_v50 = vld [vmem:[#allocation2 + $0x940] ss:$16 sps:$4 sm:$0xff]  }
 0x2f3   :  { %874 = vmatprep.subr.bf16.mxu1 %v6819_v52  ;;  %v6926_v52 = vld [vmem:[#allocation2 + $0x960] ss:$16 sps:$4 sm:$0xff]  }
 0x2f6   :  { %875 = vmatpush1.bf16.msra.mxu1 %v6817_v54  ;;  %v6928_v54 = vld [vmem:[#allocation2 + $0x980] ss:$16 sps:$4 sm:$0xff]  }
 0x2f7   :  { %6286 = vmatprep.subr.bf16.mxu1 %v6918_v44  ;;  %v6904_v44 = vld [vmem:[#allocation2 + $0x760] ss:$16 sps:$4 sm:$0xff]  }
 0x38c   :  { %v385_v63 = vpop.f32.mrb[0].mxu1 }
 0x38d   :  { %v386_v1 = vadd.f32 %v385_v63, %v264_v61  ;;  %v387_v2 = vpop.f32.mrb[1].mxu1  ;;  %v466_v61 = vrot.slane %v7610_v56, %v7603_v58  ;;  %v478_v63 = vrot.slane %v7610_v56, %v7613_v59 }
 0x38e   :  { %v388_v4 = vadd.f32 %v387_v2, %v268_v62  ;;  %v389_v5 = vpop.f32.mrb[2].mxu1  ;;  %v470_v62 = vrot.slane %v7610_v56, %v7606_v60 }
 0x38f   :  { %v392_v6 = vmax.f32 %v386_v1, 0.0  ;;  %v390_v7 = vpop.f32.mrb[3].mxu1 }
 0x390   :  { %v393_v8 = vmax.f32 %v388_v4, 0.0 }
 0x391   :  { %v394_v11 = vpack.c.bf16 %v392_v6, %v392_v6 }
 0x392   :  { %v395_v9 = vpack.c.bf16 %v393_v8, %v393_v8 }
 0x394   :  { %835 = vmatprep.mubr.bf16.mxu0 %v395_v9  ;;  %876 = vmatprep.mubr.bf16.mxu1 %v395_v9 }
 0x395   :  { %836 = vmatmul.mubr.bf16.vlgmr.msra.gmra.mrb[12].mxu0 %v394_v11  ;;  %877 = vmatmul.mubr.bf16.vlgmr.msra.gmra.mrb[4].mxu1 %v394_v11 }
 0x396   :  { %1291 = vmatpush1.bf16.msra.mxu0 %v6820_v10  ;;  %6287 = vmatpush3.bf16.msra.mxu1 %v6919_v45  ;;  %v7624_v45 = vsub.s32 2, %v7600_v57  ;;  %v6916_v57 = vld [vmem:[#allocation2 + $0xbe0] ss:$16 sps:$4 sm:$0xff]  }
 0x397   :  { %1292 = vmatprep.subr.bf16.mxu0 %v6825_v12  ;;  %6288 = vmatprep.subr.bf16.mxu1 %v6920_v46  ;;  %v6909_v46 = vld [vmem:[#allocation2 + $0x784] ss:$16 sps:$4 sm:$0xff]  }
 0x39a   :  { %1293 = vmatpush1.bf16.msra.mxu0 %v6823_v13  ;;  %6289 = vmatpush3.bf16.msra.mxu1 %v6921_v47  ;;  %v6907_v47 = vld [vmem:[#allocation2 + $0x780] ss:$16 sps:$4 sm:$0xff]  }
 0x39b   :  { %1294 = vmatprep.subr.bf16.mxu0 %v6828_v14  ;;  %6290 = vmatprep.subr.bf16.mxu1 %v6922_v48  ;;  %v474_v48 = vrot.slane %v7610_v56, %v7624_v45  ;;  %v6917_v56 = vld [vmem:[#allocation2 + $0xc00] ss:$16 sps:$4 sm:$0xff]  }
 0x39e   :  { %1295 = vmatpush1.bf16.msra.mxu0 %v6826_v15  ;;  %6291 = vmatpush3.bf16.msra.mxu1 %v6923_v49  ;;  %v6912_v49 = vld [vmem:[#allocation2 + $0x7a4] ss:$16 sps:$4 sm:$0xff]  }
 0x39f   :  { %1296 = vmatprep.subr.bf16.mxu0 %v6831_v16  ;;  %6292 = vmatprep.subr.bf16.mxu1 %v6924_v50  ;;  %v6910_v50 = vld [vmem:[#allocation2 + $0x7a0] ss:$16 sps:$4 sm:$0xff]  }
 0x3a2   :  { %1297 = vmatpush1.bf16.msra.mxu0 %v6829_v17  ;;  %6293 = vmatpush3.bf16.msra.mxu1 %v6925_v51  ;;  %v6868_v17 = vld [vmem:[#allocation2 + $0x5e0] ss:$16 sps:$4 sm:$0xff]  }
 0x3a3   :  { %1298 = vmatprep.subr.bf16.mxu0 %v6834_v18  ;;  %6294 = vmatprep.subr.bf16.mxu1 %v6926_v52  ;;  %v6915_v52 = vld [vmem:[#allocation2 + $0x7c4] ss:$16 sps:$4 sm:$0xff]  }
 0x3a6   :  { %1299 = vmatpush1.bf16.msra.mxu0 %v6832_v19  ;;  %6295 = vmatpush3.bf16.msra.mxu1 %v6927_v53  ;;  %v6873_v19 = vld [vmem:[#allocation2 + $0x604] ss:$16 sps:$4 sm:$0xff]   ;;  %v6913_v53 = vld [vmem:[#allocation2 + $0x7c0] ss:$16 sps:$4 sm:$0xff]  }
 0x3a7   :  { %1300 = vmatprep.subr.bf16.mxu0 %v6837_v20  ;;  %6296 = vmatprep.subr.bf16.mxu1 %v6928_v54 }
 0x3aa   :  { %1301 = vmatpush1.bf16.msra.mxu0 %v6835_v21  ;;  %6297 = vmatpush3.bf16.msra.mxu1 %v6929_v55  ;;  %v6871_v21 = vld [vmem:[#allocation2 + $0x600] ss:$16 sps:$4 sm:$0xff]  }
 0x3ab   :  { %1302 = vmatprep.subr.bf16.mxu0 %v6840_v22  ;;  %v6876_v22 = vld [vmem:[#allocation2 + $0x624] ss:$16 sps:$4 sm:$0xff]  }
 0x3ae   :  { %1303 = vmatpush1.bf16.msra.mxu0 %v6838_v23  ;;  %v6874_v23 = vld [vmem:[#allocation2 + $0x620] ss:$16 sps:$4 sm:$0xff]  }
 0x3af   :  { %1304 = vmatprep.subr.bf16.mxu0 %v6843_v24  ;;  %v6879_v24 = vld [vmem:[#allocation2 + $0x644] ss:$16 sps:$4 sm:$0xff]  }
 0x3b2   :  { %1305 = vmatpush1.bf16.msra.mxu0 %v6841_v25  ;;  %v6877_v25 = vld [vmem:[#allocation2 + $0x640] ss:$16 sps:$4 sm:$0xff]  }
 0x3b3   :  { %1306 = vmatprep.subr.bf16.mxu0 %v6846_v26  ;;  %v6882_v26 = vld [vmem:[#allocation2 + $0x664] ss:$16 sps:$4 sm:$0xff]  }
 0x3b6   :  { %1307 = vmatpush1.bf16.msra.mxu0 %v6844_v27  ;;  %v6880_v27 = vld [vmem:[#allocation2 + $0x660] ss:$16 sps:$4 sm:$0xff]  }
 0x3b7   :  { %1308 = vmatprep.subr.bf16.mxu0 %v6849_v28  ;;  %v6885_v28 = vld [vmem:[#allocation2 + $0x684] ss:$16 sps:$4 sm:$0xff]  }
 0x3ba   :  { %1309 = vmatpush1.bf16.msra.mxu0 %v6847_v29  ;;  %v6883_v29 = vld [vmem:[#allocation2 + $0x680] ss:$16 sps:$4 sm:$0xff]  }
 0x3bb   :  { %1310 = vmatprep.subr.bf16.mxu0 %v6852_v30  ;;  %v6888_v30 = vld [vmem:[#allocation2 + $0x6a4] ss:$16 sps:$4 sm:$0xff]  }
 0x3be   :  { %1311 = vmatpush1.bf16.msra.mxu0 %v6850_v31  ;;  %v6886_v31 = vld [vmem:[#allocation2 + $0x6a0] ss:$16 sps:$4 sm:$0xff]  }
 0x3bf   :  { %1312 = vmatprep.subr.bf16.mxu0 %v6855_v32  ;;  %v6891_v32 = vld [vmem:[#allocation2 + $0x6c4] ss:$16 sps:$4 sm:$0xff]  }
 0x3c2   :  { %1313 = vmatpush1.bf16.msra.mxu0 %v6853_v33  ;;  %v6889_v33 = vld [vmem:[#allocation2 + $0x6c0] ss:$16 sps:$4 sm:$0xff]  }
 0x3c3   :  { %1314 = vmatprep.subr.bf16.mxu0 %v6858_v34  ;;  %v6894_v34 = vld [vmem:[#allocation2 + $0x6e4] ss:$16 sps:$4 sm:$0xff]  }
 0x3c6   :  { %1315 = vmatpush1.bf16.msra.mxu0 %v6856_v35  ;;  %v6892_v35 = vld [vmem:[#allocation2 + $0x6e0] ss:$16 sps:$4 sm:$0xff]  }
 0x3c7   :  { %1316 = vmatprep.subr.bf16.mxu0 %v6861_v36  ;;  %v6897_v36 = vld [vmem:[#allocation2 + $0x704] ss:$16 sps:$4 sm:$0xff]  }
 0x3ca   :  { %1317 = vmatpush1.bf16.msra.mxu0 %v6859_v37  ;;  %v6895_v37 = vld [vmem:[#allocation2 + $0x700] ss:$16 sps:$4 sm:$0xff]  }
 0x3cb   :  { %1318 = vmatprep.subr.bf16.mxu0 %v6864_v38  ;;  %v6900_v38 = vld [vmem:[#allocation2 + $0x724] ss:$16 sps:$4 sm:$0xff]  }
 0x3ce   :  { %1319 = vmatpush1.bf16.msra.mxu0 %v6862_v39  ;;  %v6898_v39 = vld [vmem:[#allocation2 + $0x720] ss:$16 sps:$4 sm:$0xff]  }
 0x3cf   :  { %1320 = vmatprep.subr.bf16.mxu0 %v6867_v40  ;;  %v6903_v40 = vld [vmem:[#allocation2 + $0x744] ss:$16 sps:$4 sm:$0xff]  }
 0x3d2   :  { %1321 = vmatpush1.bf16.msra.mxu0 %v6865_v41  ;;  %v6901_v41 = vld [vmem:[#allocation2 + $0x740] ss:$16 sps:$4 sm:$0xff]  }
 0x3d3   :  { %1331 = vmatprep.subr.bf16.mxu0 %v6870_v42  ;;  %v6906_v42 = vld [vmem:[#allocation2 + $0x764] ss:$16 sps:$4 sm:$0xff]  }
 0x468   :  { %v837_v1 = vpop.f32.mrb[12].mxu0  ;;  %v7621_v2 = vpop.f32.mrb[4].mxu1 }
 0x469   :  { %v838_v4 = vadd.f32 %v837_v1, %v466_v61  ;;  %v839_v5 = vpop.f32.mrb[13].mxu0  ;;  %v880_v6 = vpop.f32.mrb[5].mxu1  ;;  %v879_v51 = vadd.f32 %v7621_v2, %v474_v48  ;;  %v6931_v1 = vld [vmem:[#allocation2 + $0x8a0] ss:$16 sps:$4 sm:$0xff]  }
 0x46a   :  { %v840_v7 = vadd.f32 %v839_v5, %v470_v62  ;;  %v881_v8 = vadd.f32 %v880_v6, %v478_v63  ;;  %v841_v9 = vpop.f32.mrb[14].mxu0  ;;  %v882_v10 = vpop.f32.mrb[6].mxu1  ;;  %v6930_v63 = vld [vmem:[#allocation2 + $0x9a0] ss:$16 sps:$4 sm:$0xff]  }
 0x46b   :  { %v885_v11 = vmax.f32 %v838_v4, 0.0  ;;  %v842_v12 = vpop.f32.mrb[15].mxu0  ;;  %v883_v13 = vpop.f32.mrb[7].mxu1  ;;  %v887_v54 = vmax.f32 %v879_v51, 0.0  ;;  %6298 = vmatprep.subr.bf16.mxu1 %v6930_v63  ;;  %v6932_v2 = vld [vmem:[#allocation2 + $0x9c0] ss:$16 sps:$4 sm:$0xff]  }
 0x46c   :  { %v886_v14 = vmax.f32 %v840_v7, 0.0  ;;  %v888_v15 = vmax.f32 %v881_v8, 0.0  ;;  %v7630_v61 = vpop.permute.xlu1 %1807  ;;  %6299 = vmatpush3.bf16.msra.mxu1 %v6931_v1  ;;  %v6933_v4 = vld [vmem:[#allocation2 + $0x8c0] ss:$16 sps:$4 sm:$0xff]  }
 0x46d   :  { %v889_v18 = vpack.c.bf16 %v885_v11, %v885_v11  ;;  %v891_v55 = vpack.c.bf16 %v887_v54, %v887_v54  ;;  %6300 = vmatprep.subr.bf16.mxu1 %v6932_v2  ;;  %v958_v5 = vld [vmem:[#allocation4 + $0x5] ss:$8 sm:$0x3]  ;;  %v6947_v54 = vld [vmem:[#allocation2 + $0xb80] ss:$16 sps:$4 sm:$0xff]  }
 0x46e   :  { %v890_v16 = vpack.c.bf16 %v886_v14, %v886_v14  ;;  %v892_v20 = vpack.c.bf16 %v888_v15, %v888_v15  ;;  %v963_v6 = vrot.slane %v958_v5, %v7603_v58  ;;  %v967_v7 = vrot.slane %v958_v5, %v7606_v60  ;;  %v1804_v5 = vld [vmem:[#allocation2 + $0xba0] sm:$0xf] }
 0x470   :  { %1322 = vmatprep.mubr.bf16.mxu0 %v890_v16  ;;  %v1972_v62 = vpop.permute.xlu1 %1971  ;;  %6301 = vmatpush3.bf16.msra.mxu1 %v6933_v4 }
 0x471   :  { %1323 = vmatmul.mubr.bf16.vlgmr.msra.gmra.mrb[16].mxu0 %v889_v18  ;;  %6460 = vmatprep.subr.bf16.mxu1 %v7526_v0 }
 0x472   :  { %1332 = vmatpush1.bf16.msra.mxu0 %v6868_v17  ;;  %1363 = vmatprep.mubr.bf16.mxu0 %v892_v20  ;;  %v6934_v17 = vld [vmem:[#allocation2 + $0x9e0] ss:$16 sps:$4 sm:$0xff]  }
 0x473   :  { %1333 = vmatprep.subr.bf16.mxu0 %v6873_v19 }
 0x476   :  { %1334 = vmatpush1.bf16.msra.mxu0 %v6871_v21 }
 0x477   :  { %1335 = vmatprep.subr.bf16.mxu0 %v6876_v22  ;;  %v6935_v22 = vld [vmem:[#allocation2 + $0xa00] ss:$16 sps:$4 sm:$0xff]  }
 0x47a   :  { %1336 = vmatpush1.bf16.msra.mxu0 %v6874_v23 }
 0x47b   :  { %1337 = vmatprep.subr.bf16.mxu0 %v6879_v24  ;;  %v6936_v24 = vld [vmem:[#allocation2 + $0xa20] ss:$16 sps:$4 sm:$0xff]  }
 0x47e   :  { %1338 = vmatpush1.bf16.msra.mxu0 %v6877_v25  ;;  %v6937_v25 = vld [vmem:[#allocation2 + $0xa40] ss:$16 sps:$4 sm:$0xff]  }
 0x47f   :  { %1339 = vmatprep.subr.bf16.mxu0 %v6882_v26  ;;  %v6938_v26 = vld [vmem:[#allocation2 + $0xa60] ss:$16 sps:$4 sm:$0xff]  }
 0x482   :  { %1340 = vmatpush1.bf16.msra.mxu0 %v6880_v27  ;;  %v6939_v27 = vld [vmem:[#allocation2 + $0xa80] ss:$16 sps:$4 sm:$0xff]  }
 0x483   :  { %1341 = vmatprep.subr.bf16.mxu0 %v6885_v28  ;;  %v6940_v28 = vld [vmem:[#allocation2 + $0xaa0] ss:$16 sps:$4 sm:$0xff]  }
 0x486   :  { %1342 = vmatpush1.bf16.msra.mxu0 %v6883_v29  ;;  %v6941_v29 = vld [vmem:[#allocation2 + $0xac0] ss:$16 sps:$4 sm:$0xff]  }
 0x487   :  { %1343 = vmatprep.subr.bf16.mxu0 %v6888_v30 }
 0x48a   :  { %1344 = vmatpush1.bf16.msra.mxu0 %v6886_v31  ;;  %v1408_v31 = vld [vmem:[#allocation4 + $0x6] ss:$0 sm:$0xff] }
 0x48b   :  { %1345 = vmatprep.subr.bf16.mxu0 %v6891_v32 }
 0x48e   :  { %1346 = vmatpush1.bf16.msra.mxu0 %v6889_v33 }
 0x48f   :  { %1347 = vmatprep.subr.bf16.mxu0 %v6894_v34 }
 0x492   :  { %1348 = vmatpush1.bf16.msra.mxu0 %v6892_v35 }
 0x493   :  { %1349 = vmatprep.subr.bf16.mxu0 %v6897_v36 }
 0x496   :  { %1350 = vmatpush1.bf16.msra.mxu0 %v6895_v37 }
 0x497   :  { %1351 = vmatprep.subr.bf16.mxu0 %v6900_v38  ;;  %v6942_v38 = vld [vmem:[#allocation2 + $0xae0] ss:$16 sps:$4 sm:$0xff]  }
 0x49a   :  { %1352 = vmatpush1.bf16.msra.mxu0 %v6898_v39 }
 0x49b   :  { %1353 = vmatprep.subr.bf16.mxu0 %v6903_v40  ;;  %v6943_v40 = vld [vmem:[#allocation2 + $0xb00] ss:$16 sps:$4 sm:$0xff]  }
 0x49e   :  { %1354 = vmatpush1.bf16.msra.mxu0 %v6901_v41  ;;  %v6944_v41 = vld [vmem:[#allocation2 + $0xb20] ss:$16 sps:$4 sm:$0xff]  }
 0x49f   :  { %1355 = vmatprep.subr.bf16.mxu0 %v6906_v42  ;;  %v6945_v42 = vld [vmem:[#allocation2 + $0xb40] ss:$16 sps:$4 sm:$0xff]  }
 0x4a2   :  { %1356 = vmatpush1.bf16.msra.mxu0 %v6904_v44  ;;  %v1563_v44 = vld [vmem:[#allocation4 + $0x7] ss:$0 sm:$0xff] }
 0x4a3   :  { %1357 = vmatprep.subr.bf16.mxu0 %v6909_v46 }
 0x4a6   :  { %1358 = vmatpush1.bf16.msra.mxu0 %v6907_v47 }
 0x4a7   :  { %1359 = vmatprep.subr.bf16.mxu0 %v6912_v49 }
 0x4aa   :  { %1360 = vmatpush1.bf16.msra.mxu0 %v6910_v50 }
 0x4ab   :  { %1361 = vmatprep.subr.bf16.mxu0 %v6915_v52  ;;  %v6946_v52 = vld [vmem:[#allocation2 + $0xb60] ss:$16 sps:$4 sm:$0xff]  }
 0x4ae   :  { %1362 = vmatpush1.bf16.msra.mxu0 %v6913_v53 }
 0x4af   :  { %6520 = vmatprep.subr.bf16.mxu0 %v7526_v0 }
 0x4b1   :  { %1364 = vmatmul.mubr.bf16.vlgmr.msra.gmra.mrb[16].mxu0 %v891_v55 }
 0x4b2   :  { %6521 = vmatpush3.bf16.msra.mxu0 %v6916_v57  ;;  %6524 = vmatprep.mubr.msk.bf16.mxu0 %vm7527_vm0, %v7526_v0  ;;  %v1662_v57 = vld [vmem:[#allocation4 + $0x20] ss:$0 sm:$0xff] }
 0x4b3   :  { %6522 = vmatprep.subr.bf16.mxu0 %v7526_v0 }
 0x4b6   :  { %6523 = vmatpush3.bf16.msra.mxu0 %v6917_v56 }
 0x4b7   :  { %6536 = vmatprep.subr.bf16.mxu0 %v7526_v0 }
 0x4b9   :  { %6525 = vmatmul.mubr.msk.bf16.vlgmr.msra.gmra.mrb[20].mxu0 %vm117_vm2, %v1972_v62 }
 0x4ba   :  { %6544 = vmatprep.mubr.msk.bf16.mxu0 %vm7527_vm0, %v7526_v0 }
 0x584   :  { %v1365_v8 = vpop.f32.mrb[16].mxu0 }
 0x585   :  { %v6662_v9 = vadd.f32 %v1365_v8, %v963_v6  ;;  %v1367_v10 = vpop.f32.mrb[17].mxu0  ;;  %v1814_v6 = vsel %vm1812_vm4, %v1804_v5, 0  ;;  %v6973_v5 = vld [vmem:[#allocation2 + $0xdc4] ss:$16 sps:$4 sm:$0xff]  }
 0x586   :  { %v6663_v11 = vadd.f32 %v1367_v10, %v967_v7  ;;  %v1369_v12 = vpop.f32.mrb[18].mxu0  ;;  %v1736_v7 = vld [vmem:[#allocation4 + $0x21] ss:$0 sm:$0xff] }
 0x587   :  { %v1372_v13 = vmax.f32 %v6662_v9, 0.0  ;;  %v1370_v14 = vpop.f32.mrb[19].mxu0 }
 0x588   :  { %v1373_v15 = vmax.f32 %v6663_v11, 0.0 }
 0x589   :  { %v1374_v18 = vpack.c.bf16 %v1372_v13, %v1372_v13 }
 0x58a   :  { %v1375_v16 = vpack.c.bf16 %v1373_v15, %v1373_v15 }
 0x58c   :  { %1537 = vmatprep.mubr.bf16.mxu1 %v1375_v16  ;;  %v7642_v19 = vpop.f32.mrb[20].mxu0 }
 0x58d   :  { %1538 = vmatmul.mubr.bf16.vlgmr.msra.gmra.mrb[8].mxu1 %v1374_v18  ;;  %v6526_v20 = vpop.f32.mrb[21].mxu0 }
 0x58e   :  { %v2025_v21 = vpop.f32.mrb[22].mxu0  ;;  %6461 = vmatpush3.bf16.msra.mxu1 %v6934_v17  ;;  %6476 = vmatprep.mubr.msk.bf16.mxu1 %vm7527_vm0, %v7526_v0 }
 0x58f   :  { %v6527_v23 = vpop.f32.mrb[23].mxu0  ;;  %6462 = vmatprep.subr.bf16.mxu1 %v7526_v0 }
 0x592   :  { %6463 = vmatpush3.bf16.msra.mxu1 %v6935_v22 }
 0x593   :  { %6464 = vmatprep.subr.bf16.mxu1 %v7526_v0 }
 0x596   :  { %6465 = vmatpush3.bf16.msra.mxu1 %v6936_v24 }
 0x597   :  { %6466 = vmatprep.subr.bf16.mxu1 %v7526_v0 }
 0x59a   :  { %6467 = vmatpush3.bf16.msra.mxu1 %v6937_v25 }
 0x59b   :  { %6468 = vmatprep.subr.bf16.mxu1 %v7526_v0 }
 0x59e   :  { %6469 = vmatpush3.bf16.msra.mxu1 %v6938_v26 }
 0x59f   :  { %6470 = vmatprep.subr.bf16.mxu1 %v7526_v0 }
 0x5a2   :  { %6471 = vmatpush3.bf16.msra.mxu1 %v6939_v27 }
 0x5a3   :  { %6472 = vmatprep.subr.bf16.mxu1 %v7526_v0 }
 0x5a6   :  { %6473 = vmatpush3.bf16.msra.mxu1 %v6940_v28  ;;  %v6948_v28 = vld [vmem:[#allocation2 + $0xc20] ss:$16 sps:$4 sm:$0xff]  }
 0x5a7   :  { %6474 = vmatprep.subr.bf16.mxu1 %v7526_v0 }
 0x5aa   :  { %6475 = vmatpush3.bf16.msra.mxu1 %v6941_v29  ;;  %v1805_v29 = vld [vmem:[#allocation4 + $0x22] ss:$0 sm:$0xff] }
 0x5ab   :  { %6480 = vmatprep.subr.bf16.mxu1 %v7526_v0 }
 0x660   :  { %v6302_v30 = vpop.f32.mrb[8].mxu1 }
 0x661   :  { %v6303_v32 = vpop.f32.mrb[9].mxu1 }
 0x662   :  { %v6304_v33 = vadd.f32 %v6303_v32, %v6302_v30  ;;  %v6305_v34 = vpop.f32.mrb[10].mxu1  ;;  %v6949_v32 = vld [vmem:[#allocation2 + $0xc40] ss:$16 sps:$4 sm:$0xff]  }
 0x663   :  { %v6306_v35 = vpop.f32.mrb[11].mxu1  ;;  %v6950_v34 = vld [vmem:[#allocation2 + $0xc60] ss:$16 sps:$4 sm:$0xff]  }
 0x664   :  { %v1540_v36 = vadd.f32 %v6304_v33, %v1408_v31  ;;  %v6951_v35 = vld [vmem:[#allocation2 + $0xc80] ss:$16 sps:$4 sm:$0xff]  }
 0x666   :  { %v1545_v37 = vmax.f32 %v1540_v36, 0.0  ;;  %v6952_v36 = vld [vmem:[#allocation2 + $0xca0] ss:$16 sps:$4 sm:$0xff]  }
 0x667   :  { %6537 = vmatpush3.bf16.msra.mxu0 %v6952_v36  ;;  %v7022_v36 = vld [vmem:[#allocation2 + $0xf00] ss:$16 sps:$4 sm:$0xff]  }
 0x668   :  { %v1546_v39 = vpack.c.bf16 %v1545_v37, %v1545_v37  ;;  %v6953_v37 = vld [vmem:[#allocation2 + $0xcc0] ss:$16 sps:$4 sm:$0xff]   ;;  %6538 = vmatprep.subr.bf16.mxu0 %v7526_v0 }
 0x66a   :  { %6477 = vmatmul.mubr.bf16.vlgmr.msra.gmra.mrb[12].mxu1 %v1546_v39 }
 0x66b   :  { %6481 = vmatpush3.bf16.msra.mxu1 %v6942_v38  ;;  %6488 = vmatprep.mubr.msk.bf16.mxu1 %vm7527_vm0, %v7526_v0  ;;  %v1858_v38 = vld [vmem:[#allocation4 + $0x23] ss:$0 sm:$0xff] }
 0x66c   :  { %6482 = vmatprep.subr.bf16.mxu1 %v7526_v0  ;;  %6539 = vmatpush3.bf16.msra.mxu0 %v6953_v37  ;;  %v7030_v37 = vld [vmem:[#allocation2 + $0xf24] ss:$16 sps:$4 sm:$0xff]  }
 0x66d   :  { %6540 = vmatprep.subr.bf16.mxu0 %v7526_v0 }
 0x66f   :  { %6483 = vmatpush3.bf16.msra.mxu1 %v6943_v40 }
 0x670   :  { %6484 = vmatprep.subr.bf16.mxu1 %v7526_v0 }
 0x673   :  { %6485 = vmatpush3.bf16.msra.mxu1 %v6944_v41 }
 0x674   :  { %6486 = vmatprep.subr.bf16.mxu1 %v7526_v0 }
 0x677   :  { %6487 = vmatpush3.bf16.msra.mxu1 %v6945_v42 }
 0x678   :  { %6492 = vmatprep.subr.bf16.mxu1 %v7526_v0 }
 0x73d   :  { %v1646_v46 = vpop.f32.mrb[12].mxu1 }
 0x73e   :  { %v1647_v47 = vadd.f32 %v1646_v46, %v1563_v44  ;;  %v6478_v48 = vpop.f32.mrb[13].mxu1 }
 0x73f   :  { %v1649_v49 = vpop.f32.mrb[14].mxu1 }
 0x740   :  { %v1652_v50 = vmax.f32 %v1647_v47, 0.0  ;;  %v6479_v51 = vpop.f32.mrb[15].mxu1 }
 0x742   :  { %v1653_v53 = vpack.c.bf16 %v1652_v50, %v1652_v50 }
 0x744   :  { %6489 = vmatmul.mubr.msk.bf16.vlgmr.msra.gmra.mrb[16].mxu1 %vm196_vm3, %v1653_v53  ;;  %v6955_v53 = vld [vmem:[#allocation2 + $0xd00] ss:$16 sps:$4 sm:$0xff]  }
 0x745   :  { %6493 = vmatpush3.bf16.msra.mxu1 %v6946_v52  ;;  %6496 = vmatprep.mubr.msk.bf16.mxu1 %vm7527_vm0, %v7526_v0  ;;  %v6954_v52 = vld [vmem:[#allocation2 + $0xce0] ss:$16 sps:$4 sm:$0xff]  }
 0x746   :  { %6494 = vmatprep.subr.bf16.mxu1 %v7526_v0  ;;  %6541 = vmatpush3.bf16.msra.mxu0 %v6954_v52 }
 0x747   :  { %6542 = vmatprep.subr.bf16.mxu0 %v7526_v0 }
 0x749   :  { %6495 = vmatpush3.bf16.msra.mxu1 %v6947_v54  ;;  %v6956_v54 = vld [vmem:[#allocation2 + $0xd20] ss:$16 sps:$4 sm:$0xff]  }
 0x74a   :  { %6500 = vmatprep.subr.bf16.mxu1 %v7526_v0  ;;  %6543 = vmatpush3.bf16.msra.mxu0 %v6955_v53 }
 0x817   :  { %v1724_v55 = vpop.f32.mrb[16].mxu1 }
 0x818   :  { %v1725_v56 = vadd.f32 %v1724_v55, %v1662_v57  ;;  %v6490_v62 = vpop.f32.mrb[17].mxu1  ;;  %v6958_v57 = vld [vmem:[#allocation2 + $0xd24] ss:$16 sps:$4 sm:$0xff]  }
 0x819   :  { %v1727_v63 = vpop.f32.mrb[18].mxu1  ;;  %v6961_v55 = vld [vmem:[#allocation2 + $0xd44] ss:$16 sps:$4 sm:$0xff]  }
 0x81a   :  { %v1730_v1 = vmax.f32 %v1725_v56, 0.0  ;;  %v6491_v2 = vpop.f32.mrb[19].mxu1  ;;  %v6959_v56 = vld [vmem:[#allocation2 + $0xd40] ss:$16 sps:$4 sm:$0xff]   ;;  %v6964_v62 = vld [vmem:[#allocation2 + $0xd64] ss:$16 sps:$4 sm:$0xff]  }
 0x81b   :  { %v6962_v63 = vld [vmem:[#allocation2 + $0xd60] ss:$16 sps:$4 sm:$0xff]   ;;  %v6970_v2 = vld [vmem:[#allocation2 + $0xda4] ss:$16 sps:$4 sm:$0xff]  }
 0x81c   :  { %v1731_v4 = vpack.c.bf16 %v1730_v1, %v1730_v1  ;;  %v6965_v1 = vld [vmem:[#allocation2 + $0xd80] ss:$16 sps:$4 sm:$0xff]  }
 0x81e   :  { %6497 = vmatmul.mubr.msk.bf16.vlgmr.msra.gmra.mrb[20].mxu1 %vm117_vm2, %v1731_v4  ;;  %v6968_v4 = vld [vmem:[#allocation2 + $0xda0] ss:$16 sps:$4 sm:$0xff]  }
 0x81f   :  { %6502 = vmatprep.mubr.msk.bf16.mxu1 %vm7527_vm0, %v7526_v0  ;;  %6501 = vmatpush3.bf16.msra.mxu1 %v1814_v6  ;;  %v6971_v6 = vld [vmem:[#allocation2 + $0xdc0] ss:$16 sps:$4 sm:$0xff]  }
 0x820   :  { %6506 = vmatprep.subr.bf16.mxu1 %v7526_v0 }
 0x826   :  { %6503 = vmatmul.mubr.msk.bf16.vlgmr.msra.gmra.mrb[24].mxu1 %vm1792_vm5, %v7630_v61  ;;  %v1857_v61 = vld [vmem:[#allocation2 + $0xbc0] sm:$0xf] }
 0x827   :  { %6508 = vmatprep.mubr.msk.bf16.mxu1 %vm7527_vm0, %v7526_v0  ;;  %v1863_v20 = vsel %vm1812_vm4, %v1857_v61, 0  ;;  %v6977_v61 = vld [vmem:[#allocation2 + $0xe00] ss:$16 sps:$4 sm:$0xff]  }
 0x828   :  { %6507 = vmatpush3.bf16.msra.mxu1 %v1863_v20  ;;  %v6980_v20 = vld [vmem:[#allocation2 + $0xe20] ss:$16 sps:$4 sm:$0xff]  }
 0x829   :  { %6512 = vmatprep.subr.bf16.mxu1 %v7526_v0 }
 0x8f1   :  { %v1786_v8 = vpop.f32.mrb[20].mxu1 }
 0x8f2   :  { %v1787_v9 = vadd.f32 %v1786_v8, %v1736_v7  ;;  %v6498_v10 = vpop.f32.mrb[21].mxu1  ;;  %v6976_v7 = vld [vmem:[#allocation2 + $0xde4] ss:$16 sps:$4 sm:$0xff]   ;;  %v6974_v8 = vld [vmem:[#allocation2 + $0xde0] ss:$16 sps:$4 sm:$0xff]  }
 0x8f3   :  { %v1789_v11 = vpop.f32.mrb[22].mxu1  ;;  %v2089_v10 = vld [vmem:[#allocation4 + $0x24] ss:$0 sm:$0xff] }
 0x8f4   :  { %v6499_v12 = vpop.f32.mrb[23].mxu1  ;;  %v1793_v13 = vsel %vm1792_vm5, %v1787_v9, -inf }
 0x8f5   :  { %1794 = vmax.xlane.f32.xlu0 %v1793_v13 }
 0x8f9   :  { %v1850_v21 = vpop.f32.mrb[24].mxu1 }
 0x8fa   :  { %v6504_v22 = vpop.f32.mrb[25].mxu1  ;;  %v1851_v31 = vadd.f32 %v1850_v21, %v1805_v29  ;;  %v6982_v21 = vld [vmem:[#allocation2 + $0xe24] ss:$16 sps:$4 sm:$0xff]  }
 0x8fb   :  { %v1853_v23 = vpop.f32.mrb[26].mxu1  ;;  %v6985_v22 = vld [vmem:[#allocation2 + $0xe2c] ss:$16 sps:$4 sm:$0xff]   ;;  %2732 = vmatprep.subr.bf16.mxu0 %v6982_v21  ;;  %v7006_v29 = vld [vmem:[#allocation2 + $0xea4] ss:$16 sps:$4 sm:$0xff]  }
 0x8fc   :  { %v6505_v24 = vpop.f32.mrb[27].mxu1  ;;  %v1910_v33 = vpack.c.bf16 %v1851_v31, %v1851_v31  ;;  %v6988_v23 = vld [vmem:[#allocation2 + $0xe44] ss:$16 sps:$4 sm:$0xff]   ;;  %v7051_v21 = vld [vmem:[#allocation2 + $0xf8c] ss:$16 sps:$4 sm:$0xff]  }
 0x8fd   :  { %v6986_v24 = vld [vmem:[#allocation2 + $0xe40] ss:$16 sps:$4 sm:$0xff]   ;;  %v7012_v31 = vld [vmem:[#allocation2 + $0xec4] ss:$16 sps:$4 sm:$0xff]  }
 0x982   :  { %v1795_v14 = vpop.xlane.xlu0 %1794 }
 0x983   :  { %v1796_v15 = vsub.f32 %v1787_v9, %v1795_v14 }
 0x985   :  { %v1797_v16 = vmul.f32 1.442695, %v1796_v15 }
 0x987   :  { %7463 = vpow2.f32 %v1797_v16 }
 0x991   :  { %v7464_v17 = vpop.eup %7463 }
 0x992   :  { %v1799_v18 = vsel %vm1792_vm5, %v7464_v17, 0.0 }
 0x993   :  { %1800 = vadd.xlane.f32.xlu0 %v1799_v18  ;;  %v6979_v18 = vld [vmem:[#allocation2 + $0xe04] ss:$16 sps:$4 sm:$0xff]  }
 0x9a9   :  { %3732 = vrot.lane.b32.xlu0 %v7583_v3, %s7531_s14 }
 0xa20   :  { %v1801_v25 = vpop.xlane.xlu0 %1800 }
 0xa21   :  { %7465 = vrcp.f32 %v1801_v25  ;;  %v6994_v25 = vld [vmem:[#allocation2 + $0xe64] ss:$16 sps:$4 sm:$0xff]  }
 0xa24   :  { %v3733_v3 = vpop.permute.xlu0 %3732 }
 0xa2b   :  { %v7466_v26 = vpop.eup %7465 }
 0xa2c   :  { %v1803_v27 = vmul.f32 %v7466_v26, %v7464_v17  ;;  %v6992_v26 = vld [vmem:[#allocation2 + $0xe60] ss:$16 sps:$4 sm:$0xff]  }
 0xa2e   :  { %v1856_v30 = vpack.c.bf16 %v1803_v27, %v1803_v27  ;;  %v7000_v27 = vld [vmem:[#allocation2 + $0xe84] ss:$16 sps:$4 sm:$0xff]  }
 0xa30   :  { %6509 = vmatmul.mubr.msk.bf16.vlgmr.msra.gmra.mrb[28].mxu1 %vm1792_vm5, %v1856_v30  ;;  %v7004_v30 = vld [vmem:[#allocation2 + $0xea0] ss:$16 sps:$4 sm:$0xff]  }
 0xa31   :  { %6513 = vmatpush3.bf16.msra.mxu1 %v6948_v28  ;;  %6516 = vmatprep.mubr.msk.bf16.mxu1 %vm7527_vm0, %v7526_v0  ;;  %v6998_v28 = vld [vmem:[#allocation2 + $0xe80] ss:$16 sps:$4 sm:$0xff]  }
 0xa32   :  { %6514 = vmatprep.subr.bf16.mxu1 %v7526_v0 }
 0xa35   :  { %6515 = vmatpush3.bf16.msra.mxu1 %v6949_v32  ;;  %v7010_v32 = vld [vmem:[#allocation2 + $0xec0] ss:$16 sps:$4 sm:$0xff]  }
 0xa36   :  { %6528 = vmatprep.subr.bf16.mxu1 %v7526_v0 }
 0xa38   :  { %6517 = vmatmul.mubr.msk.bf16.vlgmr.msra.gmra.mrb[32].mxu1 %vm117_vm2, %v1910_v33  ;;  %v7018_v33 = vld [vmem:[#allocation2 + $0xee4] ss:$16 sps:$4 sm:$0xff]  }
 0xa39   :  { %6529 = vmatpush3.bf16.msra.mxu1 %v6950_v34  ;;  %6532 = vmatprep.mubr.msk.bf16.mxu1 %vm7527_vm0, %v7526_v0  ;;  %v7016_v34 = vld [vmem:[#allocation2 + $0xee0] ss:$16 sps:$4 sm:$0xff]  }
 0xa3a   :  { %6530 = vmatprep.subr.bf16.mxu1 %v7526_v0 }
 0xa3d   :  { %6531 = vmatpush3.bf16.msra.mxu1 %v6951_v35  ;;  %v7024_v35 = vld [vmem:[#allocation2 + $0xf04] ss:$16 sps:$4 sm:$0xff]  }
 0xa3e   :  { %2280 = vmatprep.subr.bf16.mxu1 %v6958_v57 }
 0xb03   :  { %v1899_v39 = vpop.f32.mrb[28].mxu1 }
 0xb04   :  { %v1900_v40 = vadd.f32 %v1899_v39, %v1858_v38  ;;  %v6510_v41 = vpop.f32.mrb[29].mxu1  ;;  %v7028_v38 = vld [vmem:[#allocation2 + $0xf20] ss:$16 sps:$4 sm:$0xff]   ;;  %v7036_v39 = vld [vmem:[#allocation2 + $0xf44] ss:$16 sps:$4 sm:$0xff]  }
 0xb05   :  { %v1902_v42 = vpop.f32.mrb[30].mxu1  ;;  %v7042_v41 = vld [vmem:[#allocation2 + $0xf64] ss:$16 sps:$4 sm:$0xff]  }
 0xb06   :  { %v2028_v44 = vpack.c.bf16 %v1900_v40, %v1900_v40  ;;  %v6511_v46 = vpop.f32.mrb[31].mxu1  ;;  %v7034_v40 = vld [vmem:[#allocation2 + $0xf40] ss:$16 sps:$4 sm:$0xff]  }
 0xb07   :  { %v7040_v42 = vld [vmem:[#allocation2 + $0xf60] ss:$16 sps:$4 sm:$0xff]  }
 0xb08   :  { %6533 = vmatmul.mubr.msk.bf16.vlgmr.msra.gmra.mrb[36].mxu1 %vm117_vm2, %v2028_v44  ;;  %v7048_v44 = vld [vmem:[#allocation2 + $0xf84] ss:$16 sps:$4 sm:$0xff]   ;;  %v7046_v46 = vld [vmem:[#allocation2 + $0xf80] ss:$16 sps:$4 sm:$0xff]  }
 0xb09   :  { %2312 = vmatprep.mubr.bf16.mxu1 %v7530_v43  ;;  %2281 = vmatpush1.bf16.msra.mxu1 %v6956_v54 }
 0xb0a   :  { %2282 = vmatprep.subr.bf16.mxu1 %v6961_v55 }
 0xb0b   :  { %v1964_v47 = vpop.f32.mrb[32].mxu1 }
 0xb0c   :  { %v2023_v48 = vadd.f32 %v7642_v19, %v1964_v47  ;;  %v6518_v49 = vpop.f32.mrb[33].mxu1  ;;  %v6967_v19 = vld [vmem:[#allocation2 + $0xd84] ss:$16 sps:$4 sm:$0xff]  }
 0xb0d   :  { %v1967_v50 = vpop.f32.mrb[34].mxu1  ;;  %2283 = vmatpush1.bf16.msra.mxu1 %v6959_v56  ;;  %v7054_v47 = vld [vmem:[#allocation2 + $0xfa4] ss:$16 sps:$4 sm:$0xff]  }
 0xb0e   :  { %v6519_v51 = vpop.f32.mrb[35].mxu1  ;;  %2284 = vmatprep.subr.bf16.mxu1 %v6964_v62  ;;  %v7060_v49 = vld [vmem:[#allocation2 + $0xfc4] ss:$16 sps:$4 sm:$0xff]   ;;  %v7058_v50 = vld [vmem:[#allocation2 + $0xfc0] ss:$16 sps:$4 sm:$0xff]  }
 0xb0f   :  { %v2101_v51 = vld [vmem:[#allocation4 + $0x25] ss:$0 sm:$0xff]  ;;  %v6983_v62 = vld [vmem:[#allocation2 + $0xe28] ss:$16 sps:$4 sm:$0xff]  }
 0xb11   :  { %2285 = vmatpush1.bf16.msra.mxu1 %v6962_v63 }
 0xb12   :  { %2286 = vmatprep.subr.bf16.mxu1 %v6967_v19  ;;  %v6991_v19 = vld [vmem:[#allocation2 + $0xe4c] ss:$16 sps:$4 sm:$0xff]  }
 0xb15   :  { %2287 = vmatpush1.bf16.msra.mxu1 %v6965_v1  ;;  %v6989_v1 = vld [vmem:[#allocation2 + $0xe48] ss:$16 sps:$4 sm:$0xff]  }
 0xb16   :  { %2288 = vmatprep.subr.bf16.mxu1 %v6970_v2  ;;  %v6997_v2 = vld [vmem:[#allocation2 + $0xe6c] ss:$16 sps:$4 sm:$0xff]  }
 0xb19   :  { %2289 = vmatpush1.bf16.msra.mxu1 %v6968_v4  ;;  %v6995_v4 = vld [vmem:[#allocation2 + $0xe68] ss:$16 sps:$4 sm:$0xff]  }
 0xb1a   :  { %2290 = vmatprep.subr.bf16.mxu1 %v6973_v5  ;;  %v7003_v5 = vld [vmem:[#allocation2 + $0xe8c] ss:$16 sps:$4 sm:$0xff]  }
 0xb1d   :  { %2291 = vmatpush1.bf16.msra.mxu1 %v6971_v6  ;;  %v7001_v6 = vld [vmem:[#allocation2 + $0xe88] ss:$16 sps:$4 sm:$0xff]  }
 0xb1e   :  { %2292 = vmatprep.subr.bf16.mxu1 %v6976_v7  ;;  %v7009_v7 = vld [vmem:[#allocation2 + $0xeac] ss:$16 sps:$4 sm:$0xff]  }
 0xb21   :  { %2293 = vmatpush1.bf16.msra.mxu1 %v6974_v8  ;;  %v7007_v8 = vld [vmem:[#allocation2 + $0xea8] ss:$16 sps:$4 sm:$0xff]  }
 0xb22   :  { %2294 = vmatprep.subr.bf16.mxu1 %v6979_v18  ;;  %v7037_v18 = vld [vmem:[#allocation2 + $0xf48] ss:$16 sps:$4 sm:$0xff]  }
 0xb25   :  { %2295 = vmatpush1.bf16.msra.mxu1 %v6977_v61  ;;  %v7045_v61 = vld [vmem:[#allocation2 + $0xf6c] ss:$16 sps:$4 sm:$0xff]  }
 0xb26   :  { %2773 = vmatprep.subr.bf16.mxu1 %v6985_v22  ;;  %v7049_v22 = vld [vmem:[#allocation2 + $0xf88] ss:$16 sps:$4 sm:$0xff]  }
 0xbdb   :  { %v2082_v9 = vpop.f32.mrb[36].mxu1 }
 0xbdc   :  { %v2088_v11 = vadd.f32 %v2082_v9, %v2023_v48  ;;  %v6534_v12 = vpop.f32.mrb[37].mxu1  ;;  %v7052_v48 = vld [vmem:[#allocation2 + $0xfa0] ss:$16 sps:$4 sm:$0xff]   ;;  %v7015_v9 = vld [vmem:[#allocation2 + $0xecc] ss:$16 sps:$4 sm:$0xff]  }
 0xbdd   :  { %v2085_v13 = vpop.f32.mrb[38].mxu1  ;;  %v7019_v12 = vld [vmem:[#allocation2 + $0xee8] ss:$16 sps:$4 sm:$0xff]  }
 0xbde   :  { %v2090_v14 = vadd.f32 %v2089_v10, %v2088_v11  ;;  %v6535_v15 = vpop.f32.mrb[39].mxu1  ;;  %v7013_v10 = vld [vmem:[#allocation2 + $0xec8] ss:$16 sps:$4 sm:$0xff]   ;;  %v7021_v11 = vld [vmem:[#allocation2 + $0xeec] ss:$16 sps:$4 sm:$0xff]  }
 0xbdf   :  { %v7027_v13 = vld [vmem:[#allocation2 + $0xf0c] ss:$16 sps:$4 sm:$0xff]  }
 0xbe0   :  { %v2091_v16 = vmax.f32 %v2090_v14, 0.0  ;;  %v7025_v14 = vld [vmem:[#allocation2 + $0xf08] ss:$16 sps:$4 sm:$0xff]   ;;  %v7033_v15 = vld [vmem:[#allocation2 + $0xf2c] ss:$16 sps:$4 sm:$0xff]  }
 0xbe2   :  { %v2092_v17 = vpack.c.bf16 %v2091_v16, %v2091_v16  ;;  %v7031_v16 = vld [vmem:[#allocation2 + $0xf28] ss:$16 sps:$4 sm:$0xff]  }
 0xbe4   :  { %6545 = vmatmul.mubr.msk.bf16.vlgmr.msra.gmra.mrb[24].mxu0 %vm196_vm3, %v2092_v17  ;;  %v7039_v17 = vld [vmem:[#allocation2 + $0xf4c] ss:$16 sps:$4 sm:$0xff]  }
 0xbe5   :  { %2733 = vmatpush1.bf16.msra.mxu0 %v6980_v20  ;;  %v7043_v20 = vld [vmem:[#allocation2 + $0xf68] ss:$16 sps:$4 sm:$0xff]  }
 0xbe6   :  { %2734 = vmatprep.subr.bf16.mxu0 %v6988_v23  ;;  %v7057_v23 = vld [vmem:[#allocation2 + $0xfac] ss:$16 sps:$4 sm:$0xff]  }
 0xbe9   :  { %2735 = vmatpush1.bf16.msra.mxu0 %v6986_v24  ;;  %v7055_v24 = vld [vmem:[#allocation2 + $0xfa8] ss:$16 sps:$4 sm:$0xff]  }
 0xbea   :  { %2736 = vmatprep.subr.bf16.mxu0 %v6994_v25  ;;  %v7063_v25 = vld [vmem:[#allocation2 + $0xfcc] ss:$16 sps:$4 sm:$0xff]  }
 0xbed   :  { %2737 = vmatpush1.bf16.msra.mxu0 %v6992_v26  ;;  %v7061_v26 = vld [vmem:[#allocation2 + $0xfc8] ss:$16 sps:$4 sm:$0xff]  }
 0xbee   :  { %2738 = vmatprep.subr.bf16.mxu0 %v7000_v27  ;;  %v7066_v27 = vld [vmem:[#allocation2 + $0xfe4] ss:$16 sps:$4 sm:$0xff]  }
 0xbf1   :  { %2739 = vmatpush1.bf16.msra.mxu0 %v6998_v28  ;;  %v7069_v28 = vld [vmem:[#allocation2 + $0xfec] ss:$16 sps:$4 sm:$0xff]  }
 0xbf2   :  { %2740 = vmatprep.subr.bf16.mxu0 %v7006_v29  ;;  %v7064_v29 = vld [vmem:[#allocation2 + $0xfe0] ss:$16 sps:$4 sm:$0xff]  }
 0xbf5   :  { %2741 = vmatpush1.bf16.msra.mxu0 %v7004_v30  ;;  %v7067_v30 = vld [vmem:[#allocation2 + $0xfe8] ss:$16 sps:$4 sm:$0xff]  }
 0xbf6   :  { %2742 = vmatprep.subr.bf16.mxu0 %v7012_v31  ;;  %v7072_v31 = vld [vmem:[#allocation2 + $0x1004] ss:$16 sps:$4 sm:$0xff]  }
 0xbf9   :  { %2743 = vmatpush1.bf16.msra.mxu0 %v7010_v32  ;;  %v7075_v32 = vld [vmem:[#allocation2 + $0x100c] ss:$16 sps:$4 sm:$0xff]  }
 0xbfa   :  { %2744 = vmatprep.subr.bf16.mxu0 %v7018_v33  ;;  %v7070_v33 = vld [vmem:[#allocation2 + $0x1000] ss:$16 sps:$4 sm:$0xff]  }
 0xbfd   :  { %2745 = vmatpush1.bf16.msra.mxu0 %v7016_v34  ;;  %v7073_v34 = vld [vmem:[#allocation2 + $0x1008] ss:$16 sps:$4 sm:$0xff]  }
 0xbfe   :  { %2746 = vmatprep.subr.bf16.mxu0 %v7024_v35  ;;  %v7078_v35 = vld [vmem:[#allocation2 + $0x1024] ss:$16 sps:$4 sm:$0xff]  }
 0xc01   :  { %2747 = vmatpush1.bf16.msra.mxu0 %v7022_v36  ;;  %v2188_v36 = vld [vmem:[#allocation4 + $0x26] ss:$8 sm:$0x3] }
 0xc02   :  { %2748 = vmatprep.subr.bf16.mxu0 %v7030_v37  ;;  %v2193_v37 = vrot.slane %v2188_v36, %v7603_v58 }
 0xc05   :  { %2749 = vmatpush1.bf16.msra.mxu0 %v7028_v38  ;;  %v2197_v38 = vrot.slane %v2188_v36, %v7606_v60  ;;  %v7696_v36 = vld [vmem:[#allocation4 + $0x27] ss:$8 sm:$0xf] }
 0xc06   :  { %2750 = vmatprep.subr.bf16.mxu0 %v7036_v39 }
 0xc09   :  { %2751 = vmatpush1.bf16.msra.mxu0 %v7034_v40 }
 0xc0a   :  { %2752 = vmatprep.subr.bf16.mxu0 %v7042_v41 }
 0xc0d   :  { %2753 = vmatpush1.bf16.msra.mxu0 %v7040_v42 }
 0xc0e   :  { %2754 = vmatprep.subr.bf16.mxu0 %v7048_v44 }
 0xc11   :  { %2755 = vmatpush1.bf16.msra.mxu0 %v7046_v46 }
 0xc12   :  { %2756 = vmatprep.subr.bf16.mxu0 %v7054_v47 }
 0xc15   :  { %2757 = vmatpush1.bf16.msra.mxu0 %v7052_v48 }
 0xc16   :  { %2758 = vmatprep.subr.bf16.mxu0 %v7060_v49 }
 0xc19   :  { %2759 = vmatpush1.bf16.msra.mxu0 %v7058_v50  ;;  %v7076_v50 = vld [vmem:[#allocation2 + $0x1020] ss:$16 sps:$4 sm:$0xff]  }
 0xc1a   :  { %2760 = vmatprep.subr.bf16.mxu0 %v7066_v27  ;;  %v7175_v27 = vld [vmem:[#allocation2 + $0x1440] ss:$16 sps:$4 sm:$0xff]  }
 0xc1d   :  { %2761 = vmatpush1.bf16.msra.mxu0 %v7064_v29  ;;  %v7177_v29 = vld [vmem:[#allocation2 + $0x1460] ss:$16 sps:$4 sm:$0xff]  }
 0xc1e   :  { %2762 = vmatprep.subr.bf16.mxu0 %v7072_v31  ;;  %v7179_v31 = vld [vmem:[#allocation2 + $0x1480] ss:$16 sps:$4 sm:$0xff]  }
 0xc21   :  { %2763 = vmatpush1.bf16.msra.mxu0 %v7070_v33  ;;  %v7181_v33 = vld [vmem:[#allocation2 + $0x14a0] ss:$16 sps:$4 sm:$0xff]  }
 0xc22   :  { %3215 = vmatprep.subr.bf16.mxu0 %v7078_v35  ;;  %v7183_v35 = vld [vmem:[#allocation2 + $0x14c0] ss:$16 sps:$4 sm:$0xff]  }
 0xcb7   :  { %v2163_v52 = vpop.f32.mrb[24].mxu0 }
 0xcb8   :  { %v2164_v53 = vadd.f32 %v2163_v52, %v2101_v51  ;;  %v6546_v54 = vpop.f32.mrb[25].mxu0  ;;  %v7081_v52 = vld [vmem:[#allocation2 + $0x1044] ss:$16 sps:$4 sm:$0xff]  }
 0xcb9   :  { %v2166_v57 = vpop.f32.mrb[26].mxu0  ;;  %v7084_v54 = vld [vmem:[#allocation2 + $0x1064] ss:$16 sps:$4 sm:$0xff]  }
 0xcba   :  { %v2169_v55 = vmax.f32 %v2164_v53, 0.0  ;;  %v6547_v56 = vpop.f32.mrb[27].mxu0  ;;  %v7079_v53 = vld [vmem:[#allocation2 + $0x1040] ss:$16 sps:$4 sm:$0xff]  }
 0xcbb   :  { %v7082_v57 = vld [vmem:[#allocation2 + $0x1060] ss:$16 sps:$4 sm:$0xff]  }
 0xcbc   :  { %v2170_v63 = vpack.c.bf16 %v2169_v55, %v2169_v55  ;;  %v7087_v55 = vld [vmem:[#allocation2 + $0x1084] ss:$16 sps:$4 sm:$0xff]   ;;  %v7085_v56 = vld [vmem:[#allocation2 + $0x1080] ss:$16 sps:$4 sm:$0xff]  }
 0xcbe   :  { %2313 = vmatmul.mubr.bf16.vlgmr.msra.gmra.mrb[40].mxu1 %v2170_v63  ;;  %v7088_v63 = vld [vmem:[#allocation2 + $0x10a0] ss:$16 sps:$4 sm:$0xff]  }
 0xcbf   :  { %2774 = vmatpush1.bf16.msra.mxu1 %v6983_v62  ;;  %v7090_v62 = vld [vmem:[#allocation2 + $0x10a4] ss:$16 sps:$4 sm:$0xff]  }
 0xcc0   :  { %2775 = vmatprep.subr.bf16.mxu1 %v6991_v19  ;;  %v7093_v19 = vld [vmem:[#allocation2 + $0x10c4] ss:$16 sps:$4 sm:$0xff]  }
 0xcc3   :  { %2776 = vmatpush1.bf16.msra.mxu1 %v6989_v1  ;;  %v7091_v1 = vld [vmem:[#allocation2 + $0x10c0] ss:$16 sps:$4 sm:$0xff]  }
 0xcc4   :  { %2777 = vmatprep.subr.bf16.mxu1 %v6997_v2  ;;  %v7096_v2 = vld [vmem:[#allocation2 + $0x10e4] ss:$16 sps:$4 sm:$0xff]  }
 0xcc7   :  { %2778 = vmatpush1.bf16.msra.mxu1 %v6995_v4  ;;  %v7094_v4 = vld [vmem:[#allocation2 + $0x10e0] ss:$16 sps:$4 sm:$0xff]  }
 0xcc8   :  { %2779 = vmatprep.subr.bf16.mxu1 %v7003_v5  ;;  %v7099_v5 = vld [vmem:[#allocation2 + $0x1104] ss:$16 sps:$4 sm:$0xff]  }
 0xccb   :  { %2780 = vmatpush1.bf16.msra.mxu1 %v7001_v6  ;;  %v7097_v6 = vld [vmem:[#allocation2 + $0x1100] ss:$16 sps:$4 sm:$0xff]  }
 0xccc   :  { %2781 = vmatprep.subr.bf16.mxu1 %v7009_v7  ;;  %v7102_v7 = vld [vmem:[#allocation2 + $0x1124] ss:$16 sps:$4 sm:$0xff]  }
 0xccf   :  { %2782 = vmatpush1.bf16.msra.mxu1 %v7007_v8  ;;  %v7100_v8 = vld [vmem:[#allocation2 + $0x1120] ss:$16 sps:$4 sm:$0xff]  }
 0xcd0   :  { %2783 = vmatprep.subr.bf16.mxu1 %v7015_v9  ;;  %v7105_v9 = vld [vmem:[#allocation2 + $0x1144] ss:$16 sps:$4 sm:$0xff]  }
 0xcd3   :  { %2784 = vmatpush1.bf16.msra.mxu1 %v7013_v10  ;;  %v7103_v10 = vld [vmem:[#allocation2 + $0x1140] ss:$16 sps:$4 sm:$0xff]  }
 0xcd4   :  { %2785 = vmatprep.subr.bf16.mxu1 %v7021_v11  ;;  %v7108_v11 = vld [vmem:[#allocation2 + $0x1164] ss:$16 sps:$4 sm:$0xff]  }
 0xcd7   :  { %2786 = vmatpush1.bf16.msra.mxu1 %v7019_v12  ;;  %v7106_v12 = vld [vmem:[#allocation2 + $0x1160] ss:$16 sps:$4 sm:$0xff]  }
 0xcd8   :  { %2787 = vmatprep.subr.bf16.mxu1 %v7027_v13  ;;  %v7111_v13 = vld [vmem:[#allocation2 + $0x1184] ss:$16 sps:$4 sm:$0xff]  }
 0xcdb   :  { %2788 = vmatpush1.bf16.msra.mxu1 %v7025_v14  ;;  %v7109_v14 = vld [vmem:[#allocation2 + $0x1180] ss:$16 sps:$4 sm:$0xff]  }
 0xcdc   :  { %2789 = vmatprep.subr.bf16.mxu1 %v7033_v15  ;;  %v7114_v15 = vld [vmem:[#allocation2 + $0x11a4] ss:$16 sps:$4 sm:$0xff]  }
 0xcdf   :  { %2790 = vmatpush1.bf16.msra.mxu1 %v7031_v16  ;;  %v7112_v16 = vld [vmem:[#allocation2 + $0x11a0] ss:$16 sps:$4 sm:$0xff]  }
 0xce0   :  { %2791 = vmatprep.subr.bf16.mxu1 %v7039_v17  ;;  %v7117_v17 = vld [vmem:[#allocation2 + $0x11c4] ss:$16 sps:$4 sm:$0xff]  }
 0xce3   :  { %2792 = vmatpush1.bf16.msra.mxu1 %v7037_v18  ;;  %v7115_v18 = vld [vmem:[#allocation2 + $0x11c0] ss:$16 sps:$4 sm:$0xff]  }
 0xce4   :  { %2793 = vmatprep.subr.bf16.mxu1 %v7045_v61  ;;  %v7120_v61 = vld [vmem:[#allocation2 + $0x11e4] ss:$16 sps:$4 sm:$0xff]  }
 0xce7   :  { %2794 = vmatpush1.bf16.msra.mxu1 %v7043_v20  ;;  %v7118_v20 = vld [vmem:[#allocation2 + $0x11e0] ss:$16 sps:$4 sm:$0xff]  }
 0xce8   :  { %2795 = vmatprep.subr.bf16.mxu1 %v7051_v21  ;;  %v7123_v21 = vld [vmem:[#allocation2 + $0x1204] ss:$16 sps:$4 sm:$0xff]  }
 0xceb   :  { %2796 = vmatpush1.bf16.msra.mxu1 %v7049_v22  ;;  %v7121_v22 = vld [vmem:[#allocation2 + $0x1200] ss:$16 sps:$4 sm:$0xff]  }
 0xcec   :  { %2797 = vmatprep.subr.bf16.mxu1 %v7057_v23  ;;  %v7126_v23 = vld [vmem:[#allocation2 + $0x1224] ss:$16 sps:$4 sm:$0xff]  }
 0xcef   :  { %2798 = vmatpush1.bf16.msra.mxu1 %v7055_v24  ;;  %v7172_v24 = vld [vmem:[#allocation2 + $0x1520] ss:$16 sps:$4 sm:$0xff]  }
 0xcf0   :  { %2799 = vmatprep.subr.bf16.mxu1 %v7063_v25  ;;  %v7173_v25 = vld [vmem:[#allocation2 + $0x1420] ss:$16 sps:$4 sm:$0xff]  }
 0xcf3   :  { %2800 = vmatpush1.bf16.msra.mxu1 %v7061_v26  ;;  %v7174_v26 = vld [vmem:[#allocation2 + $0x1540] ss:$16 sps:$4 sm:$0xff]  }
 0xcf4   :  { %2801 = vmatprep.subr.bf16.mxu1 %v7069_v28  ;;  %v7176_v28 = vld [vmem:[#allocation2 + $0x1560] ss:$16 sps:$4 sm:$0xff]  }
 0xcf7   :  { %2802 = vmatpush1.bf16.msra.mxu1 %v7067_v30  ;;  %v7178_v30 = vld [vmem:[#allocation2 + $0x1580] ss:$16 sps:$4 sm:$0xff]  }
 0xcf8   :  { %2803 = vmatprep.subr.bf16.mxu1 %v7075_v32  ;;  %v7180_v32 = vld [vmem:[#allocation2 + $0x15a0] ss:$16 sps:$4 sm:$0xff]  }
 0xcfb   :  { %2804 = vmatpush1.bf16.msra.mxu1 %v7073_v34  ;;  %v7182_v34 = vld [vmem:[#allocation2 + $0x15c0] ss:$16 sps:$4 sm:$0xff]  }
 0xcfc   :  { %6343 = vmatprep.subr.bf16.mxu1 %v7172_v24  ;;  %v7168_v24 = vld [vmem:[#allocation2 + $0x13e4] ss:$16 sps:$4 sm:$0xff]  }
 0xd91   :  { %v2314_v39 = vpop.f32.mrb[40].mxu1 }
 0xd92   :  { %v2315_v40 = vadd.f32 %v2314_v39, %v2193_v37  ;;  %v2316_v41 = vpop.f32.mrb[41].mxu1  ;;  %v2395_v37 = vrot.slane %v7696_v36, %v7603_v58  ;;  %v2407_v39 = vrot.slane %v7696_v36, %v7613_v59 }
 0xd93   :  { %v2317_v42 = vadd.f32 %v2316_v41, %v2197_v38  ;;  %v2318_v44 = vpop.f32.mrb[42].mxu1  ;;  %v2399_v38 = vrot.slane %v7696_v36, %v7606_v60 }
 0xd94   :  { %v2321_v46 = vmax.f32 %v2315_v40, 0.0  ;;  %v2319_v47 = vpop.f32.mrb[43].mxu1 }
 0xd95   :  { %v2322_v48 = vmax.f32 %v2317_v42, 0.0 }
 0xd96   :  { %v2323_v51 = vpack.c.bf16 %v2321_v46, %v2321_v46 }
 0xd97   :  { %v2324_v49 = vpack.c.bf16 %v2322_v48, %v2322_v48 }
 0xd99   :  { %2764 = vmatprep.mubr.bf16.mxu0 %v2324_v49  ;;  %2805 = vmatprep.mubr.bf16.mxu1 %v2324_v49 }
 0xd9a   :  { %2765 = vmatmul.mubr.bf16.vlgmr.msra.gmra.mrb[28].mxu0 %v2323_v51  ;;  %2806 = vmatmul.mubr.bf16.vlgmr.msra.gmra.mrb[44].mxu1 %v2323_v51 }
 0xd9b   :  { %3216 = vmatpush1.bf16.msra.mxu0 %v7076_v50  ;;  %6344 = vmatpush3.bf16.msra.mxu1 %v7173_v25  ;;  %v7166_v25 = vld [vmem:[#allocation2 + $0x13e0] ss:$16 sps:$4 sm:$0xff]  }
 0xd9c   :  { %3217 = vmatprep.subr.bf16.mxu0 %v7081_v52  ;;  %6345 = vmatprep.subr.bf16.mxu1 %v7174_v26  ;;  %v2403_v26 = vrot.slane %v7696_v36, %v7624_v45 }
 0xd9f   :  { %3218 = vmatpush1.bf16.msra.mxu0 %v7079_v53  ;;  %6346 = vmatpush3.bf16.msra.mxu1 %v7175_v27  ;;  %v7171_v27 = vld [vmem:[#allocation2 + $0x1404] ss:$16 sps:$4 sm:$0xff]  }
 0xda0   :  { %3219 = vmatprep.subr.bf16.mxu0 %v7084_v54  ;;  %6347 = vmatprep.subr.bf16.mxu1 %v7176_v28  ;;  %v7124_v54 = vld [vmem:[#allocation2 + $0x1220] ss:$16 sps:$4 sm:$0xff]  }
 0xda1   :  { %v7169_v28 = vld [vmem:[#allocation2 + $0x1400] ss:$16 sps:$4 sm:$0xff]  }
 0xda3   :  { %3220 = vmatpush1.bf16.msra.mxu0 %v7082_v57  ;;  %6348 = vmatpush3.bf16.msra.mxu1 %v7177_v29 }
 0xda4   :  { %3221 = vmatprep.subr.bf16.mxu0 %v7087_v55  ;;  %6349 = vmatprep.subr.bf16.mxu1 %v7178_v30  ;;  %v7129_v55 = vld [vmem:[#allocation2 + $0x1244] ss:$16 sps:$4 sm:$0xff]  }
 0xda7   :  { %3222 = vmatpush1.bf16.msra.mxu0 %v7085_v56  ;;  %6350 = vmatpush3.bf16.msra.mxu1 %v7179_v31  ;;  %v7184_v31 = vld [vmem:[#allocation2 + $0x15e0] ss:$16 sps:$4 sm:$0xff]  }
 0xda8   :  { %3223 = vmatprep.subr.bf16.mxu0 %v7090_v62  ;;  %6351 = vmatprep.subr.bf16.mxu1 %v7180_v32  ;;  %v7127_v62 = vld [vmem:[#allocation2 + $0x1240] ss:$16 sps:$4 sm:$0xff]  }
 0xda9   :  { %v7185_v32 = vld [vmem:[#allocation2 + $0x14e0] ss:$16 sps:$4 sm:$0xff]  }
 0xdab   :  { %3224 = vmatpush1.bf16.msra.mxu0 %v7088_v63  ;;  %6352 = vmatpush3.bf16.msra.mxu1 %v7181_v33  ;;  %v7132_v63 = vld [vmem:[#allocation2 + $0x1264] ss:$16 sps:$4 sm:$0xff]   ;;  %v7186_v33 = vld [vmem:[#allocation2 + $0x1600] ss:$16 sps:$4 sm:$0xff]  }
 0xdac   :  { %3225 = vmatprep.subr.bf16.mxu0 %v7093_v19  ;;  %6353 = vmatprep.subr.bf16.mxu1 %v7182_v34  ;;  %v7130_v19 = vld [vmem:[#allocation2 + $0x1260] ss:$16 sps:$4 sm:$0xff]  }
 0xdad   :  { %v7187_v34 = vld [vmem:[#allocation2 + $0x1500] ss:$16 sps:$4 sm:$0xff]  }
 0xdaf   :  { %3226 = vmatpush1.bf16.msra.mxu0 %v7091_v1  ;;  %6354 = vmatpush3.bf16.msra.mxu1 %v7183_v35  ;;  %v7135_v1 = vld [vmem:[#allocation2 + $0x1284] ss:$16 sps:$4 sm:$0xff]   ;;  %v2883_v35 = vld [vmem:[#allocation4 + $0x40] ss:$8 sm:$0x3] }
 0xdb0   :  { %3227 = vmatprep.subr.bf16.mxu0 %v7096_v2  ;;  %v7133_v2 = vld [vmem:[#allocation2 + $0x1280] ss:$16 sps:$4 sm:$0xff]   ;;  %6355 = vmatprep.subr.bf16.mxu1 %v7184_v31  ;;  %v2888_v36 = vrot.slane %v2883_v35, %v7603_v58 }
 0xdb3   :  { %3228 = vmatpush1.bf16.msra.mxu0 %v7094_v4  ;;  %v7138_v4 = vld [vmem:[#allocation2 + $0x12a4] ss:$16 sps:$4 sm:$0xff]   ;;  %6356 = vmatpush3.bf16.msra.mxu1 %v7185_v32 }
 0xdb4   :  { %3229 = vmatprep.subr.bf16.mxu0 %v7099_v5  ;;  %v7136_v5 = vld [vmem:[#allocation2 + $0x12a0] ss:$16 sps:$4 sm:$0xff]   ;;  %6357 = vmatprep.subr.bf16.mxu1 %v7186_v33 }
 0xdb7   :  { %3230 = vmatpush1.bf16.msra.mxu0 %v7097_v6  ;;  %v7141_v6 = vld [vmem:[#allocation2 + $0x12c4] ss:$16 sps:$4 sm:$0xff]   ;;  %6358 = vmatpush3.bf16.msra.mxu1 %v7187_v34 }
 0xdb8   :  { %3231 = vmatprep.subr.bf16.mxu0 %v7102_v7  ;;  %v7139_v7 = vld [vmem:[#allocation2 + $0x12c0] ss:$16 sps:$4 sm:$0xff]   ;;  %6548 = vmatprep.subr.bf16.mxu1 %v7526_v0  ;;  %v7206_v34 = vld [vmem:[#allocation2 + $0x1804] ss:$16 sps:$4 sm:$0xff]  }
 0xdbb   :  { %3232 = vmatpush1.bf16.msra.mxu0 %v7100_v8  ;;  %v7144_v8 = vld [vmem:[#allocation2 + $0x12e4] ss:$16 sps:$4 sm:$0xff]  }
 0xdbc   :  { %3233 = vmatprep.subr.bf16.mxu0 %v7105_v9  ;;  %v7142_v9 = vld [vmem:[#allocation2 + $0x12e0] ss:$16 sps:$4 sm:$0xff]  }
 0xdbf   :  { %3234 = vmatpush1.bf16.msra.mxu0 %v7103_v10  ;;  %v7147_v10 = vld [vmem:[#allocation2 + $0x1304] ss:$16 sps:$4 sm:$0xff]  }
 0xdc0   :  { %3235 = vmatprep.subr.bf16.mxu0 %v7108_v11  ;;  %v7145_v11 = vld [vmem:[#allocation2 + $0x1300] ss:$16 sps:$4 sm:$0xff]  }
 0xdc3   :  { %3236 = vmatpush1.bf16.msra.mxu0 %v7106_v12  ;;  %v7150_v12 = vld [vmem:[#allocation2 + $0x1324] ss:$16 sps:$4 sm:$0xff]  }
 0xdc4   :  { %3237 = vmatprep.subr.bf16.mxu0 %v7111_v13  ;;  %v7148_v13 = vld [vmem:[#allocation2 + $0x1320] ss:$16 sps:$4 sm:$0xff]  }
 0xdc7   :  { %3238 = vmatpush1.bf16.msra.mxu0 %v7109_v14  ;;  %v7153_v14 = vld [vmem:[#allocation2 + $0x1344] ss:$16 sps:$4 sm:$0xff]  }
 0xdc8   :  { %3239 = vmatprep.subr.bf16.mxu0 %v7114_v15  ;;  %v7151_v15 = vld [vmem:[#allocation2 + $0x1340] ss:$16 sps:$4 sm:$0xff]  }
 0xdcb   :  { %3240 = vmatpush1.bf16.msra.mxu0 %v7112_v16  ;;  %v7156_v16 = vld [vmem:[#allocation2 + $0x1364] ss:$16 sps:$4 sm:$0xff]  }
 0xdcc   :  { %3241 = vmatprep.subr.bf16.mxu0 %v7117_v17  ;;  %v7154_v17 = vld [vmem:[#allocation2 + $0x1360] ss:$16 sps:$4 sm:$0xff]  }
 0xdcf   :  { %3242 = vmatpush1.bf16.msra.mxu0 %v7115_v18  ;;  %v7159_v18 = vld [vmem:[#allocation2 + $0x1384] ss:$16 sps:$4 sm:$0xff]  }
 0xdd0   :  { %3243 = vmatprep.subr.bf16.mxu0 %v7120_v61  ;;  %v7157_v61 = vld [vmem:[#allocation2 + $0x1380] ss:$16 sps:$4 sm:$0xff]  }
 0xdd3   :  { %3244 = vmatpush1.bf16.msra.mxu0 %v7118_v20  ;;  %v7162_v20 = vld [vmem:[#allocation2 + $0x13a4] ss:$16 sps:$4 sm:$0xff]  }
 0xdd4   :  { %3245 = vmatprep.subr.bf16.mxu0 %v7123_v21  ;;  %v7160_v21 = vld [vmem:[#allocation2 + $0x13a0] ss:$16 sps:$4 sm:$0xff]  }
 0xdd7   :  { %3246 = vmatpush1.bf16.msra.mxu0 %v7121_v22  ;;  %v7165_v22 = vld [vmem:[#allocation2 + $0x13c4] ss:$16 sps:$4 sm:$0xff]  }
 0xdd8   :  { %3256 = vmatprep.subr.bf16.mxu0 %v7126_v23  ;;  %v7163_v23 = vld [vmem:[#allocation2 + $0x13c0] ss:$16 sps:$4 sm:$0xff]  }
 0xe6d   :  { %v2766_v40 = vpop.f32.mrb[28].mxu0  ;;  %v7704_v41 = vpop.f32.mrb[44].mxu1 }
 0xe6e   :  { %v2767_v42 = vadd.f32 %v2766_v40, %v2395_v37  ;;  %v2768_v44 = vpop.f32.mrb[29].mxu0  ;;  %v2809_v46 = vpop.f32.mrb[45].mxu1  ;;  %v2808_v29 = vadd.f32 %v7704_v41, %v2403_v26  ;;  %v2892_v37 = vrot.slane %v2883_v35, %v7606_v60  ;;  %v3587_v26 = vld [vmem:[#allocation4 + $0x43] ss:$0 sm:$0xff] }
 0xe6f   :  { %v2769_v47 = vadd.f32 %v2768_v44, %v2399_v38  ;;  %v2810_v48 = vadd.f32 %v2809_v46, %v2407_v39  ;;  %v2770_v49 = vpop.f32.mrb[30].mxu0  ;;  %v2811_v50 = vpop.f32.mrb[46].mxu1  ;;  %v7204_v35 = vld [vmem:[#allocation2 + $0x1800] ss:$16 sps:$4 sm:$0xff]  }
 0xe70   :  { %v2771_v51 = vpop.f32.mrb[31].mxu0  ;;  %v2812_v52 = vpop.f32.mrb[47].mxu1  ;;  %v2814_v57 = vpack.c.bf16 %v2767_v42, %v2767_v42  ;;  %v2816_v30 = vpack.c.bf16 %v2808_v29, %v2808_v29  ;;  %v7188_v49 = vld [vmem:[#allocation2 + $0x1620] ss:$16 sps:$4 sm:$0xff]  }
 0xe71   :  { %v2815_v53 = vpack.c.bf16 %v2769_v47, %v2769_v47  ;;  %v2817_v56 = vpack.c.bf16 %v2810_v48, %v2810_v48  ;;  %v7189_v51 = vld [vmem:[#allocation2 + $0x1640] ss:$16 sps:$4 sm:$0xff]  }
 0xe72   :  { %v7190_v52 = vld [vmem:[#allocation2 + $0x1660] ss:$16 sps:$4 sm:$0xff]  }
 0xe73   :  { %3247 = vmatprep.mubr.bf16.mxu0 %v2815_v53  ;;  %v7191_v53 = vld [vmem:[#allocation2 + $0x1680] ss:$16 sps:$4 sm:$0xff]  }
 0xe74   :  { %3248 = vmatmul.mubr.bf16.vlgmr.msra.gmra.mrb[32].mxu0 %v2814_v57  ;;  %v7193_v57 = vld [vmem:[#allocation2 + $0x16c0] ss:$16 sps:$4 sm:$0xff]  }
 0xe75   :  { %3257 = vmatpush1.bf16.msra.mxu0 %v7124_v54  ;;  %3288 = vmatprep.mubr.bf16.mxu0 %v2817_v56  ;;  %v7192_v54 = vld [vmem:[#allocation2 + $0x16a0] ss:$16 sps:$4 sm:$0xff]  }
 0xe76   :  { %3258 = vmatprep.subr.bf16.mxu0 %v7129_v55  ;;  %v7194_v55 = vld [vmem:[#allocation2 + $0x16e0] ss:$16 sps:$4 sm:$0xff]  }
 0xe77   :  { %v7195_v56 = vld [vmem:[#allocation2 + $0x1700] ss:$16 sps:$4 sm:$0xff]  }
 0xe79   :  { %3259 = vmatpush1.bf16.msra.mxu0 %v7127_v62 }
 0xe7a   :  { %3260 = vmatprep.subr.bf16.mxu0 %v7132_v63  ;;  %v3333_v63 = vld [vmem:[#allocation4 + $0x41] ss:$0 sm:$0xff] }
 0xe7d   :  { %3261 = vmatpush1.bf16.msra.mxu0 %v7130_v19 }
 0xe7e   :  { %3262 = vmatprep.subr.bf16.mxu0 %v7135_v1 }
 0xe81   :  { %3263 = vmatpush1.bf16.msra.mxu0 %v7133_v2 }
 0xe82   :  { %3264 = vmatprep.subr.bf16.mxu0 %v7138_v4 }
 0xe85   :  { %3265 = vmatpush1.bf16.msra.mxu0 %v7136_v5 }
 0xe86   :  { %3266 = vmatprep.subr.bf16.mxu0 %v7141_v6 }
 0xe89   :  { %3267 = vmatpush1.bf16.msra.mxu0 %v7139_v7  ;;  %v7196_v7 = vld [vmem:[#allocation2 + $0x1720] ss:$16 sps:$4 sm:$0xff]  }
 0xe8a   :  { %3268 = vmatprep.subr.bf16.mxu0 %v7144_v8 }
 0xe8d   :  { %3269 = vmatpush1.bf16.msra.mxu0 %v7142_v9  ;;  %v7197_v9 = vld [vmem:[#allocation2 + $0x1740] ss:$16 sps:$4 sm:$0xff]  }
 0xe8e   :  { %3270 = vmatprep.subr.bf16.mxu0 %v7147_v10  ;;  %v7198_v10 = vld [vmem:[#allocation2 + $0x1760] ss:$16 sps:$4 sm:$0xff]  }
 0xe91   :  { %3271 = vmatpush1.bf16.msra.mxu0 %v7145_v11  ;;  %v7199_v11 = vld [vmem:[#allocation2 + $0x1780] ss:$16 sps:$4 sm:$0xff]  }
 0xe92   :  { %3272 = vmatprep.subr.bf16.mxu0 %v7150_v12  ;;  %v3488_v12 = vld [vmem:[#allocation4 + $0x42] ss:$0 sm:$0xff] }
 0xe95   :  { %3273 = vmatpush1.bf16.msra.mxu0 %v7148_v13 }
 0xe96   :  { %3274 = vmatprep.subr.bf16.mxu0 %v7153_v14 }
 0xe99   :  { %3275 = vmatpush1.bf16.msra.mxu0 %v7151_v15 }
 0xe9a   :  { %3276 = vmatprep.subr.bf16.mxu0 %v7156_v16 }
 0xe9d   :  { %3277 = vmatpush1.bf16.msra.mxu0 %v7154_v17 }
 0xe9e   :  { %3278 = vmatprep.subr.bf16.mxu0 %v7159_v18 }
 0xea1   :  { %3279 = vmatpush1.bf16.msra.mxu0 %v7157_v61  ;;  %v7200_v61 = vld [vmem:[#allocation2 + $0x17a0] ss:$16 sps:$4 sm:$0xff]  }
 0xea2   :  { %3280 = vmatprep.subr.bf16.mxu0 %v7162_v20 }
 0xea5   :  { %3281 = vmatpush1.bf16.msra.mxu0 %v7160_v21  ;;  %v7201_v21 = vld [vmem:[#allocation2 + $0x17c0] ss:$16 sps:$4 sm:$0xff]  }
 0xea6   :  { %3282 = vmatprep.subr.bf16.mxu0 %v7165_v22  ;;  %v3718_v22 = vld [vmem:[#allocation2 + $0x17e0] sm:$0x11] }
 0xea9   :  { %3283 = vmatpush1.bf16.msra.mxu0 %v7163_v23  ;;  %v6080_v23 = vcombine.high %v3718_v22, %v3718_v22 }
 0xeaa   :  { %3284 = vmatprep.subr.bf16.mxu0 %v7168_v24  ;;  %v6079_v24 = vcombine.low %v3718_v22, %v3718_v22  ;;  %v7215_v22 = vld [vmem:[#allocation2 + $0x1900] ss:$16 sps:$4 sm:$0xff]  }
 0xead   :  { %3285 = vmatpush1.bf16.msra.mxu0 %v7166_v25  ;;  %v3745_v25 = vsel %vm3743_vm6, %v6079_v24, 0  ;;  %v7217_v24 = vld [vmem:[#allocation2 + $0x1940] ss:$16 sps:$4 sm:$0xff]  }
 0xeae   :  { %3286 = vmatprep.subr.bf16.mxu0 %v7171_v27 }
 0xeb1   :  { %3287 = vmatpush1.bf16.msra.mxu0 %v7169_v28 }
 0xeb2   :  { %6596 = vmatprep.subr.bf16.mxu0 %v7526_v0 }
 0xeb4   :  { %3289 = vmatmul.mubr.bf16.vlgmr.msra.gmra.mrb[32].mxu0 %v2816_v30 }
 0xeb5   :  { %6600 = vmatprep.mubr.msk.bf16.mxu0 %vm7527_vm0, %v7526_v0 }
 0xf87   :  { %v3290_v38 = vpop.f32.mrb[32].mxu0 }
 0xf88   :  { %v6664_v39 = vadd.f32 %v3290_v38, %v2888_v36  ;;  %v3292_v40 = vpop.f32.mrb[33].mxu0  ;;  %v3794_v36 = vld [vmem:[#allocation2 + $0x1820] sm:$0x77]  ;;  %v7532_v38 = vmov 65535  }
 0xf89   :  { %v6665_v41 = vadd.f32 %v3292_v40, %v2892_v37  ;;  %v3294_v42 = vpop.f32.mrb[34].mxu0  ;;  %v6086_v37 = vcombine.high %v3794_v36, %v3794_v36  ;;  %v6085_v40 = vcombine.low %v3794_v36, %v3794_v36  ;;  %v7235_v36 = vld [vmem:[#allocation2 + $0x1a00] ss:$16 sps:$4 sm:$0xff]  }
 0xf8a   :  { %v3297_v44 = vmax.f32 %v6664_v39, 0.0  ;;  %v3295_v46 = vpop.f32.mrb[35].mxu0  ;;  %v3829_v39 = vsel %vm3827_vm8, 4294967295, %v7532_v38  ;;  %v3998_v38 = vld [vmem:[#allocation4 + $0x47] ss:$0 sm:$0xff] }
 0xf8b   :  { %v3298_v47 = vmax.f32 %v6665_v41, 0.0  ;;  %v3830_v41 = vsel %vm3828_vm9, %v3829_v39, 0  ;;  %v7209_v46 = vld [vmem:[#allocation2 + $0x1840] ss:$16 sps:$4 sm:$0xff]  }
 0xf8c   :  { %v3299_v50 = vpack.c.bf16 %v3297_v44, %v3297_v44  ;;  %v3835_v42 = vand.u32 %v6086_v37, %v3830_v41  ;;  %v3832_v44 = vand.u32 %v6085_v40, %v3830_v41  ;;  %6597 = vmatpush3.bf16.msra.mxu0 %v7209_v46 }
 0xf8d   :  { %v3300_v48 = vpack.c.bf16 %v3298_v47, %v3298_v47  ;;  %6598 = vmatprep.subr.bf16.mxu0 %v7526_v0  ;;  %v7210_v47 = vld [vmem:[#allocation2 + $0x1860] ss:$16 sps:$4 sm:$0xff]  }
 0xf8f   :  { %3462 = vmatprep.mubr.bf16.mxu1 %v3300_v48  ;;  %v3661_v48 = vld [vmem:[#allocation4 + $0x44] ss:$0 sm:$0xff] }
 0xf90   :  { %3463 = vmatmul.mubr.bf16.vlgmr.msra.gmra.mrb[48].mxu1 %v3299_v50  ;;  %6599 = vmatpush3.bf16.msra.mxu0 %v7210_v47 }
 0xf91   :  { %6549 = vmatpush3.bf16.msra.mxu1 %v7188_v49  ;;  %6564 = vmatprep.mubr.msk.bf16.mxu1 %vm7527_vm0, %v7526_v0 }
 0xf92   :  { %6550 = vmatprep.subr.bf16.mxu1 %v7526_v0 }
 0xf95   :  { %6551 = vmatpush3.bf16.msra.mxu1 %v7189_v51 }
 0xf96   :  { %6552 = vmatprep.subr.bf16.mxu1 %v7526_v0 }
 0xf99   :  { %6553 = vmatpush3.bf16.msra.mxu1 %v7190_v52 }
 0xf9a   :  { %6554 = vmatprep.subr.bf16.mxu1 %v7526_v0 }
 0xf9d   :  { %6555 = vmatpush3.bf16.msra.mxu1 %v7191_v53 }
 0xf9e   :  { %6556 = vmatprep.subr.bf16.mxu1 %v7526_v0 }
 0xfa1   :  { %6557 = vmatpush3.bf16.msra.mxu1 %v7192_v54 }
 0xfa2   :  { %6558 = vmatprep.subr.bf16.mxu1 %v7526_v0 }
 0xfa5   :  { %6559 = vmatpush3.bf16.msra.mxu1 %v7193_v57  ;;  %v3720_v57 = vld [vmem:[#allocation4 + $0x45] ss:$8 sm:$0x3] }
 0xfa6   :  { %6560 = vmatprep.subr.bf16.mxu1 %v7526_v0 }
 0xfa9   :  { %6561 = vmatpush3.bf16.msra.mxu1 %v7194_v55  ;;  %v7211_v55 = vld [vmem:[#allocation2 + $0x1880] ss:$16 sps:$4 sm:$0xff]  }
 0xfaa   :  { %6562 = vmatprep.subr.bf16.mxu1 %v7526_v0 }
 0xfad   :  { %6563 = vmatpush3.bf16.msra.mxu1 %v7195_v56 }
 0xfae   :  { %6568 = vmatprep.subr.bf16.mxu1 %v7526_v0 }
0x1063   :  { %v6359_v62 = vpop.f32.mrb[48].mxu1 }
0x1064   :  { %v6360_v19 = vpop.f32.mrb[49].mxu1 }
0x1065   :  { %v6361_v1 = vadd.f32 %v6360_v19, %v6359_v62  ;;  %v6362_v2 = vpop.f32.mrb[50].mxu1  ;;  %v3725_v62 = vrot.slane %v3720_v57, %v7603_v58 }
0x1066   :  { %v6363_v4 = vpop.f32.mrb[51].mxu1 }
0x1067   :  { %v3465_v5 = vadd.f32 %v6361_v1, %v3333_v63  ;;  %v3729_v63 = vrot.slane %v3720_v57, %v7606_v60  ;;  %v7255_v57 = vld [vmem:[#allocation2 + $0x1a84] ss:$16 sps:$4 sm:$0xff]  }
0x1069   :  { %v3470_v6 = vmax.f32 %v3465_v5, 0.0 }
0x106b   :  { %v3471_v8 = vpack.c.bf16 %v3470_v6, %v3470_v6 }
0x106d   :  { %6565 = vmatmul.mubr.bf16.vlgmr.msra.gmra.mrb[52].mxu1 %v3471_v8  ;;  %v7212_v8 = vld [vmem:[#allocation2 + $0x18a0] ss:$16 sps:$4 sm:$0xff]  }
0x106e   :  { %6569 = vmatpush3.bf16.msra.mxu1 %v7196_v7  ;;  %6576 = vmatprep.mubr.msk.bf16.mxu1 %vm7527_vm0, %v7526_v0 }
0x106f   :  { %6570 = vmatprep.subr.bf16.mxu1 %v7526_v0 }
0x1072   :  { %6571 = vmatpush3.bf16.msra.mxu1 %v7197_v9  ;;  %v3796_v9 = vld [vmem:[#allocation4 + $0x46] ss:$8 sm:$0x3] }
0x1073   :  { %6572 = vmatprep.subr.bf16.mxu1 %v7526_v0 }
0x1076   :  { %6573 = vmatpush3.bf16.msra.mxu1 %v7198_v10  ;;  %v3805_v10 = vrot.slane %v3796_v9, %v7606_v60  ;;  %v7291_v9 = vld [vmem:[#allocation2 + $0x1b44] ss:$16 sps:$4 sm:$0xff]  }
0x1077   :  { %6574 = vmatprep.subr.bf16.mxu1 %v7526_v0 }
0x107a   :  { %6575 = vmatpush3.bf16.msra.mxu1 %v7199_v11 }
0x107b   :  { %6580 = vmatprep.subr.bf16.mxu1 %v7526_v0 }
0x1140   :  { %v3571_v13 = vpop.f32.mrb[52].mxu1 }
0x1141   :  { %v3572_v14 = vadd.f32 %v3571_v13, %v3488_v12  ;;  %v6566_v15 = vpop.f32.mrb[53].mxu1 }
0x1142   :  { %v3574_v16 = vpop.f32.mrb[54].mxu1 }
0x1143   :  { %v3577_v17 = vmax.f32 %v3572_v14, 0.0  ;;  %v6567_v18 = vpop.f32.mrb[55].mxu1  ;;  %v7213_v16 = vld [vmem:[#allocation2 + $0x18c0] ss:$16 sps:$4 sm:$0xff]  }
0x1145   :  { %v3578_v20 = vpack.c.bf16 %v3577_v17, %v3577_v17 }
0x1147   :  { %6577 = vmatmul.mubr.msk.bf16.vlgmr.msra.gmra.mrb[56].mxu1 %vm196_vm3, %v3578_v20 }
0x1148   :  { %6581 = vmatpush3.bf16.msra.mxu1 %v7200_v61  ;;  %6584 = vmatprep.mubr.msk.bf16.mxu1 %vm7527_vm0, %v7526_v0 }
0x1149   :  { %6582 = vmatprep.subr.bf16.mxu1 %v7526_v0 }
0x114c   :  { %6583 = vmatpush3.bf16.msra.mxu1 %v7201_v21 }
0x114d   :  { %6081 = vmatprep.subr.msk.bf16.mxu1 %vm3743_vm6, %v6080_v23  ;;  %v7216_v23 = vld [vmem:[#allocation2 + $0x1920] ss:$16 sps:$4 sm:$0xff]  }
0x121a   :  { %v3649_v27 = vpop.f32.mrb[56].mxu1 }
0x121b   :  { %v3650_v28 = vadd.f32 %v3649_v27, %v3587_v26  ;;  %v6578_v29 = vpop.f32.mrb[57].mxu1  ;;  %v7222_v26 = vld [vmem:[#allocation2 + $0x1964] ss:$16 sps:$4 sm:$0xff]   ;;  %v7220_v27 = vld [vmem:[#allocation2 + $0x1960] ss:$16 sps:$4 sm:$0xff]  }
0x121c   :  { %v3652_v30 = vpop.f32.mrb[58].mxu1  ;;  %v7223_v29 = vld [vmem:[#allocation2 + $0x1980] ss:$16 sps:$4 sm:$0xff]  }
0x121d   :  { %v3655_v31 = vmax.f32 %v3650_v28, 0.0  ;;  %v6579_v32 = vpop.f32.mrb[59].mxu1  ;;  %v7225_v28 = vld [vmem:[#allocation2 + $0x1984] ss:$16 sps:$4 sm:$0xff]  }
0x121e   :  { %v7228_v30 = vld [vmem:[#allocation2 + $0x19a4] ss:$16 sps:$4 sm:$0xff]  }
0x121f   :  { %v3656_v33 = vpack.c.bf16 %v3655_v31, %v3655_v31  ;;  %v7226_v31 = vld [vmem:[#allocation2 + $0x19a0] ss:$16 sps:$4 sm:$0xff]   ;;  %v7231_v32 = vld [vmem:[#allocation2 + $0x19c4] ss:$16 sps:$4 sm:$0xff]  }
0x1221   :  { %6585 = vmatmul.mubr.msk.bf16.vlgmr.msra.gmra.mrb[60].mxu1 %vm117_vm2, %v3656_v33  ;;  %v7229_v33 = vld [vmem:[#allocation2 + $0x19c0] ss:$16 sps:$4 sm:$0xff]  }
0x1222   :  { %3751 = vmatpush1.bf16.msra.mxu1 %v3745_v25  ;;  %3782 = vmatprep.mubr.bf16.mxu1 %v7530_v43  ;;  %v7219_v25 = vld [vmem:[#allocation2 + $0x1944] ss:$16 sps:$4 sm:$0xff]  }
0x1223   :  { %3837 = vmatprep.subr.bf16.mxu1 %v7206_v34  ;;  %4189 = vmatprep.subr.bf16.mxu0 %v7219_v25  ;;  %v7234_v34 = vld [vmem:[#allocation2 + $0x19e4] ss:$16 sps:$4 sm:$0xff]  }
0x1229   :  { %6082 = vmatmul.mubr.msk.bf16.vlgmr.msra.gmra.mrb[64].mxu1 %vm3739_vm7, %v3733_v3  ;;  %v7232_v3 = vld [vmem:[#allocation2 + $0x19e0] ss:$16 sps:$4 sm:$0xff]  }
0x122a   :  { %3838 = vmatpush1.bf16.msra.mxu1 %v7204_v35  ;;  %3869 = vmatprep.mubr.bf16.mxu1 %v7530_v43  ;;  %v7237_v35 = vld [vmem:[#allocation2 + $0x1a04] ss:$16 sps:$4 sm:$0xff]  }
0x122b   :  { %3839 = vmatprep.subr.bf16.mxu1 %v3835_v42 }
0x122e   :  { %3840 = vmatpush1.bf16.msra.mxu1 %v3832_v44 }
0x122f   :  { %6588 = vmatprep.subr.bf16.mxu1 %v7526_v0 }
0x12f4   :  { %v3711_v49 = vpop.f32.mrb[60].mxu1 }
0x12f5   :  { %v3712_v50 = vadd.f32 %v3711_v49, %v3661_v48  ;;  %v6586_v51 = vpop.f32.mrb[61].mxu1  ;;  %v7240_v48 = vld [vmem:[#allocation2 + $0x1a24] ss:$16 sps:$4 sm:$0xff]   ;;  %v7238_v49 = vld [vmem:[#allocation2 + $0x1a20] ss:$16 sps:$4 sm:$0xff]  }
0x12f6   :  { %v3714_v52 = vpop.f32.mrb[62].mxu1  ;;  %v7243_v51 = vld [vmem:[#allocation2 + $0x1a44] ss:$16 sps:$4 sm:$0xff]  }
0x12f7   :  { %v3717_v53 = vmax.f32 %v3712_v50, 0.0  ;;  %v6587_v54 = vpop.f32.mrb[63].mxu1  ;;  %v7241_v50 = vld [vmem:[#allocation2 + $0x1a40] ss:$16 sps:$4 sm:$0xff]   ;;  %v7246_v52 = vld [vmem:[#allocation2 + $0x1a4c] ss:$16 sps:$4 sm:$0xff]  }
0x12f8   :  { %v7247_v54 = vld [vmem:[#allocation2 + $0x1a60] ss:$16 sps:$4 sm:$0xff]  }
0x12f9   :  { %v3791_v56 = vpack.c.bf16 %v3717_v53, %v3717_v53  ;;  %v7249_v53 = vld [vmem:[#allocation2 + $0x1a64] ss:$16 sps:$4 sm:$0xff]  }
0x12fb   :  { %6087 = vmatmul.mubr.msk.bf16.vlgmr.msra.gmra.mrb[68].mxu1 %vm3823_vm10, %v3791_v56  ;;  %v7261_v56 = vld [vmem:[#allocation2 + $0x1aa4] ss:$16 sps:$4 sm:$0xff]  }
0x12fc   :  { %v3784_v19 = vpop.f32.mrb[64].mxu1  ;;  %6589 = vmatpush3.bf16.msra.mxu1 %v7211_v55  ;;  %6592 = vmatprep.mubr.msk.bf16.mxu1 %vm7527_vm0, %v7526_v0  ;;  %v7253_v55 = vld [vmem:[#allocation2 + $0x1a80] ss:$16 sps:$4 sm:$0xff]  }
0x12fd   :  { %v7745_v1 = vadd.f32 %v3784_v19, %v3725_v62  ;;  %v3786_v2 = vpop.f32.mrb[65].mxu1  ;;  %6590 = vmatprep.subr.bf16.mxu1 %v7526_v0  ;;  %v7259_v62 = vld [vmem:[#allocation2 + $0x1aa0] ss:$16 sps:$4 sm:$0xff]  }
0x12fe   :  { %v3787_v4 = vadd.f32 %v3786_v2, %v3729_v63  ;;  %v3788_v5 = vpop.f32.mrb[66].mxu1  ;;  %v7267_v63 = vld [vmem:[#allocation2 + $0x1ac4] ss:$16 sps:$4 sm:$0xff]   ;;  %v7265_v19 = vld [vmem:[#allocation2 + $0x1ac0] ss:$16 sps:$4 sm:$0xff]  }
0x12ff   :  { %v3789_v6 = vpop.f32.mrb[67].mxu1  ;;  %v7273_v2 = vld [vmem:[#allocation2 + $0x1ae4] ss:$16 sps:$4 sm:$0xff]  }
0x1300   :  { %v3878_v7 = vpack.c.bf16 %v3787_v4, %v3787_v4  ;;  %6591 = vmatpush3.bf16.msra.mxu1 %v7212_v8  ;;  %v7271_v4 = vld [vmem:[#allocation2 + $0x1ae0] ss:$16 sps:$4 sm:$0xff]   ;;  %v7279_v5 = vld [vmem:[#allocation2 + $0x1b04] ss:$16 sps:$4 sm:$0xff]  }
0x1301   :  { %6604 = vmatprep.subr.bf16.mxu1 %v7526_v0  ;;  %v7277_v6 = vld [vmem:[#allocation2 + $0x1b00] ss:$16 sps:$4 sm:$0xff]  }
0x1302   :  { %6601 = vmatmul.mubr.msk.bf16.vlgmr.msra.gmra.mrb[36].mxu0 %vm117_vm2, %v3878_v7  ;;  %v7285_v7 = vld [vmem:[#allocation2 + $0x1b24] ss:$16 sps:$4 sm:$0xff]   ;;  %v7283_v8 = vld [vmem:[#allocation2 + $0x1b20] ss:$16 sps:$4 sm:$0xff]  }
0x1303   :  { %4221 = vmatprep.mubr.bf16.mxu0 %v7530_v43  ;;  %v7214_v43 = vld [vmem:[#allocation2 + $0x18e0] ss:$16 sps:$4 sm:$0xff]   ;;  %4190 = vmatpush1.bf16.msra.mxu0 %v7217_v24 }
0x1304   :  { %4191 = vmatprep.subr.bf16.mxu0 %v7222_v26 }
0x1307   :  { %4192 = vmatpush1.bf16.msra.mxu0 %v7220_v27 }
0x1308   :  { %4193 = vmatprep.subr.bf16.mxu0 %v7225_v28  ;;  %v7244_v28 = vld [vmem:[#allocation2 + $0x1a48] ss:$16 sps:$4 sm:$0xff]  }
0x130b   :  { %4194 = vmatpush1.bf16.msra.mxu0 %v7223_v29 }
0x130c   :  { %4195 = vmatprep.subr.bf16.mxu0 %v7228_v30  ;;  %v7252_v30 = vld [vmem:[#allocation2 + $0x1a6c] ss:$16 sps:$4 sm:$0xff]  }
0x130f   :  { %4196 = vmatpush1.bf16.msra.mxu0 %v7226_v31  ;;  %v7250_v31 = vld [vmem:[#allocation2 + $0x1a68] ss:$16 sps:$4 sm:$0xff]  }
0x1310   :  { %4197 = vmatprep.subr.bf16.mxu0 %v7231_v32  ;;  %v7258_v32 = vld [vmem:[#allocation2 + $0x1a8c] ss:$16 sps:$4 sm:$0xff]  }
0x1313   :  { %4198 = vmatpush1.bf16.msra.mxu0 %v7229_v33  ;;  %v7256_v33 = vld [vmem:[#allocation2 + $0x1a88] ss:$16 sps:$4 sm:$0xff]  }
0x1314   :  { %4199 = vmatprep.subr.bf16.mxu0 %v7234_v34  ;;  %v7264_v34 = vld [vmem:[#allocation2 + $0x1aac] ss:$16 sps:$4 sm:$0xff]  }
0x1317   :  { %4200 = vmatpush1.bf16.msra.mxu0 %v7232_v3  ;;  %v7262_v3 = vld [vmem:[#allocation2 + $0x1aa8] ss:$16 sps:$4 sm:$0xff]  }
0x1318   :  { %4201 = vmatprep.subr.bf16.mxu0 %v7237_v35  ;;  %v7270_v35 = vld [vmem:[#allocation2 + $0x1acc] ss:$16 sps:$4 sm:$0xff]  }
0x131b   :  { %4202 = vmatpush1.bf16.msra.mxu0 %v7235_v36  ;;  %v7268_v36 = vld [vmem:[#allocation2 + $0x1ac8] ss:$16 sps:$4 sm:$0xff]  }
0x131c   :  { %4203 = vmatprep.subr.bf16.mxu0 %v7240_v48  ;;  %v7298_v48 = vld [vmem:[#allocation2 + $0x1b68] ss:$16 sps:$4 sm:$0xff]  }
0x131f   :  { %4204 = vmatpush1.bf16.msra.mxu0 %v7238_v49  ;;  %v7306_v49 = vld [vmem:[#allocation2 + $0x1b8c] ss:$16 sps:$4 sm:$0xff]  }
0x1320   :  { %4682 = vmatprep.subr.bf16.mxu0 %v7246_v52  ;;  %v7310_v52 = vld [vmem:[#allocation2 + $0x1ba8] ss:$16 sps:$4 sm:$0xff]  }
0x13ce   :  { %v7752_v11 = vpop.f32.mrb[68].mxu1 }
0x13cf   :  { %v3873_v12 = vpop.f32.mrb[69].mxu1 }
0x13d0   :  { %v3874_v13 = vadd.f32 %v3873_v12, %v3805_v10  ;;  %v3875_v14 = vpop.f32.mrb[70].mxu1  ;;  %v7289_v10 = vld [vmem:[#allocation2 + $0x1b40] ss:$16 sps:$4 sm:$0xff]   ;;  %v7297_v12 = vld [vmem:[#allocation2 + $0x1b64] ss:$16 sps:$4 sm:$0xff]  }
0x13d1   :  { %v3876_v15 = vpop.f32.mrb[71].mxu1  ;;  %v7303_v14 = vld [vmem:[#allocation2 + $0x1b84] ss:$16 sps:$4 sm:$0xff]  }
0x13d2   :  { %v3883_v17 = vpack.c.bf16 %v3874_v13, %v3874_v13  ;;  %v7295_v13 = vld [vmem:[#allocation2 + $0x1b60] ss:$16 sps:$4 sm:$0xff]  }
0x13d3   :  { %v7301_v15 = vld [vmem:[#allocation2 + $0x1b80] ss:$16 sps:$4 sm:$0xff]  }
0x13d4   :  { %6593 = vmatmul.mubr.msk.bf16.vlgmr.msra.gmra.mrb[72].mxu1 %vm117_vm2, %v3883_v17  ;;  %v7307_v17 = vld [vmem:[#allocation2 + $0x1ba0] ss:$16 sps:$4 sm:$0xff]  }
0x13d5   :  { %v3992_v18 = vpop.f32.mrb[36].mxu0  ;;  %6605 = vmatpush3.bf16.msra.mxu1 %v7213_v16  ;;  %6612 = vmatprep.mubr.msk.bf16.mxu1 %vm7527_vm0, %v7526_v0  ;;  %v7309_v16 = vld [vmem:[#allocation2 + $0x1ba4] ss:$16 sps:$4 sm:$0xff]  }
0x13d6   :  { %v6602_v61 = vpop.f32.mrb[37].mxu0  ;;  %6606 = vmatprep.subr.bf16.mxu1 %v7526_v0 }
0x13d7   :  { %v3995_v20 = vpop.f32.mrb[38].mxu0  ;;  %v7321_v61 = vld [vmem:[#allocation2 + $0x1be4] ss:$16 sps:$4 sm:$0xff]  }
0x13d8   :  { %v6603_v21 = vpop.f32.mrb[39].mxu0  ;;  %v7319_v20 = vld [vmem:[#allocation2 + $0x1be0] ss:$16 sps:$4 sm:$0xff]  }
0x13d9   :  { %6607 = vmatpush3.bf16.msra.mxu1 %v7214_v43  ;;  %v7313_v43 = vld [vmem:[#allocation2 + $0x1bc0] ss:$16 sps:$4 sm:$0xff]  }
0x13da   :  { %6608 = vmatprep.subr.bf16.mxu1 %v7526_v0  ;;  %v4010_v21 = vld [vmem:[#allocation4 + $0x60] ss:$0 sm:$0xff] }
0x13dd   :  { %6609 = vmatpush3.bf16.msra.mxu1 %v7215_v22 }
0x13de   :  { %6610 = vmatprep.subr.bf16.mxu1 %v7526_v0 }
0x13e1   :  { %6611 = vmatpush3.bf16.msra.mxu1 %v7216_v23 }
0x13e2   :  { %4641 = vmatprep.subr.bf16.mxu1 %v7243_v51  ;;  %v7312_v51 = vld [vmem:[#allocation2 + $0x1bac] ss:$16 sps:$4 sm:$0xff]  }
0x14a7   :  { %v3937_v37 = vpop.f32.mrb[72].mxu1 }
0x14a8   :  { %v3993_v39 = vadd.f32 %v3992_v18, %v3937_v37  ;;  %v6594_v40 = vpop.f32.mrb[73].mxu1  ;;  %v7315_v18 = vld [vmem:[#allocation2 + $0x1bc4] ss:$16 sps:$4 sm:$0xff]   ;;  %v7276_v37 = vld [vmem:[#allocation2 + $0x1aec] ss:$16 sps:$4 sm:$0xff]  }
0x14a9   :  { %v3940_v41 = vpop.f32.mrb[74].mxu1  ;;  %v7280_v40 = vld [vmem:[#allocation2 + $0x1b08] ss:$16 sps:$4 sm:$0xff]  }
0x14aa   :  { %v3999_v42 = vadd.f32 %v3998_v38, %v3993_v39  ;;  %v6595_v44 = vpop.f32.mrb[75].mxu1  ;;  %v7274_v38 = vld [vmem:[#allocation2 + $0x1ae8] ss:$16 sps:$4 sm:$0xff]   ;;  %v7282_v39 = vld [vmem:[#allocation2 + $0x1b0c] ss:$16 sps:$4 sm:$0xff]  }
0x14ab   :  { %v7288_v41 = vld [vmem:[#allocation2 + $0x1b2c] ss:$16 sps:$4 sm:$0xff]  }
0x14ac   :  { %v4000_v46 = vmax.f32 %v3999_v42, 0.0  ;;  %v7286_v42 = vld [vmem:[#allocation2 + $0x1b28] ss:$16 sps:$4 sm:$0xff]   ;;  %v7294_v44 = vld [vmem:[#allocation2 + $0x1b4c] ss:$16 sps:$4 sm:$0xff]  }
0x14ae   :  { %v4001_v47 = vpack.c.bf16 %v4000_v46, %v4000_v46  ;;  %v7292_v46 = vld [vmem:[#allocation2 + $0x1b48] ss:$16 sps:$4 sm:$0xff]  }
0x14b0   :  { %6613 = vmatmul.mubr.msk.bf16.vlgmr.msra.gmra.mrb[76].mxu1 %vm196_vm3, %v4001_v47  ;;  %v7300_v47 = vld [vmem:[#allocation2 + $0x1b6c] ss:$16 sps:$4 sm:$0xff]  }
0x14b1   :  { %4642 = vmatpush1.bf16.msra.mxu1 %v7241_v50  ;;  %v7304_v50 = vld [vmem:[#allocation2 + $0x1b88] ss:$16 sps:$4 sm:$0xff]  }
0x14b2   :  { %4643 = vmatprep.subr.bf16.mxu1 %v7249_v53  ;;  %v7318_v53 = vld [vmem:[#allocation2 + $0x1bcc] ss:$16 sps:$4 sm:$0xff]  }
0x14b5   :  { %4644 = vmatpush1.bf16.msra.mxu1 %v7247_v54  ;;  %v7316_v54 = vld [vmem:[#allocation2 + $0x1bc8] ss:$16 sps:$4 sm:$0xff]  }
0x14b6   :  { %4645 = vmatprep.subr.bf16.mxu1 %v7255_v57  ;;  %v7324_v57 = vld [vmem:[#allocation2 + $0x1bec] ss:$16 sps:$4 sm:$0xff]  }
0x14b9   :  { %4646 = vmatpush1.bf16.msra.mxu1 %v7253_v55  ;;  %v7322_v55 = vld [vmem:[#allocation2 + $0x1be8] ss:$16 sps:$4 sm:$0xff]  }
0x14ba   :  { %4647 = vmatprep.subr.bf16.mxu1 %v7261_v56  ;;  %v7327_v56 = vld [vmem:[#allocation2 + $0x1c04] ss:$16 sps:$4 sm:$0xff]  }
0x14bd   :  { %4648 = vmatpush1.bf16.msra.mxu1 %v7259_v62  ;;  %v7330_v62 = vld [vmem:[#allocation2 + $0x1c0c] ss:$16 sps:$4 sm:$0xff]  }
0x14be   :  { %4649 = vmatprep.subr.bf16.mxu1 %v7267_v63  ;;  %v7325_v63 = vld [vmem:[#allocation2 + $0x1c00] ss:$16 sps:$4 sm:$0xff]  }
0x14c1   :  { %4650 = vmatpush1.bf16.msra.mxu1 %v7265_v19  ;;  %v7328_v19 = vld [vmem:[#allocation2 + $0x1c08] ss:$16 sps:$4 sm:$0xff]  }
0x14c2   :  { %4651 = vmatprep.subr.bf16.mxu1 %v7273_v2  ;;  %v7333_v2 = vld [vmem:[#allocation2 + $0x1c24] ss:$16 sps:$4 sm:$0xff]  }
0x14c5   :  { %4652 = vmatpush1.bf16.msra.mxu1 %v7271_v4  ;;  %v7336_v4 = vld [vmem:[#allocation2 + $0x1c2c] ss:$16 sps:$4 sm:$0xff]  }
0x14c6   :  { %4653 = vmatprep.subr.bf16.mxu1 %v7279_v5  ;;  %v7331_v5 = vld [vmem:[#allocation2 + $0x1c20] ss:$16 sps:$4 sm:$0xff]  }
0x14c9   :  { %4654 = vmatpush1.bf16.msra.mxu1 %v7277_v6  ;;  %v7334_v6 = vld [vmem:[#allocation2 + $0x1c28] ss:$16 sps:$4 sm:$0xff]  }
0x14ca   :  { %4655 = vmatprep.subr.bf16.mxu1 %v7285_v7  ;;  %v7339_v7 = vld [vmem:[#allocation2 + $0x1c44] ss:$16 sps:$4 sm:$0xff]  }
0x14cd   :  { %4656 = vmatpush1.bf16.msra.mxu1 %v7283_v8  ;;  %v4097_v8 = vld [vmem:[#allocation4 + $0x61] ss:$8 sm:$0x3] }
0x14ce   :  { %4657 = vmatprep.subr.bf16.mxu1 %v7291_v9  ;;  %v4102_v9 = vrot.slane %v4097_v8, %v7603_v58 }
0x14d1   :  { %4658 = vmatpush1.bf16.msra.mxu1 %v7289_v10  ;;  %v4106_v10 = vrot.slane %v4097_v8, %v7606_v60  ;;  %v7763_v8 = vld [vmem:[#allocation4 + $0x62] ss:$8 sm:$0xf] }
0x14d2   :  { %4659 = vmatprep.subr.bf16.mxu1 %v7297_v12 }
0x14d5   :  { %4660 = vmatpush1.bf16.msra.mxu1 %v7295_v13 }
0x14d6   :  { %4661 = vmatprep.subr.bf16.mxu1 %v7303_v14 }
0x14d9   :  { %4662 = vmatpush1.bf16.msra.mxu1 %v7301_v15 }
0x14da   :  { %4663 = vmatprep.subr.bf16.mxu1 %v7309_v16 }
0x14dd   :  { %4664 = vmatpush1.bf16.msra.mxu1 %v7307_v17 }
0x14de   :  { %4665 = vmatprep.subr.bf16.mxu1 %v7315_v18 }
0x14e1   :  { %4666 = vmatpush1.bf16.msra.mxu1 %v7313_v43 }
0x14e2   :  { %4667 = vmatprep.subr.bf16.mxu1 %v7321_v61 }
0x14e5   :  { %4668 = vmatpush1.bf16.msra.mxu1 %v7319_v20  ;;  %v7337_v20 = vld [vmem:[#allocation2 + $0x1c40] ss:$16 sps:$4 sm:$0xff]  }
0x14e6   :  { %4669 = vmatprep.subr.bf16.mxu1 %v7327_v56  ;;  %v7436_v56 = vld [vmem:[#allocation2 + $0x2060] ss:$16 sps:$4 sm:$0xff]  }
0x14e9   :  { %4670 = vmatpush1.bf16.msra.mxu1 %v7325_v63  ;;  %v7438_v63 = vld [vmem:[#allocation2 + $0x2080] ss:$16 sps:$4 sm:$0xff]  }
0x14ea   :  { %4671 = vmatprep.subr.bf16.mxu1 %v7333_v2  ;;  %v7440_v2 = vld [vmem:[#allocation2 + $0x20a0] ss:$16 sps:$4 sm:$0xff]  }
0x14ed   :  { %4672 = vmatpush1.bf16.msra.mxu1 %v7331_v5  ;;  %v7442_v5 = vld [vmem:[#allocation2 + $0x20c0] ss:$16 sps:$4 sm:$0xff]  }
0x14ee   :  { %5128 = vmatprep.subr.bf16.mxu1 %v7339_v7  ;;  %v7444_v7 = vld [vmem:[#allocation2 + $0x20e0] ss:$16 sps:$4 sm:$0xff]  }
0x1583   :  { %v4072_v22 = vpop.f32.mrb[76].mxu1 }
0x1584   :  { %v4073_v23 = vadd.f32 %v4072_v22, %v4010_v21  ;;  %v6614_v24 = vpop.f32.mrb[77].mxu1  ;;  %v7342_v22 = vld [vmem:[#allocation2 + $0x1c64] ss:$16 sps:$4 sm:$0xff]  }
0x1585   :  { %v4075_v25 = vpop.f32.mrb[78].mxu1  ;;  %v7345_v24 = vld [vmem:[#allocation2 + $0x1c84] ss:$16 sps:$4 sm:$0xff]  }
0x1586   :  { %v4078_v26 = vmax.f32 %v4073_v23, 0.0  ;;  %v6615_v27 = vpop.f32.mrb[79].mxu1  ;;  %v7340_v23 = vld [vmem:[#allocation2 + $0x1c60] ss:$16 sps:$4 sm:$0xff]  }
0x1587   :  { %v7343_v25 = vld [vmem:[#allocation2 + $0x1c80] ss:$16 sps:$4 sm:$0xff]  }
0x1588   :  { %v4079_v29 = vpack.c.bf16 %v4078_v26, %v4078_v26  ;;  %v7348_v26 = vld [vmem:[#allocation2 + $0x1ca4] ss:$16 sps:$4 sm:$0xff]   ;;  %v7346_v27 = vld [vmem:[#allocation2 + $0x1ca0] ss:$16 sps:$4 sm:$0xff]  }
0x158a   :  { %4222 = vmatmul.mubr.bf16.vlgmr.msra.gmra.mrb[40].mxu0 %v4079_v29  ;;  %v7349_v29 = vld [vmem:[#allocation2 + $0x1cc0] ss:$16 sps:$4 sm:$0xff]  }
0x158b   :  { %4683 = vmatpush1.bf16.msra.mxu0 %v7244_v28  ;;  %v7351_v28 = vld [vmem:[#allocation2 + $0x1cc4] ss:$16 sps:$4 sm:$0xff]  }
0x158c   :  { %4684 = vmatprep.subr.bf16.mxu0 %v7252_v30  ;;  %v7354_v30 = vld [vmem:[#allocation2 + $0x1ce4] ss:$16 sps:$4 sm:$0xff]  }
0x158f   :  { %4685 = vmatpush1.bf16.msra.mxu0 %v7250_v31  ;;  %v7352_v31 = vld [vmem:[#allocation2 + $0x1ce0] ss:$16 sps:$4 sm:$0xff]  }
0x1590   :  { %4686 = vmatprep.subr.bf16.mxu0 %v7258_v32  ;;  %v7357_v32 = vld [vmem:[#allocation2 + $0x1d04] ss:$16 sps:$4 sm:$0xff]  }
0x1593   :  { %4687 = vmatpush1.bf16.msra.mxu0 %v7256_v33  ;;  %v7355_v33 = vld [vmem:[#allocation2 + $0x1d00] ss:$16 sps:$4 sm:$0xff]  }
0x1594   :  { %4688 = vmatprep.subr.bf16.mxu0 %v7264_v34  ;;  %v7360_v34 = vld [vmem:[#allocation2 + $0x1d24] ss:$16 sps:$4 sm:$0xff]  }
0x1597   :  { %4689 = vmatpush1.bf16.msra.mxu0 %v7262_v3  ;;  %v7358_v3 = vld [vmem:[#allocation2 + $0x1d20] ss:$16 sps:$4 sm:$0xff]  }
0x1598   :  { %4690 = vmatprep.subr.bf16.mxu0 %v7270_v35  ;;  %v7363_v35 = vld [vmem:[#allocation2 + $0x1d44] ss:$16 sps:$4 sm:$0xff]  }
0x159b   :  { %4691 = vmatpush1.bf16.msra.mxu0 %v7268_v36  ;;  %v7361_v36 = vld [vmem:[#allocation2 + $0x1d40] ss:$16 sps:$4 sm:$0xff]  }
0x159c   :  { %4692 = vmatprep.subr.bf16.mxu0 %v7276_v37  ;;  %v7366_v37 = vld [vmem:[#allocation2 + $0x1d64] ss:$16 sps:$4 sm:$0xff]  }
0x159f   :  { %4693 = vmatpush1.bf16.msra.mxu0 %v7274_v38  ;;  %v7364_v38 = vld [vmem:[#allocation2 + $0x1d60] ss:$16 sps:$4 sm:$0xff]  }
0x15a0   :  { %4694 = vmatprep.subr.bf16.mxu0 %v7282_v39  ;;  %v7369_v39 = vld [vmem:[#allocation2 + $0x1d84] ss:$16 sps:$4 sm:$0xff]  }
0x15a3   :  { %4695 = vmatpush1.bf16.msra.mxu0 %v7280_v40  ;;  %v7367_v40 = vld [vmem:[#allocation2 + $0x1d80] ss:$16 sps:$4 sm:$0xff]  }
0x15a4   :  { %4696 = vmatprep.subr.bf16.mxu0 %v7288_v41  ;;  %v7372_v41 = vld [vmem:[#allocation2 + $0x1da4] ss:$16 sps:$4 sm:$0xff]  }
0x15a7   :  { %4697 = vmatpush1.bf16.msra.mxu0 %v7286_v42  ;;  %v7370_v42 = vld [vmem:[#allocation2 + $0x1da0] ss:$16 sps:$4 sm:$0xff]  }
0x15a8   :  { %4698 = vmatprep.subr.bf16.mxu0 %v7294_v44  ;;  %v7375_v44 = vld [vmem:[#allocation2 + $0x1dc4] ss:$16 sps:$4 sm:$0xff]  }
0x15ab   :  { %4699 = vmatpush1.bf16.msra.mxu0 %v7292_v46  ;;  %v7373_v46 = vld [vmem:[#allocation2 + $0x1dc0] ss:$16 sps:$4 sm:$0xff]  }
0x15ac   :  { %4700 = vmatprep.subr.bf16.mxu0 %v7300_v47  ;;  %v7378_v47 = vld [vmem:[#allocation2 + $0x1de4] ss:$16 sps:$4 sm:$0xff]  }
0x15af   :  { %4701 = vmatpush1.bf16.msra.mxu0 %v7298_v48  ;;  %v7376_v48 = vld [vmem:[#allocation2 + $0x1de0] ss:$16 sps:$4 sm:$0xff]  }
0x15b0   :  { %4702 = vmatprep.subr.bf16.mxu0 %v7306_v49  ;;  %v7381_v49 = vld [vmem:[#allocation2 + $0x1e04] ss:$16 sps:$4 sm:$0xff]  }
0x15b3   :  { %4703 = vmatpush1.bf16.msra.mxu0 %v7304_v50  ;;  %v7379_v50 = vld [vmem:[#allocation2 + $0x1e00] ss:$16 sps:$4 sm:$0xff]  }
0x15b4   :  { %4704 = vmatprep.subr.bf16.mxu0 %v7312_v51  ;;  %v7384_v51 = vld [vmem:[#allocation2 + $0x1e24] ss:$16 sps:$4 sm:$0xff]  }
0x15b7   :  { %4705 = vmatpush1.bf16.msra.mxu0 %v7310_v52  ;;  %v7382_v52 = vld [vmem:[#allocation2 + $0x1e20] ss:$16 sps:$4 sm:$0xff]  }
0x15b8   :  { %4706 = vmatprep.subr.bf16.mxu0 %v7318_v53  ;;  %v7387_v53 = vld [vmem:[#allocation2 + $0x1e44] ss:$16 sps:$4 sm:$0xff]  }
0x15bb   :  { %4707 = vmatpush1.bf16.msra.mxu0 %v7316_v54  ;;  %v7433_v54 = vld [vmem:[#allocation2 + $0x2140] ss:$16 sps:$4 sm:$0xff]  }
0x15bc   :  { %4708 = vmatprep.subr.bf16.mxu0 %v7324_v57  ;;  %v7434_v57 = vld [vmem:[#allocation2 + $0x2040] ss:$16 sps:$4 sm:$0xff]  }
0x15bf   :  { %4709 = vmatpush1.bf16.msra.mxu0 %v7322_v55  ;;  %v7435_v55 = vld [vmem:[#allocation2 + $0x2160] ss:$16 sps:$4 sm:$0xff]  }
0x15c0   :  { %4710 = vmatprep.subr.bf16.mxu0 %v7330_v62  ;;  %v7437_v62 = vld [vmem:[#allocation2 + $0x2180] ss:$16 sps:$4 sm:$0xff]  }
0x15c3   :  { %4711 = vmatpush1.bf16.msra.mxu0 %v7328_v19  ;;  %v7439_v19 = vld [vmem:[#allocation2 + $0x21a0] ss:$16 sps:$4 sm:$0xff]  }
0x15c4   :  { %4712 = vmatprep.subr.bf16.mxu0 %v7336_v4  ;;  %v7441_v4 = vld [vmem:[#allocation2 + $0x21c0] ss:$16 sps:$4 sm:$0xff]  }
0x15c7   :  { %4713 = vmatpush1.bf16.msra.mxu0 %v7334_v6  ;;  %v7443_v6 = vld [vmem:[#allocation2 + $0x21e0] ss:$16 sps:$4 sm:$0xff]  }
0x15c8   :  { %6393 = vmatprep.subr.bf16.mxu0 %v7433_v54  ;;  %v7426_v54 = vld [vmem:[#allocation2 + $0x1fe4] ss:$16 sps:$4 sm:$0xff]  }
0x165d   :  { %v4223_v12 = vpop.f32.mrb[40].mxu0 }
0x165e   :  { %v4224_v13 = vadd.f32 %v4223_v12, %v4102_v9  ;;  %v4225_v14 = vpop.f32.mrb[41].mxu0  ;;  %v4304_v9 = vrot.slane %v7763_v8, %v7603_v58  ;;  %v4316_v12 = vrot.slane %v7763_v8, %v7613_v59 }
0x165f   :  { %v4226_v15 = vadd.f32 %v4225_v14, %v4106_v10  ;;  %v4227_v16 = vpop.f32.mrb[42].mxu0  ;;  %v4308_v10 = vrot.slane %v7763_v8, %v7606_v60 }
0x1660   :  { %v4230_v17 = vmax.f32 %v4224_v13, 0.0  ;;  %v4228_v18 = vpop.f32.mrb[43].mxu0 }
0x1661   :  { %v4231_v43 = vmax.f32 %v4226_v15, 0.0 }
0x1662   :  { %v4232_v21 = vpack.c.bf16 %v4230_v17, %v4230_v17 }
0x1663   :  { %v4233_v61 = vpack.c.bf16 %v4231_v43, %v4231_v43 }
0x1665   :  { %4673 = vmatprep.mubr.bf16.mxu1 %v4233_v61  ;;  %4714 = vmatprep.mubr.bf16.mxu0 %v4233_v61 }
0x1666   :  { %4674 = vmatmul.mubr.bf16.vlgmr.msra.gmra.mrb[80].mxu1 %v4232_v21  ;;  %4715 = vmatmul.mubr.bf16.vlgmr.msra.gmra.mrb[44].mxu0 %v4232_v21 }
0x1667   :  { %5129 = vmatpush1.bf16.msra.mxu1 %v7337_v20  ;;  %6394 = vmatpush3.bf16.msra.mxu0 %v7434_v57  ;;  %v7424_v57 = vld [vmem:[#allocation2 + $0x1fe0] ss:$16 sps:$4 sm:$0xff]  }
0x1668   :  { %5130 = vmatprep.subr.bf16.mxu1 %v7342_v22  ;;  %6395 = vmatprep.subr.bf16.mxu0 %v7435_v55  ;;  %v4312_v55 = vrot.slane %v7763_v8, %v7624_v45  ;;  %v7447_v45 = vld [vmem:[#allocation2 + $0x2220] ss:$16 sps:$4 sm:$0xff]  }
0x1669   :  { %v7448_v8 = vld [vmem:[#allocation2 + $0x2120] ss:$16 sps:$4 sm:$0xff]  }
0x166b   :  { %5131 = vmatpush1.bf16.msra.mxu1 %v7340_v23  ;;  %6396 = vmatpush3.bf16.msra.mxu0 %v7436_v56  ;;  %v7429_v56 = vld [vmem:[#allocation2 + $0x2004] ss:$16 sps:$4 sm:$0xff]  }
0x166c   :  { %5132 = vmatprep.subr.bf16.mxu1 %v7345_v24  ;;  %6397 = vmatprep.subr.bf16.mxu0 %v7437_v62  ;;  %v7427_v62 = vld [vmem:[#allocation2 + $0x2000] ss:$16 sps:$4 sm:$0xff]  }
0x166f   :  { %5133 = vmatpush1.bf16.msra.mxu1 %v7343_v25  ;;  %6398 = vmatpush3.bf16.msra.mxu0 %v7438_v63 }
0x1670   :  { %5134 = vmatprep.subr.bf16.mxu1 %v7348_v26  ;;  %6399 = vmatprep.subr.bf16.mxu0 %v7439_v19  ;;  %v7432_v19 = vld [vmem:[#allocation2 + $0x2024] ss:$16 sps:$4 sm:$0xff]  }
0x1673   :  { %5135 = vmatpush1.bf16.msra.mxu1 %v7346_v27  ;;  %6400 = vmatpush3.bf16.msra.mxu0 %v7440_v2  ;;  %v7385_v27 = vld [vmem:[#allocation2 + $0x1e40] ss:$16 sps:$4 sm:$0xff]  }
0x1674   :  { %5136 = vmatprep.subr.bf16.mxu1 %v7351_v28  ;;  %6401 = vmatprep.subr.bf16.mxu0 %v7441_v4  ;;  %v7430_v2 = vld [vmem:[#allocation2 + $0x2020] ss:$16 sps:$4 sm:$0xff]  }
0x1677   :  { %5137 = vmatpush1.bf16.msra.mxu1 %v7349_v29  ;;  %6402 = vmatpush3.bf16.msra.mxu0 %v7442_v5  ;;  %v7390_v29 = vld [vmem:[#allocation2 + $0x1e64] ss:$16 sps:$4 sm:$0xff]  }
0x1678   :  { %5138 = vmatprep.subr.bf16.mxu1 %v7354_v30  ;;  %6403 = vmatprep.subr.bf16.mxu0 %v7443_v6  ;;  %v7388_v30 = vld [vmem:[#allocation2 + $0x1e60] ss:$16 sps:$4 sm:$0xff]  }
0x1679   :  { %v7445_v6 = vld [vmem:[#allocation2 + $0x2200] ss:$16 sps:$4 sm:$0xff]  }
0x167b   :  { %5139 = vmatpush1.bf16.msra.mxu1 %v7352_v31  ;;  %6404 = vmatpush3.bf16.msra.mxu0 %v7444_v7  ;;  %v7393_v31 = vld [vmem:[#allocation2 + $0x1e84] ss:$16 sps:$4 sm:$0xff]   ;;  %v7446_v7 = vld [vmem:[#allocation2 + $0x2100] ss:$16 sps:$4 sm:$0xff]  }
0x167c   :  { %5140 = vmatprep.subr.bf16.mxu1 %v7357_v32  ;;  %v7391_v32 = vld [vmem:[#allocation2 + $0x1e80] ss:$16 sps:$4 sm:$0xff]   ;;  %6405 = vmatprep.subr.bf16.mxu0 %v7445_v6 }
0x167f   :  { %5141 = vmatpush1.bf16.msra.mxu1 %v7355_v33  ;;  %v7396_v33 = vld [vmem:[#allocation2 + $0x1ea4] ss:$16 sps:$4 sm:$0xff]   ;;  %6406 = vmatpush3.bf16.msra.mxu0 %v7446_v7 }
0x1680   :  { %5142 = vmatprep.subr.bf16.mxu1 %v7360_v34  ;;  %v7394_v34 = vld [vmem:[#allocation2 + $0x1ea0] ss:$16 sps:$4 sm:$0xff]   ;;  %6407 = vmatprep.subr.bf16.mxu0 %v7447_v45 }
0x1683   :  { %5143 = vmatpush1.bf16.msra.mxu1 %v7358_v3  ;;  %v7399_v3 = vld [vmem:[#allocation2 + $0x1ec4] ss:$16 sps:$4 sm:$0xff]   ;;  %6408 = vmatpush3.bf16.msra.mxu0 %v7448_v8 }
0x1684   :  { %5144 = vmatprep.subr.bf16.mxu1 %v7363_v35  ;;  %v7397_v35 = vld [vmem:[#allocation2 + $0x1ec0] ss:$16 sps:$4 sm:$0xff]   ;;  %6616 = vmatprep.subr.bf16.mxu0 %v7526_v0 }
0x1687   :  { %5145 = vmatpush1.bf16.msra.mxu1 %v7361_v36  ;;  %v7402_v36 = vld [vmem:[#allocation2 + $0x1ee4] ss:$16 sps:$4 sm:$0xff]  }
0x1688   :  { %5146 = vmatprep.subr.bf16.mxu1 %v7366_v37  ;;  %v7400_v37 = vld [vmem:[#allocation2 + $0x1ee0] ss:$16 sps:$4 sm:$0xff]  }
0x168b   :  { %5147 = vmatpush1.bf16.msra.mxu1 %v7364_v38  ;;  %v7405_v38 = vld [vmem:[#allocation2 + $0x1f04] ss:$16 sps:$4 sm:$0xff]  }
0x168c   :  { %5148 = vmatprep.subr.bf16.mxu1 %v7369_v39  ;;  %v7403_v39 = vld [vmem:[#allocation2 + $0x1f00] ss:$16 sps:$4 sm:$0xff]  }
0x168f   :  { %5149 = vmatpush1.bf16.msra.mxu1 %v7367_v40  ;;  %v7408_v40 = vld [vmem:[#allocation2 + $0x1f24] ss:$16 sps:$4 sm:$0xff]  }
0x1690   :  { %5150 = vmatprep.subr.bf16.mxu1 %v7372_v41  ;;  %v7406_v41 = vld [vmem:[#allocation2 + $0x1f20] ss:$16 sps:$4 sm:$0xff]  }
0x1693   :  { %5151 = vmatpush1.bf16.msra.mxu1 %v7370_v42  ;;  %v7411_v42 = vld [vmem:[#allocation2 + $0x1f44] ss:$16 sps:$4 sm:$0xff]  }
0x1694   :  { %5152 = vmatprep.subr.bf16.mxu1 %v7375_v44  ;;  %v7409_v44 = vld [vmem:[#allocation2 + $0x1f40] ss:$16 sps:$4 sm:$0xff]  }
0x1697   :  { %5153 = vmatpush1.bf16.msra.mxu1 %v7373_v46  ;;  %v7414_v46 = vld [vmem:[#allocation2 + $0x1f64] ss:$16 sps:$4 sm:$0xff]  }
0x1698   :  { %5154 = vmatprep.subr.bf16.mxu1 %v7378_v47  ;;  %v7412_v47 = vld [vmem:[#allocation2 + $0x1f60] ss:$16 sps:$4 sm:$0xff]  }
0x169b   :  { %5155 = vmatpush1.bf16.msra.mxu1 %v7376_v48  ;;  %v7417_v48 = vld [vmem:[#allocation2 + $0x1f84] ss:$16 sps:$4 sm:$0xff]  }
0x169c   :  { %5156 = vmatprep.subr.bf16.mxu1 %v7381_v49  ;;  %v7415_v49 = vld [vmem:[#allocation2 + $0x1f80] ss:$16 sps:$4 sm:$0xff]  }
0x169f   :  { %5157 = vmatpush1.bf16.msra.mxu1 %v7379_v50  ;;  %v7420_v50 = vld [vmem:[#allocation2 + $0x1fa4] ss:$16 sps:$4 sm:$0xff]  }
0x16a0   :  { %5158 = vmatprep.subr.bf16.mxu1 %v7384_v51  ;;  %v7418_v51 = vld [vmem:[#allocation2 + $0x1fa0] ss:$16 sps:$4 sm:$0xff]  }
0x16a3   :  { %5159 = vmatpush1.bf16.msra.mxu1 %v7382_v52  ;;  %v7423_v52 = vld [vmem:[#allocation2 + $0x1fc4] ss:$16 sps:$4 sm:$0xff]  }
0x16a4   :  { %5169 = vmatprep.subr.bf16.mxu1 %v7387_v53  ;;  %v7421_v53 = vld [vmem:[#allocation2 + $0x1fc0] ss:$16 sps:$4 sm:$0xff]  }
0x1739   :  { %v4675_v13 = vpop.f32.mrb[80].mxu1  ;;  %v7771_v14 = vpop.f32.mrb[44].mxu0 }
0x173a   :  { %v4676_v15 = vadd.f32 %v4675_v13, %v4304_v9  ;;  %v4677_v16 = vpop.f32.mrb[81].mxu1  ;;  %v4718_v17 = vpop.f32.mrb[45].mxu0  ;;  %v4717_v63 = vadd.f32 %v7771_v14, %v4312_v55  ;;  %v4796_v9 = vld [vmem:[#allocation4 + $0x63] ss:$8 sm:$0x3] }
0x173b   :  { %v4678_v18 = vadd.f32 %v4677_v16, %v4308_v10  ;;  %v4719_v43 = vadd.f32 %v4718_v17, %v4316_v12  ;;  %v4679_v61 = vpop.f32.mrb[82].mxu1  ;;  %v4720_v20 = vpop.f32.mrb[46].mxu0  ;;  %v4801_v10 = vrot.slane %v4796_v9, %v7603_v58  ;;  %v4805_v12 = vrot.slane %v4796_v9, %v7606_v60  ;;  %v7451_v60 = vld [vmem:[#allocation2 + $0x2280] ss:$16 sps:$4 sm:$0xff]  }
0x173c   :  { %v4723_v21 = vmax.f32 %v4676_v15, 0.0  ;;  %v4680_v22 = vpop.f32.mrb[83].mxu1  ;;  %v4721_v23 = vpop.f32.mrb[47].mxu0  ;;  %v4725_v4 = vmax.f32 %v4717_v63, 0.0 }
0x173d   :  { %v4724_v24 = vmax.f32 %v4678_v18, 0.0  ;;  %v4726_v25 = vmax.f32 %v4719_v43, 0.0  ;;  %v7450_v23 = vld [vmem:[#allocation2 + $0x2260] ss:$16 sps:$4 sm:$0xff]  }
0x173e   :  { %v4727_v28 = vpack.c.bf16 %v4723_v21, %v4723_v21  ;;  %v4729_v5 = vpack.c.bf16 %v4725_v4, %v4725_v4  ;;  %v7449_v21 = vld [vmem:[#allocation2 + $0x2240] ss:$16 sps:$4 sm:$0xff]  }
0x173f   :  { %v4728_v26 = vpack.c.bf16 %v4724_v24, %v4724_v24  ;;  %v4730_v59 = vpack.c.bf16 %v4726_v25, %v4726_v25  ;;  %v7452_v24 = vld [vmem:[#allocation2 + $0x22a0] ss:$16 sps:$4 sm:$0xff]  }
0x1740   :  { %v7453_v25 = vld [vmem:[#allocation2 + $0x22c0] ss:$16 sps:$4 sm:$0xff]  }
0x1741   :  { %5160 = vmatprep.mubr.bf16.mxu1 %v4728_v26  ;;  %v7454_v26 = vld [vmem:[#allocation2 + $0x22e0] ss:$16 sps:$4 sm:$0xff]  }
0x1742   :  { %5161 = vmatmul.mubr.bf16.vlgmr.msra.gmra.mrb[84].mxu1 %v4727_v28  ;;  %v7456_v28 = vld [vmem:[#allocation2 + $0x2320] ss:$16 sps:$4 sm:$0xff]  }
0x1743   :  { %5170 = vmatpush1.bf16.msra.mxu1 %v7385_v27  ;;  %5201 = vmatprep.mubr.bf16.mxu1 %v4730_v59  ;;  %v7455_v27 = vld [vmem:[#allocation2 + $0x2300] ss:$16 sps:$4 sm:$0xff]   ;;  %v5246_v59 = vld [vmem:[#allocation4 + $0x64] ss:$0 sm:$0xff] }
0x1744   :  { %5171 = vmatprep.subr.bf16.mxu1 %v7390_v29 }
0x1747   :  { %5172 = vmatpush1.bf16.msra.mxu1 %v7388_v30 }
0x1748   :  { %5173 = vmatprep.subr.bf16.mxu1 %v7393_v31 }
0x174b   :  { %5174 = vmatpush1.bf16.msra.mxu1 %v7391_v32 }
0x174c   :  { %5175 = vmatprep.subr.bf16.mxu1 %v7396_v33 }
0x174f   :  { %5176 = vmatpush1.bf16.msra.mxu1 %v7394_v34 }
0x1750   :  { %5177 = vmatprep.subr.bf16.mxu1 %v7399_v3 }
0x1753   :  { %5178 = vmatpush1.bf16.msra.mxu1 %v7397_v35  ;;  %v7457_v35 = vld [vmem:[#allocation2 + $0x2340] ss:$16 sps:$4 sm:$0xff]  }
0x1754   :  { %5179 = vmatprep.subr.bf16.mxu1 %v7402_v36 }
0x1757   :  { %5180 = vmatpush1.bf16.msra.mxu1 %v7400_v37  ;;  %v7458_v37 = vld [vmem:[#allocation2 + $0x2360] ss:$16 sps:$4 sm:$0xff]  }
0x1758   :  { %5181 = vmatprep.subr.bf16.mxu1 %v7405_v38  ;;  %v7459_v38 = vld [vmem:[#allocation2 + $0x2380] ss:$16 sps:$4 sm:$0xff]  }
0x175b   :  { %5182 = vmatpush1.bf16.msra.mxu1 %v7403_v39  ;;  %v7460_v39 = vld [vmem:[#allocation2 + $0x23a0] ss:$16 sps:$4 sm:$0xff]  }
0x175c   :  { %5183 = vmatprep.subr.bf16.mxu1 %v7408_v40  ;;  %v5401_v40 = vld [vmem:[#allocation4 + $0x65] ss:$0 sm:$0xff] }
0x175f   :  { %5184 = vmatpush1.bf16.msra.mxu1 %v7406_v41 }
0x1760   :  { %5185 = vmatprep.subr.bf16.mxu1 %v7411_v42 }
0x1763   :  { %5186 = vmatpush1.bf16.msra.mxu1 %v7409_v44 }
0x1764   :  { %5187 = vmatprep.subr.bf16.mxu1 %v7414_v46 }
0x1767   :  { %5188 = vmatpush1.bf16.msra.mxu1 %v7412_v47 }
0x1768   :  { %5189 = vmatprep.subr.bf16.mxu1 %v7417_v48 }
0x176b   :  { %5190 = vmatpush1.bf16.msra.mxu1 %v7415_v49  ;;  %v7461_v49 = vld [vmem:[#allocation2 + $0x23c0] ss:$16 sps:$4 sm:$0xff]  }
0x176c   :  { %5191 = vmatprep.subr.bf16.mxu1 %v7420_v50 }
0x176f   :  { %5192 = vmatpush1.bf16.msra.mxu1 %v7418_v51  ;;  %v7462_v51 = vld [vmem:[#allocation2 + $0x23e0] ss:$16 sps:$4 sm:$0xff]  }
0x1770   :  { %5193 = vmatprep.subr.bf16.mxu1 %v7423_v52  ;;  %v5500_v52 = vld [vmem:[#allocation4 + $0x66] ss:$0 sm:$0xff] }
0x1773   :  { %5194 = vmatpush1.bf16.msra.mxu1 %v7421_v53 }
0x1774   :  { %5195 = vmatprep.subr.bf16.mxu1 %v7426_v54 }
0x1777   :  { %5196 = vmatpush1.bf16.msra.mxu1 %v7424_v57 }
0x1778   :  { %5197 = vmatprep.subr.bf16.mxu1 %v7429_v56 }
0x177b   :  { %5198 = vmatpush1.bf16.msra.mxu1 %v7427_v62 }
0x177c   :  { %5199 = vmatprep.subr.bf16.mxu1 %v7432_v19  ;;  %v5574_v19 = vld [vmem:[#allocation4 + $0x67] ss:$0 sm:$0xff] }
0x177f   :  { %5200 = vmatpush1.bf16.msra.mxu1 %v7430_v2 }
0x1782   :  { %5202 = vmatmul.mubr.bf16.vlgmr.msra.gmra.mrb[84].mxu1 %v4729_v5 }
0x1855   :  { %v5203_v13 = vpop.f32.mrb[84].mxu1 }
0x1856   :  { %v6666_v14 = vadd.f32 %v5203_v13, %v4801_v10  ;;  %v5205_v15 = vpop.f32.mrb[85].mxu1 }
0x1857   :  { %v6667_v16 = vadd.f32 %v5205_v15, %v4805_v12  ;;  %v5207_v17 = vpop.f32.mrb[86].mxu1 }
0x1858   :  { %v5210_v18 = vmax.f32 %v6666_v14, 0.0  ;;  %v5208_v43 = vpop.f32.mrb[87].mxu1  ;;  %v5642_v14 = vld [vmem:[#allocation2 + $0x2400] sm:$0xf] }
0x1859   :  { %v5211_v61 = vmax.f32 %v6667_v16, 0.0  ;;  %v7471_v43 = vld [vmem:[#allocation4 + $0x46] ss:$8 sm:$0x3] }
0x185a   :  { %v5212_v22 = vpack.c.bf16 %v5210_v18, %v5210_v18 }
0x185b   :  { %v5213_v20 = vpack.c.bf16 %v5211_v61, %v5211_v61  ;;  %v3801_v61 = vrot.slane %v7471_v43, %v7603_v58 }
0x185d   :  { %5375 = vmatprep.mubr.bf16.mxu0 %v5213_v20  ;;  %v3872_v20 = vadd.f32 %v7752_v11, %v3801_v61 }
0x185e   :  { %5376 = vmatmul.mubr.bf16.vlgmr.msra.gmra.mrb[48].mxu0 %v5212_v22 }
0x185f   :  { %6617 = vmatpush3.bf16.msra.mxu0 %v7449_v21  ;;  %6632 = vmatprep.mubr.msk.bf16.mxu0 %vm7527_vm0, %v7526_v0 }
0x1860   :  { %6618 = vmatprep.subr.bf16.mxu0 %v7526_v0 }
0x1863   :  { %6619 = vmatpush3.bf16.msra.mxu0 %v7450_v23 }
0x1864   :  { %6620 = vmatprep.subr.bf16.mxu0 %v7526_v0 }
0x1867   :  { %6621 = vmatpush3.bf16.msra.mxu0 %v7451_v60 }
0x1868   :  { %6622 = vmatprep.subr.bf16.mxu0 %v7526_v0 }
0x186b   :  { %6623 = vmatpush3.bf16.msra.mxu0 %v7452_v24 }
0x186c   :  { %6624 = vmatprep.subr.bf16.mxu0 %v7526_v0 }
0x186f   :  { %6625 = vmatpush3.bf16.msra.mxu0 %v7453_v25 }
0x1870   :  { %6626 = vmatprep.subr.bf16.mxu0 %v7526_v0 }
0x1873   :  { %6627 = vmatpush3.bf16.msra.mxu0 %v7454_v26 }
0x1874   :  { %6628 = vmatprep.subr.bf16.mxu0 %v7526_v0 }
0x1877   :  { %6629 = vmatpush3.bf16.msra.mxu0 %v7455_v27 }
0x1878   :  { %6630 = vmatprep.subr.bf16.mxu0 %v7526_v0 }
0x187b   :  { %6631 = vmatpush3.bf16.msra.mxu0 %v7456_v28 }
0x187c   :  { %6636 = vmatprep.subr.bf16.mxu0 %v7526_v0 }
0x1931   :  { %v6409_v29 = vpop.f32.mrb[48].mxu0 }
0x1932   :  { %v6410_v30 = vpop.f32.mrb[49].mxu0 }
0x1933   :  { %v6411_v31 = vadd.f32 %v6410_v30, %v6409_v29  ;;  %v6412_v32 = vpop.f32.mrb[50].mxu0 }
0x1934   :  { %v6413_v33 = vpop.f32.mrb[51].mxu0 }
0x1935   :  { %v5378_v34 = vadd.f32 %v6411_v31, %v5246_v59 }
0x1937   :  { %v5383_v3 = vmax.f32 %v5378_v34, 0.0 }
0x1939   :  { %v5384_v36 = vpack.c.bf16 %v5383_v3, %v5383_v3 }
0x193b   :  { %6633 = vmatmul.mubr.bf16.vlgmr.msra.gmra.mrb[52].mxu0 %v5384_v36 }
0x193c   :  { %6637 = vmatpush3.bf16.msra.mxu0 %v7457_v35  ;;  %6644 = vmatprep.mubr.msk.bf16.mxu0 %vm7527_vm0, %v7526_v0 }
0x193d   :  { %6638 = vmatprep.subr.bf16.mxu0 %v7526_v0 }
0x1940   :  { %6639 = vmatpush3.bf16.msra.mxu0 %v7458_v37 }
0x1941   :  { %6640 = vmatprep.subr.bf16.mxu0 %v7526_v0 }
0x1944   :  { %6641 = vmatpush3.bf16.msra.mxu0 %v7459_v38 }
0x1945   :  { %6642 = vmatprep.subr.bf16.mxu0 %v7526_v0 }
0x1948   :  { %6643 = vmatpush3.bf16.msra.mxu0 %v7460_v39 }
0x1949   :  { %6648 = vmatprep.subr.bf16.mxu0 %v7526_v0 }
0x1a0e   :  { %v5484_v41 = vpop.f32.mrb[52].mxu0 }
0x1a0f   :  { %v5485_v42 = vadd.f32 %v5484_v41, %v5401_v40  ;;  %v6634_v44 = vpop.f32.mrb[53].mxu0 }
0x1a10   :  { %v5487_v46 = vpop.f32.mrb[54].mxu0 }
0x1a11   :  { %v5490_v47 = vmax.f32 %v5485_v42, 0.0  ;;  %v6635_v48 = vpop.f32.mrb[55].mxu0 }
0x1a13   :  { %v5491_v50 = vpack.c.bf16 %v5490_v47, %v5490_v47 }
0x1a15   :  { %6645 = vmatmul.mubr.msk.bf16.vlgmr.msra.gmra.mrb[56].mxu0 %vm196_vm3, %v5491_v50 }
0x1a16   :  { %6649 = vmatpush3.bf16.msra.mxu0 %v7461_v49  ;;  %6652 = vmatprep.mubr.msk.bf16.mxu0 %vm7527_vm0, %v7526_v0 }
0x1a17   :  { %6650 = vmatprep.subr.bf16.mxu0 %v7526_v0 }
0x1a1a   :  { %6651 = vmatpush3.bf16.msra.mxu0 %v7462_v51 }
0x1a1b   :  { %6656 = vmatprep.subr.bf16.mxu0 %v7526_v0 }
0x1ae8   :  { %v5562_v53 = vpop.f32.mrb[56].mxu0 }
0x1ae9   :  { %v5563_v54 = vadd.f32 %v5562_v53, %v5500_v52  ;;  %v6646_v57 = vpop.f32.mrb[57].mxu0 }
0x1aea   :  { %v5565_v55 = vpop.f32.mrb[58].mxu0 }
0x1aeb   :  { %v5568_v56 = vmax.f32 %v5563_v54, 0.0  ;;  %v6647_v62 = vpop.f32.mrb[59].mxu0 }
0x1aed   :  { %v5569_v63 = vpack.c.bf16 %v5568_v56, %v5568_v56 }
0x1aef   :  { %6653 = vmatmul.mubr.msk.bf16.vlgmr.msra.gmra.mrb[60].mxu0 %vm117_vm2, %v5569_v63 }
0x1af0   :  { %6658 = vmatprep.mubr.msk.bf16.mxu0 %vm7527_vm0, %v7526_v0  ;;  %v5647_v0 = vsel %vm1812_vm4, %v5642_v14, 0 }
0x1af1   :  { %6657 = vmatpush3.bf16.msra.mxu0 %v5647_v0 }
0x1bc2   :  { %v5624_v2 = vpop.f32.mrb[60].mxu0 }
0x1bc3   :  { %v5625_v4 = vadd.f32 %v5624_v2, %v5574_v19  ;;  %v6654_v5 = vpop.f32.mrb[61].mxu0 }
0x1bc4   :  { %v5627_v6 = vpop.f32.mrb[62].mxu0 }
0x1bc5   :  { %v6655_v7 = vpop.f32.mrb[63].mxu0  ;;  %v5630_v45 = vsel %vm1792_vm5, %v5625_v4, -inf }
0x1bc6   :  { %5631 = vmax.xlane.f32.xlu1 %v5630_v45 }
0x1c53   :  { %v5632_v8 = vpop.xlane.xlu1 %5631 }
0x1c54   :  { %v5633_v9 = vsub.f32 %v5625_v4, %v5632_v8 }
0x1c56   :  { %v5634_v10 = vmul.f32 1.442695, %v5633_v9 }
0x1c58   :  { %7467 = vpow2.f32 %v5634_v10 }
0x1c62   :  { %v7468_v12 = vpop.eup %7467 }
0x1c63   :  { %v5636_v13 = vsel %vm1792_vm5, %v7468_v12, 0.0 }
0x1c64   :  { %5637 = vadd.xlane.f32.xlu0 %v5636_v13 }
0x1cf1   :  { %v5638_v15 = vpop.xlane.xlu0 %5637 }
0x1cf2   :  { %7469 = vrcp.f32 %v5638_v15 }
0x1cfc   :  { %v7470_v16 = vpop.eup %7469 }
0x1cfd   :  { %v5640_v17 = vmul.f32 %v7470_v16, %v7468_v12 }
0x1cff   :  { %v5641_v18 = vpack.c.bf16 %v5640_v17, %v5640_v17 }
0x1d01   :  { %6659 = vmatmul.mubr.msk.bf16.vlgmr.msra.gmra.mrb[64].mxu0 %vm1792_vm5, %v5641_v18 }
0x1dd4   :  { %v5683_v21 = vpop.f32.mrb[64].mxu0 }
0x1dd5   :  { %v5689_v22 = vadd.f32 %v5683_v21, %v3872_v20  ;;  %v6660_v23 = vpop.f32.mrb[65].mxu0 }
0x1dd6   :  { %v5686_v60 = vpop.f32.mrb[66].mxu0 }
0x1dd7   :  { %v6661_v24 = vpop.f32.mrb[67].mxu0  ;;  %v5690_v25 = vmul.f32 %v5689_v22, %v7745_v1 }
0x1dd9   :  { %5691 = vadd.xlane.f32.xlu1 %v5690_v25 }
0x1e66   :  { %v5692_v26 = vpop.xlane.xlu1 %5691 }
0x1e67   :  { %5694 = vst.msk [vmem:[%s7816_s3] sm:$0xff] %vm5693_vm11, %v5692_v26 }
0x1e68   :  { %5699 = vsyncpa [#allocation3], 1 }
0x1e69   :  { %5700 = vsyncpa [#allocation5], 1 }

</bundles_post_ra>
